<compile_context>
chip_gen: v5e
topology: v5e:2x2
jax: 0.10.0
libtpu: 0.0.40
codegen_flags: <defaults>
</compile_context>

<pallas_src>
import jax
import jax.numpy as jnp
from jax.experimental import pallas as pl
from jax.experimental.pallas import tpu as pltpu


def _round_up(n, m):
    return ((n + m - 1) // m) * m


_INV_SQRT2 = 0.7071067811865476


def _gelu_exact(x):
    # Matches torch.nn.GELU() default (erf-based, exact).  Computed in f32;
    # erf lowers to the EUP so it overlaps with VPU/MXU work.
    return 0.5 * x * (1.0 + jax.lax.erf(x * _INV_SQRT2))


def _mlp_kernel(x_ref, *refs):
    """Fused MLP forward.

    refs = (w0, b0, w1, b1, ..., w_{L-1}, b_{L-1}, out_ref)
    GELU after every layer except the last (output_activation = Identity).
    Matmuls run in the input dtype on the MXU, accumulating in float32;
    bias-add and GELU are done in float32.
    """
    out_ref = refs[-1]
    wb = refs[:-1]
    n_layers = len(wb) // 2
    compute_dtype = x_ref.dtype

    h = x_ref[...]                         # native dtype (f32 or bf16)
    for i in range(n_layers):
        w = wb[2 * i][...]                 # native dtype -> MXU-friendly operand
        b = wb[2 * i + 1][...].astype(jnp.float32)
        acc = jnp.dot(h, w, preferred_element_type=jnp.float32) + b
        if i < n_layers - 1:
            acc = _gelu_exact(acc)         # f32 elementwise
            h = acc.astype(compute_dtype)
        else:
            out_ref[...] = acc.astype(out_ref.dtype)


def mlp_forward(x, params, *, block_rows=512, single_buffer_weights=True,
                vmem_limit_bytes=None):
    """Run the fused MLP kernel.

    x:      [B, input_dim]
    params: list of (w, b) with w: [in, out], b: [1, out]

    All weights stay resident in VMEM; the grid tiles only the batch rows.
    Ragged batches are padded to the row tile and the result sliced back.
    """
    B, D = x.shape
    out_dim = params[-1][0].shape[1]

    # Row tile: multiple of 16 (bf16 sublane packing), never (much) larger
    # than the batch itself; keeps f32 intermediates well under vreg budget.
    block_rows = _round_up(max(16, min(block_rows, _round_up(B, 16))), 16)
    B_pad = _round_up(B, block_rows)
    x_p = jnp.pad(x, ((0, B_pad - B), (0, 0))) if B_pad != B else x
    grid = (B_pad // block_rows,)

    flat_args = [x_p]
    for (w, b) in params:
        flat_args.extend([w, b])

    if vmem_limit_bytes is None:
        itemsize = x.dtype.itemsize
        wb_bytes = sum(w.size * w.dtype.itemsize + b.size * b.dtype.itemsize
                       for (w, b) in params)
        io_bytes = 2 * block_rows * (D + out_dim) * itemsize  # double-buffered x/out
        max_width = max([D, out_dim] + [w.shape[1] for (w, _) in params])
        act_bytes = 4 * block_rows * max_width * 3            # f32 intermediates slack
        est = 2 * wb_bytes + io_bytes + act_bytes + (2 << 20)
        # 32 MiB is the default scoped limit; cap at 64 MiB (v7x physical VMEM).
        vmem_limit_bytes = min(max(est, 32 << 20), 64 << 20)

    def run(single_buf):
        wkw = dict(pipeline_mode=pl.Buffered(1)) if single_buf else {}
        in_specs = [pl.BlockSpec((block_rows, D), lambda i: (i, 0))]
        for (w, b) in params:
            # Constant block index -> weights resident across all grid steps.
            in_specs.append(pl.BlockSpec(w.shape, lambda i: (0, 0), **wkw))
            in_specs.append(pl.BlockSpec(b.shape, lambda i: (0, 0), **wkw))
        out_spec = pl.BlockSpec((block_rows, out_dim), lambda i: (i, 0))
        return pl.pallas_call(
            _mlp_kernel,
            out_shape=jax.ShapeDtypeStruct((B_pad, out_dim), x.dtype),
            grid=grid,
            in_specs=in_specs,
            out_specs=out_spec,
            compiler_params=pltpu.CompilerParams(
                dimension_semantics=("parallel",),
                vmem_limit_bytes=vmem_limit_bytes),
        )(*flat_args)

    if single_buffer_weights:
        try:
            out_p = run(True)
        except Exception:
            # pipeline_mode / Buffered(1) unsupported on this JAX: use default
            # double buffering (correctness identical, slightly more VMEM).
            out_p = run(False)
    else:
        out_p = run(False)

    return out_p[:B] if B_pad != B else out_p


def init_mlp_params(key, input_dim, hidden_dims, output_dim, dtype=jnp.float32):
    """Deterministic init mimicking nn.Linear's uniform(-1/sqrt(fan_in), 1/sqrt(fan_in))."""
    dims = [input_dim] + list(hidden_dims) + [output_dim]
    params = []
    for i in range(len(dims) - 1):
        fan_in, fan_out = dims[i], dims[i + 1]
        key, kw, kb = jax.random.split(key, 3)
        bound = 1.0 / jnp.sqrt(jnp.float32(fan_in))
        w = jax.random.uniform(kw, (fan_in, fan_out), jnp.float32, -bound, bound)
        b = jax.random.uniform(kb, (1, fan_out), jnp.float32, -bound, bound)
        params.append((w.astype(dtype), b.astype(dtype)))
    return params


def mlp_reference(x, params):
    """Pure-JAX reference that follows the same dtype path as the kernel."""
    compute_dtype = x.dtype
    h = x
    for i, (w, b) in enumerate(params):
        h = jnp.dot(h, w, preferred_element_type=jnp.float32) + b.astype(jnp.float32)
        if i < len(params) - 1:
            h = _gelu_exact(h).astype(compute_dtype)
    return h.astype(x.dtype)


if __name__ == "__main__":
    # Shapes consistent with MLP(input_dim=32, hidden_dims=[64, 32], output_dim=16).
    input_dim, hidden_dims, output_dim = 32, [64, 32], 16

    key = jax.random.PRNGKey(0)
    key, kx = jax.random.split(key)
    params_f32 = init_mlp_params(key, input_dim, hidden_dims, output_dim, jnp.float32)

    # 1) f32, batch a multiple of the row tile -> 2 grid steps ("parallel" so
    #    v7x can split them across its 2 TensorCores).
    x = jax.random.normal(kx, (256, input_dim), jnp.float32)
    out = jax.block_until_ready(mlp_forward(x, params_f32, block_rows=128))
    ref = mlp_reference(x, params_f32)
    assert out.shape == (256, output_dim)
    assert jnp.allclose(out, ref, atol=1e-5, rtol=1e-5), "f32 mismatch vs reference"

    # 2) f32, ragged batch -> wrapper pads the tail tile instead of asserting.
    x_tail = x[:37]
    out_tail = jax.block_until_ready(mlp_forward(x_tail, params_f32, block_rows=128))
    assert out_tail.shape == (37, output_dim)
    assert jnp.allclose(out_tail, ref[:37], atol=1e-5, rtol=1e-5), "tail mismatch"

    # 3) bf16 operands in HBM / on the MXU, f32 accumulation inside the kernel.
    params_bf16 = [(w.astype(jnp.bfloat16), b.astype(jnp.bfloat16))
                   for (w, b) in params_f32]
    x_bf16 = x.astype(jnp.bfloat16)
    out_bf16 = jax.block_until_ready(mlp_forward(x_bf16, params_bf16, block_rows=128))
    ref_bf16 = mlp_reference(x_bf16, params_bf16)
    assert out_bf16.shape == (256, output_dim)
    assert jnp.allclose(out_bf16.astype(jnp.float32), ref_bf16.astype(jnp.float32),
                        atol=2e-2, rtol=2e-2), "bf16 mismatch vs reference"

    print("KERNEL_OK")
</pallas_src>

<mosaic_0001>
module attributes {stable_mosaic.version = 11 : i64} {
  func.func @_mlp_kernel(%arg0: i32, %arg1: memref<128x32xf32, #tpu.memory_space<vmem>>, %arg2: memref<32x64xf32, #tpu.memory_space<vmem>>, %arg3: memref<1x64xf32, #tpu.memory_space<vmem>>, %arg4: memref<64x32xf32, #tpu.memory_space<vmem>>, %arg5: memref<1x32xf32, #tpu.memory_space<vmem>>, %arg6: memref<32x16xf32, #tpu.memory_space<vmem>>, %arg7: memref<1x16xf32, #tpu.memory_space<vmem>>, %arg8: memref<128x16xf32, #tpu.memory_space<vmem>>) attributes {dimension_semantics = [#tpu.dimension_semantics<parallel>], iteration_bounds = array<i64: 2>, scalar_prefetch = 0 : i64, scratch_operands = 0 : i64, tpu.core_type = #tpu.core_type<tc>, window_params = [{transform_indices = @transform_0, window_bounds = array<i64: 128, 32>}, {pipeline_mode = #tpu.pipeline_mode<synchronous>, transform_indices = @transform_1, window_bounds = array<i64: 32, 64>}, {pipeline_mode = #tpu.pipeline_mode<synchronous>, transform_indices = @transform_2, window_bounds = array<i64: 1, 64>}, {pipeline_mode = #tpu.pipeline_mode<synchronous>, transform_indices = @transform_3, window_bounds = array<i64: 64, 32>}, {pipeline_mode = #tpu.pipeline_mode<synchronous>, transform_indices = @transform_4, window_bounds = array<i64: 1, 32>}, {pipeline_mode = #tpu.pipeline_mode<synchronous>, transform_indices = @transform_5, window_bounds = array<i64: 32, 16>}, {pipeline_mode = #tpu.pipeline_mode<synchronous>, transform_indices = @transform_6, window_bounds = array<i64: 1, 16>}, {transform_indices = @transform_7, window_bounds = array<i64: 128, 16>}]} {
    %c0 = arith.constant 0 : index
    %c0_0 = arith.constant 0 : index
    %0 = vector.load %arg1[%c0, %c0_0] : memref<128x32xf32, #tpu.memory_space<vmem>>, vector<128x32xf32>
    %c0_1 = arith.constant 0 : index
    %c0_2 = arith.constant 0 : index
    %1 = vector.load %arg2[%c0_1, %c0_2] : memref<32x64xf32, #tpu.memory_space<vmem>>, vector<32x64xf32>
    %c0_3 = arith.constant 0 : index
    %c0_4 = arith.constant 0 : index
    %2 = vector.load %arg3[%c0_3, %c0_4] : memref<1x64xf32, #tpu.memory_space<vmem>>, vector<1x64xf32>
    %cst = arith.constant dense<0.000000e+00> : vector<128x64xf32>
    %3 = tpu.matmul %0, %1, %cst {dimension_numbers = #tpu.dot_dimension_numbers<[1], [0], [0], [1], [0, 0, 1, 1], [], []>} : vector<128x32xf32>, vector<32x64xf32>, vector<128x64xf32> -> vector<128x64xf32>
    %4 = vector.broadcast %2 : vector<1x64xf32> to vector<128x64xf32>
    %5 = arith.addf %3, %4 : vector<128x64xf32>
    %cst_5 = arith.constant 5.000000e-01 : f32
    %6 = vector.broadcast %cst_5 : f32 to vector<128x64xf32>
    %7 = arith.mulf %6, %5 : vector<128x64xf32>
    %cst_6 = arith.constant 0.707106769 : f32
    %8 = vector.broadcast %cst_6 : f32 to vector<128x64xf32>
    %9 = arith.mulf %5, %8 : vector<128x64xf32>
    %10 = math.erf %9 : vector<128x64xf32>
    %cst_7 = arith.constant 1.000000e+00 : f32
    %11 = vector.broadcast %cst_7 : f32 to vector<128x64xf32>
    %12 = arith.addf %11, %10 : vector<128x64xf32>
    %13 = arith.mulf %7, %12 : vector<128x64xf32>
    %c0_8 = arith.constant 0 : index
    %c0_9 = arith.constant 0 : index
    %14 = vector.load %arg4[%c0_8, %c0_9] : memref<64x32xf32, #tpu.memory_space<vmem>>, vector<64x32xf32>
    %c0_10 = arith.constant 0 : index
    %c0_11 = arith.constant 0 : index
    %15 = vector.load %arg5[%c0_10, %c0_11] : memref<1x32xf32, #tpu.memory_space<vmem>>, vector<1x32xf32>
    %cst_12 = arith.constant dense<0.000000e+00> : vector<128x32xf32>
    %16 = tpu.matmul %13, %14, %cst_12 {dimension_numbers = #tpu.dot_dimension_numbers<[1], [0], [0], [1], [0, 0, 1, 1], [], []>} : vector<128x64xf32>, vector<64x32xf32>, vector<128x32xf32> -> vector<128x32xf32>
    %17 = vector.broadcast %15 : vector<1x32xf32> to vector<128x32xf32>
    %18 = arith.addf %16, %17 : vector<128x32xf32>
    %cst_13 = arith.constant 5.000000e-01 : f32
    %19 = vector.broadcast %cst_13 : f32 to vector<128x32xf32>
    %20 = arith.mulf %19, %18 : vector<128x32xf32>
    %cst_14 = arith.constant 0.707106769 : f32
    %21 = vector.broadcast %cst_14 : f32 to vector<128x32xf32>
    %22 = arith.mulf %18, %21 : vector<128x32xf32>
    %23 = math.erf %22 : vector<128x32xf32>
    %cst_15 = arith.constant 1.000000e+00 : f32
    %24 = vector.broadcast %cst_15 : f32 to vector<128x32xf32>
    %25 = arith.addf %24, %23 : vector<128x32xf32>
    %26 = arith.mulf %20, %25 : vector<128x32xf32>
    %c0_16 = arith.constant 0 : index
    %c0_17 = arith.constant 0 : index
    %27 = vector.load %arg6[%c0_16, %c0_17] : memref<32x16xf32, #tpu.memory_space<vmem>>, vector<32x16xf32>
    %c0_18 = arith.constant 0 : index
    %c0_19 = arith.constant 0 : index
    %28 = vector.load %arg7[%c0_18, %c0_19] : memref<1x16xf32, #tpu.memory_space<vmem>>, vector<1x16xf32>
    %cst_20 = arith.constant dense<0.000000e+00> : vector<128x16xf32>
    %29 = tpu.matmul %26, %27, %cst_20 {dimension_numbers = #tpu.dot_dimension_numbers<[1], [0], [0], [1], [0, 0, 1, 1], [], []>} : vector<128x32xf32>, vector<32x16xf32>, vector<128x16xf32> -> vector<128x16xf32>
    %30 = vector.broadcast %28 : vector<1x16xf32> to vector<128x16xf32>
    %31 = arith.addf %29, %30 : vector<128x16xf32>
    %c0_21 = arith.constant 0 : index
    %c0_22 = arith.constant 0 : index
    %32 = vector.load %arg8[%c0_21, %c0_22] : memref<128x16xf32, #tpu.memory_space<vmem>>, vector<128x16xf32>
    tpu.vector_store %arg8[%c0_21, %c0_22], %31 {strides = array<i32>} : memref<128x16xf32, #tpu.memory_space<vmem>>, vector<128x16xf32>,
    return
  }
  func.func @transform_0(%arg0: i32) -> (i32, i32) {
    %c0_i32 = arith.constant 0 : i32
    %c0_i32_0 = arith.constant 0 : i32
    return %arg0, %c0_i32 : i32, i32
  }
  func.func @transform_1(%arg0: i32) -> (i32, i32) {
    %c0_i32 = arith.constant 0 : i32
    %c0_i32_0 = arith.constant 0 : i32
    %c0_i32_1 = arith.constant 0 : i32
    return %c0_i32, %c0_i32_0 : i32, i32
  }
  func.func @transform_2(%arg0: i32) -> (i32, i32) {
    %c0_i32 = arith.constant 0 : i32
    %c0_i32_0 = arith.constant 0 : i32
    %c0_i32_1 = arith.constant 0 : i32
    return %c0_i32, %c0_i32_0 : i32, i32
  }
  func.func @transform_3(%arg0: i32) -> (i32, i32) {
    %c0_i32 = arith.constant 0 : i32
    %c0_i32_0 = arith.constant 0 : i32
    %c0_i32_1 = arith.constant 0 : i32
    return %c0_i32, %c0_i32_0 : i32, i32
  }
  func.func @transform_4(%arg0: i32) -> (i32, i32) {
    %c0_i32 = arith.constant 0 : i32
    %c0_i32_0 = arith.constant 0 : i32
    %c0_i32_1 = arith.constant 0 : i32
    return %c0_i32, %c0_i32_0 : i32, i32
  }
  func.func @transform_5(%arg0: i32) -> (i32, i32) {
    %c0_i32 = arith.constant 0 : i32
    %c0_i32_0 = arith.constant 0 : i32
    %c0_i32_1 = arith.constant 0 : i32
    return %c0_i32, %c0_i32_0 : i32, i32
  }
  func.func @transform_6(%arg0: i32) -> (i32, i32) {
    %c0_i32 = arith.constant 0 : i32
    %c0_i32_0 = arith.constant 0 : i32
    %c0_i32_1 = arith.constant 0 : i32
    return %c0_i32, %c0_i32_0 : i32, i32
  }
  func.func @transform_7(%arg0: i32) -> (i32, i32) {
    %c0_i32 = arith.constant 0 : i32
    %c0_i32_0 = arith.constant 0 : i32
    return %arg0, %c0_i32 : i32, i32
  }
}

module attributes {stable_mosaic.version = 11 : i64} {
  func.func @_mlp_kernel(%arg0: i32, %arg1: memref<128x32xf32, #tpu.memory_space<vmem>>, %arg2: memref<32x64xf32, #tpu.memory_space<vmem>>, %arg3: memref<1x64xf32, #tpu.memory_space<vmem>>, %arg4: memref<64x32xf32, #tpu.memory_space<vmem>>, %arg5: memref<1x32xf32, #tpu.memory_space<vmem>>, %arg6: memref<32x16xf32, #tpu.memory_space<vmem>>, %arg7: memref<1x16xf32, #tpu.memory_space<vmem>>, %arg8: memref<128x16xf32, #tpu.memory_space<vmem>>) attributes {dimension_semantics = [#tpu.dimension_semantics<parallel>], iteration_bounds = array<i64: 2>, scalar_prefetch = 0 : i64, scratch_operands = 0 : i64, tpu.core_type = #tpu.core_type<tc>, window_params = [{transform_indices = @transform_0, window_bounds = array<i64: 128, 32>}, {pipeline_mode = #tpu.pipeline_mode<synchronous>, transform_indices = @transform_1, window_bounds = array<i64: 32, 64>}, {pipeline_mode = #tpu.pipeline_mode<synchronous>, transform_indices = @transform_2, window_bounds = array<i64: 1, 64>}, {pipeline_mode = #tpu.pipeline_mode<synchronous>, transform_indices = @transform_3, window_bounds = array<i64: 64, 32>}, {pipeline_mode = #tpu.pipeline_mode<synchronous>, transform_indices = @transform_4, window_bounds = array<i64: 1, 32>}, {pipeline_mode = #tpu.pipeline_mode<synchronous>, transform_indices = @transform_5, window_bounds = array<i64: 32, 16>}, {pipeline_mode = #tpu.pipeline_mode<synchronous>, transform_indices = @transform_6, window_bounds = array<i64: 1, 16>}, {transform_indices = @transform_7, window_bounds = array<i64: 128, 16>}]} {
    %c0 = arith.constant 0 : index
    %c0_0 = arith.constant 0 : index
    %0 = vector.load %arg1[%c0, %c0_0] : memref<128x32xf32, #tpu.memory_space<vmem>>, vector<128x32xf32>
    %c0_1 = arith.constant 0 : index
    %c0_2 = arith.constant 0 : index
    %1 = vector.load %arg2[%c0_1, %c0_2] : memref<32x64xf32, #tpu.memory_space<vmem>>, vector<32x64xf32>
    %c0_3 = arith.constant 0 : index
    %c0_4 = arith.constant 0 : index
    %2 = vector.load %arg3[%c0_3, %c0_4] : memref<1x64xf32, #tpu.memory_space<vmem>>, vector<1x64xf32>
    %cst = arith.constant dense<0.000000e+00> : vector<128x64xf32>
    %3 = tpu.matmul %0, %1, %cst {dimension_numbers = #tpu.dot_dimension_numbers<[1], [0], [0], [1], [0, 0, 1, 1], [], []>} : vector<128x32xf32>, vector<32x64xf32>, vector<128x64xf32> -> vector<128x64xf32>
    %4 = vector.broadcast %2 : vector<1x64xf32> to vector<128x64xf32>
    %5 = arith.addf %3, %4 : vector<128x64xf32>
    %cst_5 = arith.constant 5.000000e-01 : f32
    %6 = vector.broadcast %cst_5 : f32 to vector<128x64xf32>
    %7 = arith.mulf %6, %5 : vector<128x64xf32>
    %cst_6 = arith.constant 0.707106769 : f32
    %8 = vector.broadcast %cst_6 : f32 to vector<128x64xf32>
    %9 = arith.mulf %5, %8 : vector<128x64xf32>
    %10 = math.erf %9 : vector<128x64xf32>
    %cst_7 = arith.constant 1.000000e+00 : f32
    %11 = vector.broadcast %cst_7 : f32 to vector<128x64xf32>
    %12 = arith.addf %11, %10 : vector<128x64xf32>
    %13 = arith.mulf %7, %12 : vector<128x64xf32>
    %c0_8 = arith.constant 0 : index
    %c0_9 = arith.constant 0 : index
    %14 = vector.load %arg4[%c0_8, %c0_9] : memref<64x32xf32, #tpu.memory_space<vmem>>, vector<64x32xf32>
    %c0_10 = arith.constant 0 : index
    %c0_11 = arith.constant 0 : index
    %15 = vector.load %arg5[%c0_10, %c0_11] : memref<1x32xf32, #tpu.memory_space<vmem>>, vector<1x32xf32>
    %cst_12 = arith.constant dense<0.000000e+00> : vector<128x32xf32>
    %16 = tpu.matmul %13, %14, %cst_12 {dimension_numbers = #tpu.dot_dimension_numbers<[1], [0], [0], [1], [0, 0, 1, 1], [], []>} : vector<128x64xf32>, vector<64x32xf32>, vector<128x32xf32> -> vector<128x32xf32>
    %17 = vector.broadcast %15 : vector<1x32xf32> to vector<128x32xf32>
    %18 = arith.addf %16, %17 : vector<128x32xf32>
    %cst_13 = arith.constant 5.000000e-01 : f32
    %19 = vector.broadcast %cst_13 : f32 to vector<128x32xf32>
    %20 = arith.mulf %19, %18 : vector<128x32xf32>
    %cst_14 = arith.constant 0.707106769 : f32
    %21 = vector.broadcast %cst_14 : f32 to vector<128x32xf32>
    %22 = arith.mulf %18, %21 : vector<128x32xf32>
    %23 = math.erf %22 : vector<128x32xf32>
    %cst_15 = arith.constant 1.000000e+00 : f32
    %24 = vector.broadcast %cst_15 : f32 to vector<128x32xf32>
    %25 = arith.addf %24, %23 : vector<128x32xf32>
    %26 = arith.mulf %20, %25 : vector<128x32xf32>
    %c0_16 = arith.constant 0 : index
    %c0_17 = arith.constant 0 : index
    %27 = vector.load %arg6[%c0_16, %c0_17] : memref<32x16xf32, #tpu.memory_space<vmem>>, vector<32x16xf32>
    %c0_18 = arith.constant 0 : index
    %c0_19 = arith.constant 0 : index
    %28 = vector.load %arg7[%c0_18, %c0_19] : memref<1x16xf32, #tpu.memory_space<vmem>>, vector<1x16xf32>
    %cst_20 = arith.constant dense<0.000000e+00> : vector<128x16xf32>
    %29 = tpu.matmul %26, %27, %cst_20 {dimension_numbers = #tpu.dot_dimension_numbers<[1], [0], [0], [1], [0, 0, 1, 1], [], []>} : vector<128x32xf32>, vector<32x16xf32>, vector<128x16xf32> -> vector<128x16xf32>
    %30 = vector.broadcast %28 : vector<1x16xf32> to vector<128x16xf32>
    %31 = arith.addf %29, %30 : vector<128x16xf32>
    %c0_21 = arith.constant 0 : index
    %c0_22 = arith.constant 0 : index
    %32 = vector.load %arg8[%c0_21, %c0_22] : memref<128x16xf32, #tpu.memory_space<vmem>>, vector<128x16xf32>
    tpu.vector_store %arg8[%c0_21, %c0_22], %31 {strides = array<i32>} : memref<128x16xf32, #tpu.memory_space<vmem>>, vector<128x16xf32>,
    return
  }
  func.func @transform_0(%arg0: i32) -> (i32, i32) {
    %c0_i32 = arith.constant 0 : i32
    %c0_i32_0 = arith.constant 0 : i32
    return %arg0, %c0_i32 : i32, i32
  }
  func.func @transform_1(%arg0: i32) -> (i32, i32) {
    %c0_i32 = arith.constant 0 : i32
    %c0_i32_0 = arith.constant 0 : i32
    %c0_i32_1 = arith.constant 0 : i32
    return %c0_i32, %c0_i32_0 : i32, i32
  }
  func.func @transform_2(%arg0: i32) -> (i32, i32) {
    %c0_i32 = arith.constant 0 : i32
    %c0_i32_0 = arith.constant 0 : i32
    %c0_i32_1 = arith.constant 0 : i32
    return %c0_i32, %c0_i32_0 : i32, i32
  }
  func.func @transform_3(%arg0: i32) -> (i32, i32) {
    %c0_i32 = arith.constant 0 : i32
    %c0_i32_0 = arith.constant 0 : i32
    %c0_i32_1 = arith.constant 0 : i32
    return %c0_i32, %c0_i32_0 : i32, i32
  }
  func.func @transform_4(%arg0: i32) -> (i32, i32) {
    %c0_i32 = arith.constant 0 : i32
    %c0_i32_0 = arith.constant 0 : i32
    %c0_i32_1 = arith.constant 0 : i32
    return %c0_i32, %c0_i32_0 : i32, i32
  }
  func.func @transform_5(%arg0: i32) -> (i32, i32) {
    %c0_i32 = arith.constant 0 : i32
    %c0_i32_0 = arith.constant 0 : i32
    %c0_i32_1 = arith.constant 0 : i32
    return %c0_i32, %c0_i32_0 : i32, i32
  }
  func.func @transform_6(%arg0: i32) -> (i32, i32) {
    %c0_i32 = arith.constant 0 : i32
    %c0_i32_0 = arith.constant 0 : i32
    %c0_i32_1 = arith.constant 0 : i32
    return %c0_i32, %c0_i32_0 : i32, i32
  }
  func.func @transform_7(%arg0: i32) -> (i32, i32) {
    %c0_i32 = arith.constant 0 : i32
    %c0_i32_0 = arith.constant 0 : i32
    return %arg0, %c0_i32 : i32, i32
  }
}

</mosaic_0001>

<bundles_post_ra>
// kernel: tpu_custom_call.1
= control target key start
LH: loop header
LB: loop body
LE: loop exit
PB: predicated region body
PF: predicated region fallthrough
CT: control target
= control target key end

     0   :  { %s2379_s24 = smov 0   ;;  %s3934_s0 = inlined_call_operand.vmem [shape: f32[256,32], index: 0, kind: input, shape index: {}]   ;;  %s3935_s1 = inlined_call_operand.vmem [shape: f32[32,64], index: 1, kind: input, shape index: {}]   ;;  %s3936_s2 = inlined_call_operand.vmem [shape: f32[1,64], index: 2, kind: input, shape index: {}]   ;;  %s3937_s3 = inlined_call_operand.vmem [shape: f32[64,32], index: 3, kind: input, shape index: {}]   ;;  %s3938_s4 = inlined_call_operand.vmem [shape: f32[1,32], index: 4, kind: input, shape index: {}]   ;;  %s3939_s5 = inlined_call_operand.vmem [shape: f32[32,16], index: 5, kind: input, shape index: {}]   ;;  %s3940_s6 = inlined_call_operand.vmem [shape: f32[1,16], index: 6, kind: input, shape index: {}]   ;;  %s3941_s7 = inlined_call_operand.vmem [shape: f32[256,16], index: 7, kind: output, shape index: {}]  }
   0x1 LB: > { %s2148_s25 = sadd.s32 4294967295, %s2337_s24   ;;  %p2152_p0 = scmp.ge.s32.totalorder %s2337_s24, 1  ;;  %s2337_s24 = sphi %s2379_s24, %s17_s24  }
   0x2   : > { %p238_p1 = scmp.lt.s32.totalorder %s2337_s24, 3 }
   0x4   : > { %p239_p2 = pnand %p2152_p0, %p238_p1 }
   0x5   : > { %s2153_s30 = sshll.u32 (!%p239_p2), %s2148_s25, 4 }
   0x6   : > { %242 = sbr.rel (%p239_p2) target bundleno = 694 (0x2b6), region = 48  ;;  %p271_p3 = scmp.lt.s32.totalorder (!%p239_p2), %s2153_s30, 31 }
   0xb   : > { %v301_v0 = vld [vmem:[%s3935_s1 + $0x18] sm:$0xff]  ;;  %v300_v1 = vld [vmem:[%s3935_s1 + $0x10] sm:$0xff]  ;;  %v299_v2 = vld [vmem:[%s3935_s1 + $0x8] sm:$0xff]  ;;  %s4005_s30 = smov (!%p271_p3, %s2153_s30), 31  ;;  %vm306_vm0 = vcmask 261120   ;;  %vm1136_vm9 = vcmask 523264  }
   0xc   : > { %367 = vmatpush.msra.mxu0 %v301_v0  ;;  %2239 = vmatpush.msra.mxu3 %v301_v0  ;;  %v298_v3 = vld [vmem:[%s3935_s1] sm:$0xff]  ;;  %s2154_s12 = sshll.u32 %s4005_s30, 3  ;;  %v1131_v36 = vld [vmem:[%s3937_s3 + $0x38] sm:$0xff]  ;;  %v1130_v40 = vld [vmem:[%s3937_s3 + $0x30] sm:$0xff] }
   0xd   : > { %s2407_s15 = scalar_lea.vmem %s3934_s0, %s2154_s12  ;;  %v2444_v20 = vld [vmem:[%s3936_s2] ss:$0 sm:$0xff]  ;;  %1193 = vmatpush.msra.mxu1 %v1131_v36  ;;  %v1129_v46 = vld [vmem:[%s3937_s3 + $0x28] sm:$0xff]  ;;  %v1127_v55 = vld [vmem:[%s3937_s3 + $0x18] sm:$0xff]  ;;  %s3862_s9 = scalar_lea.vmem %s3941_s7, %s2154_s12 }
   0xe   : > { %368 = vmatpush.msra.mxu0 %v300_v1  ;;  %2240 = vmatpush.msra.mxu3 %v300_v1  ;;  %v282_v4 = vld [vmem:[%s2407_s15] sm:$0xff]  ;;  %v283_v5 = vld [vmem:[%s2407_s15 + $0x8] sm:$0xff]  ;;  %v284_v6 = vld [vmem:[%s2407_s15 + $0x10] sm:$0xff] }
   0xf   : > { %v295_v7 = vld [vmem:[%s2407_s15 + $0x68] sm:$0xff]  ;;  %v285_v8 = vld [vmem:[%s2407_s15 + $0x18] sm:$0xff]  ;;  %v296_v9 = vld [vmem:[%s2407_s15 + $0x70] sm:$0xff]  ;;  %1194 = vmatpush.msra.mxu1 %v1130_v40 }
  0x10   : > { %369 = vmatpush.msra.mxu0 %v299_v2  ;;  %2241 = vmatpush.msra.mxu3 %v299_v2  ;;  %v286_v10 = vld [vmem:[%s2407_s15 + $0x20] sm:$0xff]  ;;  %v297_v11 = vld [vmem:[%s2407_s15 + $0x78] sm:$0xff]  ;;  %v287_v12 = vld [vmem:[%s2407_s15 + $0x28] sm:$0xff] }
  0x11   : > { %v288_v13 = vld [vmem:[%s2407_s15 + $0x30] sm:$0xff]  ;;  %v289_v14 = vld [vmem:[%s2407_s15 + $0x38] sm:$0xff]  ;;  %v290_v15 = vld [vmem:[%s2407_s15 + $0x40] sm:$0xff]  ;;  %1195 = vmatpush.msra.mxu1 %v1129_v46 }
  0x12   : > { %370 = vmatpush.msra.mxu0 %v298_v3  ;;  %2242 = vmatpush.msra.mxu3 %v298_v3  ;;  %v291_v16 = vld [vmem:[%s2407_s15 + $0x48] sm:$0xff]  ;;  %v292_v17 = vld [vmem:[%s2407_s15 + $0x50] sm:$0xff]  ;;  %v293_v18 = vld [vmem:[%s2407_s15 + $0x58] sm:$0xff] }
  0x13   : > { %2157 = vmatmul.msk.f32.vlgmr.msra.gmra.mxu0 %vm306_vm0, %v282_v4  ;;  %2170 = vmatmul.msk.f32.vlgmr.msra.gmra.mxu3 %vm306_vm0, %v295_v7  ;;  %v294_v19 = vld [vmem:[%s2407_s15 + $0x60] sm:$0xff]  ;;  %v1126_v0 = vld [vmem:[%s3937_s3 + $0x10] sm:$0xff]  ;;  %v1125_v4 = vld [vmem:[%s3937_s3 + $0x8] sm:$0xff] }
  0x14   : > { %2243 = vmatpush.msrb.mxu3 %v1131_v36  ;;  %v1128_v49 = vld [vmem:[%s3937_s3 + $0x20] sm:$0xff] }
  0x15   : > { %1196 = vmatpush.msra.mxu1 %v1128_v49 }
  0x16   : > { %2244 = vmatpush.msrb.mxu3 %v1130_v40 }
  0x17   : > { %1197 = vmatpush.msra.mxu1 %v1127_v55 }
  0x18   : > { %2245 = vmatpush.msrb.mxu3 %v1129_v46 }
  0x19   : > { %1198 = vmatpush.msra.mxu1 %v1126_v0 }
  0x1a   : > { %2246 = vmatpush.msrb.mxu3 %v1128_v49 }
  0x1b   : > { %2158 = vmatmul.msk.f32.gmra.mxu0 %vm306_vm0, %v283_v5  ;;  %2171 = vmatmul.msk.f32.gmra.mxu3 %vm306_vm0, %v296_v9 }
  0x1c   : > { %2247 = vmatpush.msrb.mxu3 %v1127_v55  ;;  %1199 = vmatpush.msra.mxu1 %v1125_v4 }
  0x1e   : > { %2248 = vmatpush.msrb.mxu3 %v1126_v0 }
  0x20   : > { %2249 = vmatpush.msrb.mxu3 %v1125_v4 }
  0x23   : > { %2159 = vmatmul.msk.f32.gmra.mxu0 %vm306_vm0, %v284_v6  ;;  %2172 = vmatmul.msk.f32.gmra.mxu3 %vm306_vm0, %v297_v11 }
  0x2b   : > { %2160 = vmatmul.msk.f32.gmra.mxu0 %vm306_vm0, %v285_v8 }
  0x33   : > { %2161 = vmatmul.msk.f32.gmra.mxu0 %vm306_vm0, %v286_v10  ;;  %v1124_v10 = vld [vmem:[%s3937_s3] sm:$0xff] }
  0x34   : > { %1200 = vmatpush.msra.mxu1 %v1124_v10  ;;  %2250 = vmatpush.msrb.mxu3 %v1124_v10 }
  0x3b   : > { %2162 = vmatmul.msk.f32.gmra.mxu0 %vm306_vm0, %v287_v12 }
  0x43   : > { %2163 = vmatmul.msk.f32.gmra.mxu0 %vm306_vm0, %v288_v13 }
  0x4b   : > { %2164 = vmatmul.msk.f32.gmra.mxu0 %vm306_vm0, %v289_v14 }
  0x53   : > { %2165 = vmatmul.msk.f32.gmra.mxu0 %vm306_vm0, %v290_v15 }
  0x5b   : > { %2166 = vmatmul.msk.f32.gmra.mxu0 %vm306_vm0, %v291_v16 }
  0x63   : > { %2167 = vmatmul.msk.f32.gmra.mxu0 %vm306_vm0, %v292_v17 }
  0x6b   : > { %2168 = vmatmul.msk.f32.gmra.mxu0 %vm306_vm0, %v293_v18 }
  0x73   : > { %2169 = vmatmul.msk.f32.gmra.mxu0 %vm306_vm0, %v294_v19 }
  0x90   : > { %v372_v21 = vpop.f32.mrf.mxu0 }
  0x91   : > { %v2447_v22 = vadd.f32 %v2444_v20, %v372_v21 }
  0x93   : > { %v2450_v23 = vmul.f32 0.70710677, %v2447_v22 }
  0x95   : > { %v452_v24 = vmul.f32 %v2450_v23, %v2450_v23 }
  0x97   : > { %v2454_v25 = vmin.f32 %v452_v24, 16.0 }
  0x98   : > { %v375_v26 = vpop.f32.mrf.mxu0 }
  0x99   : > { %v465_v27 = vmul.f32 3.8918573e-05, %v2454_v25  ;;  %v2458_v28 = vadd.f32 %v2444_v20, %v375_v26  ;;  %v454_v42 = vmul.f32 2.1237322e-06, %v2454_v25 }
  0x9b   : > { %v466_v29 = vadd.f32 0.001143296, %v465_v27  ;;  %v2461_v30 = vmul.f32 0.70710677, %v2458_v28  ;;  %v455_v51 = vadd.f32 0.00028619796, %v454_v42 }
  0x9d   : > { %v467_v31 = vmul.f32 %v466_v29, %v2454_v25  ;;  %v492_v32 = vmul.f32 %v2461_v30, %v2461_v30  ;;  %v456_v60 = vmul.f32 %v455_v51, %v2454_v25 }
  0x9f   : > { %v468_v33 = vadd.f32 0.014752088, %v467_v31  ;;  %v2466_v34 = vmin.f32 %v492_v32, 16.0  ;;  %v457_v5 = vadd.f32 0.0036580483, %v456_v60 }
  0xa0   : > { %v378_v35 = vpop.f32.mrf.mxu0 }
  0xa1   : > { %v469_v37 = vmul.f32 %v468_v33, %v2454_v25  ;;  %v2473_v38 = vadd.f32 %v2444_v20, %v378_v35  ;;  %v505_v39 = vmul.f32 3.8918573e-05, %v2466_v34  ;;  %v494_v1 = vmul.f32 2.1237322e-06, %v2466_v34 }
  0xa2   : > { %v458_v14 = vmul.f32 %v457_v5, %v2454_v25 }
  0xa3   : > { %v470_v41 = vadd.f32 0.112945676, %v469_v37  ;;  %v506_v43 = vadd.f32 0.001143296, %v505_v39  ;;  %v2481_v44 = vmul.f32 0.70710677, %v2473_v38 }
  0xa4   : > { %v495_v11 = vadd.f32 0.00028619796, %v494_v1  ;;  %v459_v24 = vadd.f32 0.05243302, %v458_v14 }
  0xa5   : > { %v471_v45 = vmul.f32 %v470_v41, %v2454_v25  ;;  %v507_v47 = vmul.f32 %v506_v43, %v2466_v34  ;;  %v532_v48 = vmul.f32 %v2481_v44, %v2481_v44 }
  0xa6   : > { %v496_v18 = vmul.f32 %v495_v11, %v2466_v34  ;;  %v460_v35 = vmul.f32 %v459_v24, %v2454_v25 }
  0xa7   : > { %v472_v50 = vadd.f32 0.4994258, %v471_v45  ;;  %v508_v52 = vadd.f32 0.014752088, %v507_v47  ;;  %v2493_v53 = vmin.f32 %v532_v48, 16.0 }
  0xa8   : > { %v381_v54 = vpop.f32.mrf.mxu0  ;;  %v497_v31 = vadd.f32 0.0036580483, %v496_v18  ;;  %v461_v46 = vadd.f32 0.18741608, %v460_v35 }
  0xa9   : > { %v473_v56 = vmul.f32 %v472_v50, %v2454_v25  ;;  %v2500_v57 = vadd.f32 %v2444_v20, %v381_v54  ;;  %v509_v58 = vmul.f32 %v508_v52, %v2466_v34  ;;  %v545_v59 = vmul.f32 3.8918573e-05, %v2493_v53 }
  0xaa   : > { %v498_v42 = vmul.f32 %v497_v31, %v2466_v34  ;;  %v534_v43 = vmul.f32 2.1237322e-06, %v2493_v53 }
  0xab   : > { %v2505_v61 = vadd.f32 1.0, %v473_v56  ;;  %v510_v62 = vadd.f32 0.112945676, %v509_v58  ;;  %v2508_v63 = vmul.f32 0.70710677, %v2500_v57  ;;  %v462_v56 = vmul.f32 %v461_v46, %v2454_v25 }
  0xac   : > { %v546_v3 = vadd.f32 0.001143296, %v545_v59  ;;  %v499_v52 = vadd.f32 0.05243302, %v498_v42  ;;  %v535_v55 = vadd.f32 0.00028619796, %v534_v43 }
  0xad   : > { %v511_v2 = vmul.f32 %v510_v62, %v2466_v34  ;;  %2266 = vrcp.f32 %v2505_v61  ;;  %v572_v9 = vmul.f32 %v2508_v63, %v2508_v63  ;;  %vm480_vm2 = vweird.f32 %v2505_v61 }
  0xae   : > { %v547_v8 = vmul.f32 %v546_v3, %v2493_v53  ;;  %v500_v3 = vmul.f32 %v499_v52, %v2466_v34  ;;  %v484_v4 = vand.u32 2147483647, %v2505_v61  ;;  %v536_v5 = vmul.f32 %v535_v55, %v2493_v53 }
  0xaf   : > { %v512_v6 = vadd.f32 0.4994258, %v511_v2  ;;  %v2528_v16 = vmin.f32 %v572_v9, 16.0  ;;  %v486_v2 = vand.u32 2147483648, %v2505_v61 }
  0xb0   : > { %v384_v7 = vpop.f32.mrf.mxu0  ;;  %v548_v13 = vadd.f32 0.014752088, %v547_v8  ;;  %v501_v14 = vadd.f32 0.18741608, %v500_v3  ;;  %vm485_vm4 = vcmp.eq.f32.partialorder %v484_v4, 8.507059e+37 }
  0xb1   : > { %v513_v12 = vmul.f32 %v512_v6, %v2466_v34  ;;  %v2534_v21 = vadd.f32 %v2444_v20, %v384_v7  ;;  %v585_v29 = vmul.f32 3.8918573e-05, %v2528_v16  ;;  %v463_v6 = vadd.f32 1.1283791, %v462_v56 }
  0xb2   : > { %v549_v15 = vmul.f32 %v548_v13, %v2493_v53  ;;  %v487_v13 = vor.u32 1.1754944e-38, %v486_v2  ;;  %v574_v24 = vmul.f32 2.1237322e-06, %v2528_v16 }
  0xb3   : > { %v2267_v17 = vpop.eup %2266  ;;  %v2531_v19 = vadd.f32 1.0, %v513_v12  ;;  %v2540_v32 = vmul.f32 0.70710677, %v2534_v21  ;;  %v586_v40 = vadd.f32 0.001143296, %v585_v29 }
  0xb4   : > { %v476_v26 = vmul.f32 %v2267_v17, %v2505_v61  ;;  %v550_v27 = vadd.f32 0.112945676, %v549_v15  ;;  %vm481_vm1 = vweird.f32 %v2267_v17  ;;  %v537_v15 = vadd.f32 0.0036580483, %v536_v5 }
  0xb5   : > { %2268 = vrcp.f32 %v2531_v19  ;;  %v612_v36 = vmul.f32 %v2540_v32, %v2540_v32  ;;  %v587_v50 = vmul.f32 %v586_v40, %v2528_v16  ;;  %vm482_vm3 = vmor %vm480_vm2, %vm481_vm1  ;;  %v526_v40 = vand.u32 2147483648, %v2531_v19 }
  0xb6   : > { %v477_v37 = vsub.f32 1.0, %v476_v26  ;;  %v551_v39 = vmul.f32 %v550_v27, %v2493_v53  ;;  %vm520_vm6 = vweird.f32 %v2531_v19 }
  0xb7   : > { %v2553_v47 = vmin.f32 %v612_v36, 16.0  ;;  %v588_v62 = vadd.f32 0.014752088, %v587_v50 }
  0xb8   : > { %v387_v33 = vpop.f32.mrf.mxu0  ;;  %v478_v48 = vmul.f32 %v2267_v17, %v477_v37  ;;  %v552_v49 = vadd.f32 0.4994258, %v551_v39  ;;  %v538_v39 = vmul.f32 %v537_v15, %v2493_v53 }
  0xb9   : > { %v2547_v41 = vadd.f32 %v2444_v20, %v387_v33  ;;  %v625_v58 = vmul.f32 3.8918573e-05, %v2553_v47  ;;  %v589_v11 = vmul.f32 %v588_v62, %v2528_v16  ;;  %v502_v33 = vmul.f32 %v501_v14, %v2466_v34 }
  0xba   : > { %v479_v59 = vadd.f32 %v2267_v17, %v478_v48  ;;  %v553_v60 = vmul.f32 %v552_v49, %v2493_v53  ;;  %v524_v34 = vand.u32 2147483647, %v2531_v19  ;;  %v614_v49 = vmul.f32 2.1237322e-06, %v2553_v47 }
  0xbb   : > { %v2551_v45 = vpop.eup %2268  ;;  %v2557_v51 = vmul.f32 0.70710677, %v2547_v41  ;;  %v626_v7 = vadd.f32 0.001143296, %v625_v58  ;;  %v590_v29 = vadd.f32 0.112945676, %v589_v11 }
  0xbc   : > { %v516_v54 = vmul.f32 %v2551_v45, %v2531_v19  ;;  %v483_v9 = vsel %vm482_vm3, %v2267_v17, %v479_v59  ;;  %v2574_v10 = vadd.f32 1.0, %v553_v60  ;;  %v464_v17 = vmul.f32 %v463_v6, %v2450_v23 }
  0xbd   : > { %v652_v0 = vmul.f32 %v2557_v51, %v2557_v51  ;;  %v488_v18 = vsel %vm485_vm4, %v487_v13, %v483_v9  ;;  %v627_v26 = vmul.f32 %v626_v7, %v2553_v47  ;;  %vm521_vm5 = vweird.f32 %v2551_v45 }
  0xbe   : > { %v517_v25 = vsub.f32 1.0, %v516_v54  ;;  %2270 = vrcp.f32 %v2574_v10  ;;  %v489_v36 = vmul.f32 %v488_v18, %v464_v17  ;;  %v575_v23 = vadd.f32 0.00028619796, %v574_v24  ;;  %vm522_vm7 = vmor %vm520_vm6, %vm521_vm5 }
  0xbf   : > { %v2577_v12 = vmin.f32 %v652_v0, 16.0  ;;  %v628_v42 = vadd.f32 0.014752088, %v627_v26  ;;  %v591_v46 = vmul.f32 %v590_v29, %v2528_v16  ;;  %v503_v52 = vadd.f32 1.1283791, %v502_v33 }
  0xc0   : > { %v390_v1 = vpop.f32.mrf.mxu0  ;;  %v518_v61 = vmul.f32 %v2551_v45, %v517_v25  ;;  %v539_v55 = vadd.f32 0.05243302, %v538_v39  ;;  %v2173_v56 = vclamps-f32 %v489_v36, 1.0  ;;  %v527_v58 = vor.u32 1.1754944e-38, %v526_v40 }
  0xc1   : > { %v2572_v8 = vadd.f32 %v2444_v20, %v390_v1  ;;  %v665_v31 = vmul.f32 3.8918573e-05, %v2577_v12  ;;  %v576_v59 = vmul.f32 %v575_v23, %v2528_v16  ;;  %v629_v60 = vmul.f32 %v628_v42, %v2553_v47 }
  0xc2   : > { %v519_v37 = vadd.f32 %v2551_v45, %v518_v61  ;;  %vm525_vm8 = vcmp.eq.f32.partialorder %v524_v34, 8.507059e+37  ;;  %v592_v62 = vadd.f32 0.4994258, %v591_v46  ;;  %v615_v3 = vadd.f32 0.00028619796, %v614_v49 }
  0xc3   : > { %v2583_v27 = vmul.f32 0.70710677, %v2572_v8  ;;  %v666_v48 = vadd.f32 0.001143296, %v665_v31  ;;  %v540_v4 = vmul.f32 %v539_v55, %v2493_v53  ;;  %v1092_v25 = vadd.f32 1.0, %v2173_v56 }
  0xc4   : > { %v2601_v50 = vpop.eup %2270  ;;  %v523_v54 = vsel %vm522_vm7, %v2551_v45, %v519_v37  ;;  %v504_v45 = vmul.f32 %v503_v52, %v2461_v30  ;;  %v577_v5 = vadd.f32 0.0036580483, %v576_v59  ;;  %v630_v6 = vadd.f32 0.112945676, %v629_v60 }
  0xc5   : > { %v692_v35 = vmul.f32 %v2583_v27, %v2583_v27  ;;  %v667_v0 = vmul.f32 %v666_v48, %v2577_v12  ;;  %v528_v1 = vsel %vm525_vm8, %v527_v58, %v523_v54  ;;  %v556_v2 = vmul.f32 %v2601_v50, %v2574_v10 }
  0xc6   : > { %v420_v11 = vmul.f32 0.5, %v2447_v22  ;;  %v529_v13 = vmul.f32 %v528_v1, %v504_v45  ;;  %v593_v14 = vmul.f32 %v592_v62, %v2528_v16  ;;  %v616_v18 = vmul.f32 %v615_v3, %v2553_v47 }
  0xc7   : > { %v2595_v43 = vmin.f32 %v692_v35, 16.0  ;;  %v668_v61 = vadd.f32 0.014752088, %v667_v0  ;;  %v557_v15 = vsub.f32 1.0, %v556_v2  ;;  %v541_v24 = vadd.f32 0.18741608, %v540_v4 }
  0xc8   : > { %v393_v9 = vpop.f32.mrf.mxu0  ;;  %v1108_v26 = vmul.f32 %v1092_v25, %v420_v11  ;;  %v578_v17 = vmul.f32 %v577_v5, %v2528_v16  ;;  %v631_v29 = vmul.f32 %v630_v6, %v2553_v47  ;;  %v2621_v22 = vadd.f32 1.0, %v593_v14  ;;  %v411_v25 = vpop.f32.mrf.mxu3 }
  0xc9   : > { %v705_v19 = vmul.f32 3.8918573e-05, %v2595_v43  ;;  %v2616_v30 = vadd.f32 %v2444_v20, %v393_v9  ;;  %v669_v33 = vmul.f32 %v668_v61, %v2577_v12  ;;  %v2174_v36 = vclamps-f32 %v529_v13, 1.0 }
  0xca   : > { %2189 = vmatmul.msk.f32.vlgmr.msra.gmra.mxu1 %vm1136_vm9, %v1108_v26  ;;  %v558_v37 = vmul.f32 %v2601_v50, %v557_v15  ;;  %v617_v39 = vadd.f32 0.0036580483, %v616_v18  ;;  %v654_v40 = vmul.f32 2.1237322e-06, %v2577_v12  ;;  %v421_v23 = vmul.f32 0.5, %v2458_v28 }
  0xcb   : > { %v706_v7 = vadd.f32 0.001143296, %v705_v19  ;;  %v2626_v35 = vmul.f32 0.70710677, %v2616_v30  ;;  %v542_v42 = vmul.f32 %v541_v24, %v2493_v53  ;;  %v579_v34 = vadd.f32 0.05243302, %v578_v17 }
  0xcc   : > { %v632_v46 = vadd.f32 0.4994258, %v631_v29  ;;  %vm561_vm10 = vweird.f32 %v2601_v50  ;;  %2272 = vrcp.f32 %v2621_v22  ;;  %v670_v52 = vadd.f32 0.112945676, %v669_v33 }
  0xcd   : > { %v707_v31 = vmul.f32 %v706_v7, %v2595_v43  ;;  %v732_v49 = vmul.f32 %v2626_v35, %v2626_v35  ;;  %v1093_v54 = vadd.f32 1.0, %v2174_v36  ;;  %v559_v55 = vadd.f32 %v2601_v50, %v558_v37 }
  0xce   : > { %v618_v56 = vmul.f32 %v617_v39, %v2553_v47  ;;  %v655_v58 = vadd.f32 0.00028619796, %v654_v40  ;;  %v564_v53 = vand.u32 2147483647, %v2574_v10  ;;  %v566_v59 = vand.u32 2147483648, %v2574_v10 }
  0xcf   : > { %v708_v48 = vadd.f32 0.014752088, %v707_v31  ;;  %v2638_v28 = vmin.f32 %v732_v49, 16.0  ;;  %v694_v60 = vmul.f32 2.1237322e-06, %v2595_v43  ;;  %v1109_v19 = vmul.f32 %v1093_v54, %v421_v23 }
  0xd0   : > { %vm560_vm11 = vweird.f32 %v2574_v10  ;;  %v633_v62 = vmul.f32 %v632_v46, %v2553_v47  ;;  %v543_v2 = vadd.f32 1.1283791, %v542_v42  ;;  %v580_v45 = vmul.f32 %v579_v34, %v2528_v16  ;;  %v396_v9 = vpop.f32.mrf.mxu0 }
  0xd1   : > { %v709_v0 = vmul.f32 %v708_v48, %v2595_v43  ;;  %v745_v1 = vmul.f32 3.8918573e-05, %v2638_v28  ;;  %vm2649_vm12 = vmor %vm560_vm11, %vm561_vm10  ;;  %v671_v4 = vmul.f32 %v670_v52, %v2577_v12  ;;  %v619_v5 = vadd.f32 0.05243302, %v618_v56 }
  0xd2   : > { %2190 = vmatmul.msk.f32.gmra.mxu1 %vm1136_vm9, %v1109_v19  ;;  %v563_v10 = vsel %vm2649_vm12, %v2601_v50, %v559_v55  ;;  %v656_v6 = vmul.f32 %v655_v58, %v2577_v12  ;;  %v2660_v11 = vpop.eup %2272  ;;  %vm565_vm13 = vcmp.eq.f32.partialorder %v564_v53, 8.507059e+37  ;;  %v567_v13 = vor.u32 1.1754944e-38, %v566_v59 }
  0xd3   : > { %v746_v7 = vadd.f32 0.001143296, %v745_v1  ;;  %v695_v14 = vadd.f32 0.00028619796, %v694_v60  ;;  %v2662_v61 = vadd.f32 1.0, %v633_v62  ;;  %v2666_v24 = vadd.f32 %v2444_v20, %v411_v25 }
  0xd4   : > { %v710_v15 = vadd.f32 0.112945676, %v709_v0  ;;  %v568_v26 = vsel %vm565_vm13, %v567_v13, %v563_v10  ;;  %v581_v50 = vadd.f32 0.18741608, %v580_v45  ;;  %v672_v17 = vadd.f32 0.4994258, %v671_v4 }
  0xd5   : > { %v747_v18 = vmul.f32 %v746_v7, %v2638_v28  ;;  %v2669_v29 = vadd.f32 %v2444_v20, %v396_v9  ;;  %v544_v31 = vmul.f32 %v543_v2, %v2481_v44  ;;  %v620_v33 = vmul.f32 %v619_v5, %v2553_v47 }
  0xd6   : > { %v657_v36 = vadd.f32 0.0036580483, %v656_v6  ;;  %v596_v37 = vmul.f32 %v2660_v11, %v2621_v22  ;;  %v696_v39 = vmul.f32 %v695_v14, %v2595_v43  ;;  %2274 = vrcp.f32 %v2662_v61 }
  0xd7   : > { %v748_v40 = vadd.f32 0.014752088, %v747_v18  ;;  %v569_v23 = vmul.f32 %v568_v26, %v544_v31  ;;  %v711_v42 = vmul.f32 %v710_v15, %v2595_v43  ;;  %v2679_v34 = vmul.f32 0.70710677, %v2666_v24 }
  0xd8   : > { %v582_v46 = vmul.f32 %v581_v50, %v2528_v16  ;;  %v673_v44 = vmul.f32 %v672_v17, %v2577_v12  ;;  %v2684_v48 = vmul.f32 0.70710677, %v2669_v29  ;;  %v621_v49 = vadd.f32 0.18741608, %v620_v33 }
  0xd9   : > { %v658_v52 = vmul.f32 %v657_v36, %v2577_v12  ;;  %v749_v54 = vmul.f32 %v748_v40, %v2638_v28  ;;  %v422_v55 = vmul.f32 0.5, %v2473_v38  ;;  %v597_v56 = vsub.f32 1.0, %v596_v37 }
  0xda   : > { %v697_v58 = vadd.f32 0.0036580483, %v696_v39  ;;  %v772_v53 = vmul.f32 %v2684_v48, %v2684_v48  ;;  %v2692_v59 = vmul.f32 0.5, %v2500_v57  ;;  %v712_v16 = vadd.f32 0.4994258, %v711_v42 }
  0xdb   : > { %v972_v60 = vmul.f32 %v2679_v34, %v2679_v34  ;;  %v2175_v19 = vclamps-f32 %v569_v23, 1.0  ;;  %v583_v62 = vadd.f32 1.1283791, %v582_v46  ;;  %v2697_v0 = vmul.f32 0.5, %v2534_v21 }
  0xdc   : > { %v2700_v1 = vmul.f32 0.5, %v2547_v41  ;;  %v2702_v38 = vadd.f32 1.0, %v673_v44  ;;  %v2704_v2 = vpop.eup %2274  ;;  %v622_v3 = vmul.f32 %v621_v49, %v2553_v47  ;;  %v659_v57 = vadd.f32 0.05243302, %v658_v52 }
  0xdd   : > { %v750_v45 = vadd.f32 0.112945676, %v749_v54  ;;  %v2707_v4 = vmin.f32 %v772_v53, 16.0  ;;  %v598_v25 = vmul.f32 %v2660_v11, %v597_v56  ;;  %v604_v10 = vand.u32 2147483647, %v2621_v22  ;;  %v414_v53 = vpop.f32.mrf.mxu3 }
  0xde   : > { %v698_v21 = vmul.f32 %v697_v58, %v2595_v43  ;;  %v1094_v5 = vadd.f32 1.0, %v2175_v19  ;;  %v713_v41 = vmul.f32 %v712_v16, %v2595_v43  ;;  %v734_v6 = vmul.f32 2.1237322e-06, %v2638_v28  ;;  %v399_v16 = vpop.f32.mrf.mxu0 }
  0xdf   : > { %v2714_v7 = vmin.f32 %v972_v60, 16.0  ;;  %v785_v9 = vmul.f32 3.8918573e-05, %v2707_v4  ;;  %vm601_vm14 = vweird.f32 %v2660_v11  ;;  %v606_v47 = vand.u32 2147483648, %v2621_v22 }
  0xe0   : > { %v636_v13 = vmul.f32 %v2704_v2, %v2662_v61  ;;  %2276 = vrcp.f32 %v2702_v38  ;;  %v623_v14 = vadd.f32 1.1283791, %v622_v3  ;;  %v660_v15 = vmul.f32 %v659_v57, %v2577_v12 }
  0xe1   : > { %v751_v18 = vmul.f32 %v750_v45, %v2638_v28  ;;  %v1110_v26 = vmul.f32 %v1094_v5, %v422_v55  ;;  %v599_v50 = vadd.f32 %v2660_v11, %v598_v25  ;;  %v699_v17 = vadd.f32 0.05243302, %v698_v21 }
  0xe2   : > { %v974_v31 = vmul.f32 2.1237322e-06, %v2714_v7  ;;  %v786_v33 = vadd.f32 0.001143296, %v785_v9  ;;  %v2727_v36 = vmul.f32 0.5, %v2572_v8  ;;  %v2729_v37 = vadd.f32 1.0, %v713_v41 }
  0xe3   : > { %v735_v39 = vadd.f32 0.00028619796, %v734_v6  ;;  %v985_v40 = vmul.f32 3.8918573e-05, %v2714_v7  ;;  %2191 = vmatmul.msk.f32.gmra.mxu1 %vm1136_vm9, %v1110_v26  ;;  %v584_v23 = vmul.f32 %v583_v62, %v2508_v63  ;;  %vm600_vm15 = vweird.f32 %v2621_v22 }
  0xe4   : > { %vm2735_vm1 = vcmp.eq.f32.partialorder %v604_v10, 8.507059e+37  ;;  %v637_v46 = vsub.f32 1.0, %v636_v13  ;;  %vm2741_vm2 = vmor %vm600_vm15, %vm601_vm14  ;;  %v607_v44 = vor.u32 1.1754944e-38, %v606_v47  ;;  %v2746_v49 = vmul.f32 %v623_v14, %v2540_v32 }
  0xe5   : > { %v644_v52 = vand.u32 2147483647, %v2662_v61  ;;  %v752_v63 = vadd.f32 0.4994258, %v751_v18  ;;  %v603_v22 = vsel %vm2741_vm2, %v2660_v11, %v599_v50  ;;  %vm640_vm3 = vweird.f32 %v2662_v61 }
  0xe6   : > { %v2749_v54 = vpop.eup %2276  ;;  %v661_v55 = vadd.f32 0.18741608, %v660_v15  ;;  %v700_v56 = vmul.f32 %v699_v17, %v2595_v43  ;;  %v787_v58 = vmul.f32 %v786_v33, %v2707_v4  ;;  %2278 = vrcp.f32 %v2729_v37 }
  0xe7   : > { %v736_v32 = vmul.f32 %v735_v39, %v2638_v28  ;;  %v975_v60 = vadd.f32 0.00028619796, %v974_v31  ;;  %v986_v19 = vadd.f32 0.001143296, %v985_v40  ;;  %v638_v62 = vmul.f32 %v2704_v2, %v637_v46 }
  0xe8   : > { %v646_v3 = vand.u32 2147483648, %v2662_v61  ;;  %v774_v11 = vmul.f32 2.1237322e-06, %v2707_v4  ;;  %v788_v57 = vadd.f32 0.014752088, %v787_v58  ;;  %v676_v45 = vmul.f32 %v2749_v54, %v2702_v38 }
  0xe9   : > { %v753_v25 = vmul.f32 %v752_v63, %v2638_v28  ;;  %v2766_v10 = vadd.f32 %v2444_v20, %v414_v53  ;;  %v2769_v21 = vadd.f32 %v2444_v20, %v399_v16  ;;  %v608_v5 = vsel %vm2735_vm1, %v607_v44, %v603_v22 }
  0xea   : > { %v662_v41 = vmul.f32 %v661_v55, %v2577_v12  ;;  %v701_v6 = vadd.f32 0.18741608, %v700_v56  ;;  %v789_v9 = vmul.f32 %v788_v57, %v2707_v4  ;;  %vm2775_vm4 = vcmp.eq.f32.partialorder %v644_v52, 8.507059e+37 }
  0xeb   : > { %v737_v13 = vadd.f32 0.0036580483, %v736_v32  ;;  %v976_v14 = vmul.f32 %v975_v60, %v2714_v7  ;;  %v987_v15 = vmul.f32 %v986_v19, %v2714_v7  ;;  %v639_v18 = vadd.f32 %v2704_v2, %v638_v62 }
  0xec   : > { %vm641_vm5 = vweird.f32 %v2704_v2  ;;  %v775_v26 = vadd.f32 0.00028619796, %v774_v11  ;;  %v2784_v50 = vmul.f32 0.70710677, %v2769_v21  ;;  %v2786_v12 = vpop.eup %2278  ;;  %v647_v17 = vor.u32 1.1754944e-38, %v646_v3 }
  0xed   : > { %v677_v31 = vsub.f32 1.0, %v676_v45  ;;  %v2788_v33 = vadd.f32 1.0, %v753_v25  ;;  %v2791_v39 = vmul.f32 0.70710677, %v2766_v10  ;;  %v2793_v40 = vmul.f32 %v608_v5, %v584_v23  ;;  %vm2798_vm6 = vmor %vm640_vm3, %vm641_vm5 }
  0xee   : > { %v663_v42 = vadd.f32 1.1283791, %v662_v41  ;;  %v702_v46 = vmul.f32 %v701_v6, %v2595_v43  ;;  %v790_v8 = vadd.f32 0.112945676, %v789_v9  ;;  %v2803_v52 = vmul.f32 0.5, %v2616_v30 }
  0xef   : > { %v738_v63 = vmul.f32 %v737_v13, %v2638_v28  ;;  %v977_v22 = vadd.f32 0.0036580483, %v976_v14  ;;  %v988_v55 = vadd.f32 0.014752088, %v987_v15  ;;  %v643_v23 = vsel %vm2798_vm6, %v2704_v2, %v639_v18 }
  0xf0   : > { %v716_v43 = vmul.f32 %v2786_v12, %v2729_v37  ;;  %v776_v61 = vmul.f32 %v775_v26, %v2707_v4  ;;  %v812_v56 = vmul.f32 %v2784_v50, %v2784_v50  ;;  %v678_v58 = vmul.f32 %v2749_v54, %v677_v31 }
  0xf1   : > { %v684_v30 = vand.u32 2147483647, %v2702_v38  ;;  %2280 = vrcp.f32 %v2788_v33  ;;  %v1012_v53 = vmul.f32 %v2791_v39, %v2791_v39  ;;  %v664_v16 = vmul.f32 %v663_v42, %v2557_v51 }
  0xf2   : > { %v686_v2 = vand.u32 2147483648, %v2702_v38  ;;  %v703_v32 = vadd.f32 1.1283791, %v702_v46  ;;  %v791_v60 = vmul.f32 %v790_v8, %v2707_v4  ;;  %v648_v19 = vsel %vm2775_vm4, %v647_v17, %v643_v23  ;;  %v402_v23 = vpop.f32.mrf.mxu0 }
  0xf3   : > { %v739_v62 = vadd.f32 0.05243302, %v738_v63  ;;  %v978_v3 = vmul.f32 %v977_v22, %v2714_v7  ;;  %v989_v11 = vmul.f32 %v988_v55, %v2714_v7  ;;  %vm680_vm7 = vweird.f32 %v2702_v38 }
  0xf4   : > { %v717_v57 = vsub.f32 1.0, %v716_v43  ;;  %v777_v45 = vadd.f32 0.0036580483, %v776_v61  ;;  %v2827_v25 = vmin.f32 %v812_v56, 16.0  ;;  %v679_v51 = vadd.f32 %v2749_v54, %v678_v58  ;;  %v417_v58 = vpop.f32.mrf.mxu3 }
  0xf5   : > { %vm681_vm8 = vweird.f32 %v2749_v54  ;;  %vm2831_vm10 = vcmp.eq.f32.partialorder %v684_v30, 8.507059e+37  ;;  %v2835_v41 = vmin.f32 %v1012_v53, 16.0  ;;  %v2838_v6 = vmul.f32 %v648_v19, %v2746_v49 }
  0xf6   : > { %v687_v9 = vor.u32 1.1754944e-38, %v686_v2  ;;  %v2841_v47 = vmul.f32 %v703_v32, %v2583_v27  ;;  %v792_v13 = vadd.f32 0.4994258, %v791_v60  ;;  %v724_v15 = vand.u32 2147483647, %v2729_v37  ;;  %vm2849_vm11 = vmor %vm680_vm7, %vm681_vm8 }
  0xf7   : > { %v2843_v14 = vpop.eup %2280  ;;  %v740_v18 = vmul.f32 %v739_v62, %v2638_v28  ;;  %v979_v26 = vadd.f32 0.05243302, %v978_v3  ;;  %v990_v17 = vadd.f32 0.112945676, %v989_v11  ;;  %v718_v49 = vmul.f32 %v2786_v12, %v717_v57 }
  0xf8   : > { %v2855_v27 = vmul.f32 0.5, %v2669_v29  ;;  %v778_v42 = vmul.f32 %v777_v45, %v2707_v4  ;;  %v825_v46 = vmul.f32 3.8918573e-05, %v2827_v25  ;;  %v683_v8 = vsel %vm2849_vm11, %v2749_v54, %v679_v51 }
  0xf9   : > { %vm720_vm12 = vweird.f32 %v2729_v37  ;;  %v726_v38 = vand.u32 2147483648, %v2729_v37  ;;  %v1025_v44 = vmul.f32 3.8918573e-05, %v2835_v41  ;;  %v756_v63 = vmul.f32 %v2843_v14, %v2788_v33 }
  0xfa   : > { %v793_v29 = vmul.f32 %v792_v13, %v2707_v4  ;;  %v826_v22 = vadd.f32 0.001143296, %v825_v46  ;;  %v2176_v55 = vclamps-f32 %v2793_v40, 1.0  ;;  %vm721_vm13 = vweird.f32 %v2786_v12 }
  0xfb   : > { %vm2870_vm14 = vcmp.eq.f32.partialorder %v724_v15, 8.507059e+37  ;;  %v741_v54 = vadd.f32 0.18741608, %v740_v18  ;;  %v980_v61 = vmul.f32 %v979_v26, %v2714_v7  ;;  %v991_v56 = vmul.f32 %v990_v17, %v2714_v7  ;;  %vm2893_vm15 = vmor %vm720_vm12, %vm721_vm13 }
  0xfc   : > { %v719_v30 = vadd.f32 %v2786_v12, %v718_v49  ;;  %v779_v53 = vadd.f32 0.05243302, %v778_v42  ;;  %v827_v2 = vmul.f32 %v826_v22, %v2827_v25  ;;  %v1095_v32 = vadd.f32 1.0, %v2176_v55  ;;  %v405_v22 = vpop.f32.mrf.mxu0 }
  0xfd   : > { %v688_v40 = vsel %vm2831_vm10, %v687_v9, %v683_v8  ;;  %v727_v60 = vor.u32 1.1754944e-38, %v726_v38  ;;  %v814_v19 = vmul.f32 2.1237322e-06, %v2827_v25  ;;  %v2882_v62 = vadd.f32 %v2444_v20, %v402_v23 }
  0xfe   : > { %v757_v3 = vsub.f32 1.0, %v756_v63  ;;  %v2884_v11 = vadd.f32 1.0, %v793_v29  ;;  %v1026_v57 = vadd.f32 0.001143296, %v1025_v44  ;;  %v2887_v45 = vadd.f32 %v2444_v20, %v417_v58 }
  0xff   : > { %v742_v5 = vmul.f32 %v741_v54, %v2638_v28  ;;  %v992_v9 = vadd.f32 0.4994258, %v991_v56  ;;  %v828_v13 = vadd.f32 0.014752088, %v827_v2  ;;  %v1111_v15 = vmul.f32 %v1095_v32, %v2692_v59 }
 0x100   : > { %v2899_v18 = vmul.f32 %v688_v40, %v664_v16  ;;  %v723_v26 = vsel %vm2893_vm15, %v2786_v12, %v719_v30  ;;  %v2904_v17 = vadd.f32 0.18741608, %v980_v61  ;;  %v780_v37 = vmul.f32 %v779_v53, %v2707_v4 }
 0x101   : > { %v815_v31 = vadd.f32 0.00028619796, %v814_v19  ;;  %v829_v49 = vmul.f32 %v828_v13, %v2827_v25  ;;  %2192 = vmatmul.msk.f32.gmra.mxu1 %vm1136_vm9, %v1111_v15  ;;  %v2910_v28 = vmul.f32 0.70710677, %v2882_v62  ;;  %v2177_v59 = vclamps-f32 %v2838_v6, 1.0 }
 0x102   : > { %v758_v16 = vmul.f32 %v2843_v14, %v757_v3  ;;  %2282 = vrcp.f32 %v2884_v11  ;;  %v1027_v12 = vmul.f32 %v1026_v57, %v2835_v41  ;;  %v2917_v42 = vmul.f32 0.70710677, %v2887_v45 }
 0x103   : > { %v743_v46 = vadd.f32 1.1283791, %v742_v5  ;;  %v993_v8 = vmul.f32 %v992_v9, %v2714_v7  ;;  %v830_v38 = vadd.f32 0.112945676, %v829_v49  ;;  %v852_v44 = vmul.f32 %v2910_v28, %v2910_v28 }
 0x104   : > { %v728_v63 = vsel %vm2870_vm14, %v727_v60, %v723_v26  ;;  %vm760_vm1 = vweird.f32 %v2788_v33  ;;  %v781_v6 = vadd.f32 0.18741608, %v780_v37  ;;  %v1014_v29 = vmul.f32 2.1237322e-06, %v2835_v41 }
 0x105   : > { %v816_v55 = vmul.f32 %v815_v31, %v2827_v25  ;;  %v831_v23 = vmul.f32 %v830_v38, %v2827_v25  ;;  %v2928_v54 = vmin.f32 %v852_v44, 16.0  ;;  %v1096_v61 = vadd.f32 1.0, %v2177_v59 }
 0x106   : > { %v759_v56 = vadd.f32 %v2843_v14, %v758_v16  ;;  %vm761_vm2 = vweird.f32 %v2843_v14  ;;  %v1028_v58 = vadd.f32 0.014752088, %v1027_v12  ;;  %v1052_v43 = vmul.f32 %v2917_v42, %v2917_v42 }
 0x107   : > { %v764_v30 = vand.u32 2147483647, %v2788_v33  ;;  %v832_v53 = vadd.f32 0.4994258, %v831_v23  ;;  %v854_v2 = vmul.f32 2.1237322e-06, %v2928_v54  ;;  %v2937_v32 = vadd.f32 %v2444_v20, %v405_v22  ;;  %vm2947_vm3 = vmor %vm760_vm1, %vm761_vm2 }
 0x108   : > { %v2939_v40 = vpop.eup %2282  ;;  %v766_v60 = vand.u32 2147483648, %v2788_v33  ;;  %v2942_v19 = vadd.f32 1.0, %v993_v8  ;;  %v1015_v3 = vadd.f32 0.00028619796, %v1014_v29  ;;  %v865_v57 = vmul.f32 3.8918573e-05, %v2928_v54 }
 0x109   : > { %v782_v5 = vmul.f32 %v781_v6, %v2707_v4  ;;  %v817_v9 = vadd.f32 0.0036580483, %v816_v55  ;;  %v833_v13 = vmul.f32 %v832_v53, %v2827_v25  ;;  %v1112_v15 = vmul.f32 %v1096_v61, %v2697_v0 }
 0x10a   : > { %v763_v26 = vsel %vm2947_vm3, %v2843_v14, %v759_v56  ;;  %v1029_v37 = vmul.f32 %v1028_v58, %v2835_v41  ;;  %v2958_v31 = vmin.f32 %v1052_v43, 16.0  ;;  %v866_v33 = vadd.f32 0.001143296, %v865_v57 }
 0x10b   : > { %v796_v49 = vmul.f32 %v2939_v40, %v2884_v11  ;;  %v2962_v59 = vadd.f32 1.0, %v833_v13  ;;  %v855_v4 = vadd.f32 0.00028619796, %v854_v2  ;;  %2193 = vmatmul.msk.f32.gmra.mxu1 %vm1136_vm9, %v1112_v15  ;;  %v2966_v16 = vmul.f32 0.70710677, %v2937_v32 }
 0x10c   : > { %v767_v0 = vor.u32 1.1754944e-38, %v766_v60  ;;  %v1016_v12 = vmul.f32 %v1015_v3, %v2835_v41  ;;  %v867_v14 = vmul.f32 %v866_v33, %v2928_v54  ;;  %v2178_v8 = vclamps-f32 %v2899_v18, 1.0  ;;  %v408_v18 = vpop.f32.mrf.mxu0 }
 0x10d   : > { %vm765_vm4 = vcmp.eq.f32.partialorder %v764_v30, 8.507059e+37  ;;  %v783_v38 = vadd.f32 1.1283791, %v782_v5  ;;  %v818_v44 = vmul.f32 %v817_v9, %v2827_v25  ;;  %2284 = vrcp.f32 %v2962_v59 }
 0x10e   : > { %v744_v6 = vmul.f32 %v743_v46, %v2626_v35  ;;  %v768_v29 = vsel %vm765_vm4, %v767_v0, %v763_v26  ;;  %v1030_v22 = vadd.f32 0.112945676, %v1029_v37  ;;  %v1065_v55 = vmul.f32 3.8918573e-05, %v2958_v31 }
 0x10f   : > { %v797_v23 = vsub.f32 1.0, %v796_v49  ;;  %v856_v61 = vmul.f32 %v855_v4, %v2928_v54  ;;  %v868_v56 = vadd.f32 0.014752088, %v867_v14  ;;  %v892_v58 = vmul.f32 %v2966_v16, %v2966_v16 }
 0x110   : > { %v729_v43 = vmul.f32 %v728_v63, %v2841_v47  ;;  %2286 = vrcp.f32 %v2942_v19  ;;  %v2980_v30 = vadd.f32 0.0036580483, %v1016_v12  ;;  %v1097_v53 = vadd.f32 1.0, %v2178_v8 }
 0x111   : > { %v2983_v35 = vmul.f32 %v783_v38, %v2684_v48  ;;  %v819_v46 = vadd.f32 0.05243302, %v818_v44  ;;  %v869_v2 = vmul.f32 %v868_v56, %v2928_v54  ;;  %v2986_v60 = vmin.f32 %v892_v58, 16.0 }
 0x112   : > { %v2988_v3 = vmul.f32 %v768_v29, %v744_v6  ;;  %v1031_v57 = vmul.f32 %v1030_v22, %v2835_v41  ;;  %v1066_v51 = vadd.f32 0.001143296, %v1065_v55  ;;  %v2992_v47 = vadd.f32 %v2444_v20, %v408_v18 }
 0x113   : > { %v2994_v63 = vpop.eup %2284  ;;  %v798_v5 = vmul.f32 %v2939_v40, %v797_v23  ;;  %v857_v9 = vadd.f32 0.0036580483, %v856_v61  ;;  %v870_v48 = vadd.f32 0.112945676, %v869_v2  ;;  %v1113_v13 = vmul.f32 %v1097_v53, %v2700_v1 }
 0x114   : > { %v804_v15 = vand.u32 2147483647, %v2884_v11  ;;  %v806_v26 = vand.u32 2147483648, %v2884_v11  ;;  %v836_v37 = vmul.f32 %v2994_v63, %v2962_v59  ;;  %v894_v33 = vmul.f32 2.1237322e-06, %v2986_v60 }
 0x115   : > { %vm801_vm5 = vweird.f32 %v2939_v40  ;;  %v820_v20 = vmul.f32 %v819_v46, %v2827_v25  ;;  %v871_v49 = vmul.f32 %v870_v48, %v2928_v54  ;;  %v905_v4 = vmul.f32 3.8918573e-05, %v2986_v60  ;;  %2194 = vmatmul.msk.f32.gmra.mxu1 %vm1136_vm9, %v1113_v13 }
 0x116   : > { %v3008_v1 = vpop.eup %2286  ;;  %v837_v0 = vsub.f32 1.0, %v836_v37  ;;  %v1067_v12 = vmul.f32 %v1066_v51, %v2958_v31  ;;  %v895_v14 = vadd.f32 0.00028619796, %v894_v33  ;;  %v3012_v8 = vmul.f32 0.70710677, %v2992_v47 }
 0x117   : > { %v799_v38 = vadd.f32 %v2939_v40, %v798_v5  ;;  %v858_v44 = vmul.f32 %v857_v9, %v2928_v54  ;;  %v872_v6 = vadd.f32 0.4994258, %v871_v49  ;;  %v906_v29 = vadd.f32 0.001143296, %v905_v4 }
 0x118   : > { %vm800_vm6 = vweird.f32 %v2884_v11  ;;  %v1032_v22 = vadd.f32 0.4994258, %v1031_v57  ;;  %v932_v55 = vmul.f32 %v3012_v8, %v3012_v8  ;;  %v2179_v23 = vclamps-f32 %v729_v43, 1.0 }
 0x119   : > { %vm3019_vm7 = vcmp.eq.f32.partialorder %v804_v15, 8.507059e+37  ;;  %v821_v56 = vadd.f32 0.18741608, %v820_v20  ;;  %v873_v58 = vmul.f32 %v872_v6, %v2928_v54  ;;  %v896_v18 = vmul.f32 %v895_v14, %v2986_v60  ;;  %vm3027_vm8 = vmor %vm800_vm6, %vm801_vm5 }
 0x11a   : > { %v838_v11 = vmul.f32 %v2994_v63, %v837_v0  ;;  %v1068_v46 = vadd.f32 0.014752088, %v1067_v12  ;;  %v907_v43 = vmul.f32 %v906_v29, %v2986_v60  ;;  %v3033_v2 = vmin.f32 %v932_v55, 16.0 }
 0x11b   : > { %v803_v57 = vsel %vm3027_vm8, %v2939_v40, %v799_v38  ;;  %v807_v51 = vor.u32 1.1754944e-38, %v806_v26  ;;  %v859_v5 = vadd.f32 0.05243302, %v858_v44  ;;  %v3038_v9 = vadd.f32 1.0, %v873_v58 }
 0x11c   : > { %v3041_v48 = vmul.f32 %v1032_v22, %v2835_v41  ;;  %v908_v13 = vadd.f32 0.014752088, %v907_v43  ;;  %v934_v15 = vmul.f32 2.1237322e-06, %v3033_v2  ;;  %v1098_v37 = vadd.f32 1.0, %v2179_v23 }
 0x11d   : > { %v822_v33 = vmul.f32 %v821_v56, %v2827_v25  ;;  %v3046_v20 = vmul.f32 2.1237322e-06, %v2958_v31  ;;  %2288 = vrcp.f32 %v3038_v9  ;;  %v897_v49 = vadd.f32 0.0036580483, %v896_v18 }
 0x11e   : > { %v808_v40 = vsel %vm3019_vm7, %v807_v51, %v803_v57  ;;  %v839_v26 = vadd.f32 %v2994_v63, %v838_v11  ;;  %vm841_vm10 = vweird.f32 %v2994_v63  ;;  %v1069_v4 = vmul.f32 %v1068_v46, %v2958_v31 }
 0x11f   : > { %v846_v0 = vand.u32 2147483648, %v2962_v59  ;;  %v860_v12 = vmul.f32 %v859_v5, %v2928_v54  ;;  %v909_v25 = vmul.f32 %v908_v13, %v2986_v60  ;;  %v935_v14 = vadd.f32 0.00028619796, %v934_v15 }
 0x120   : > { %vm840_vm11 = vweird.f32 %v2962_v59  ;;  %v844_v38 = vand.u32 2147483647, %v2962_v59  ;;  %v945_v44 = vmul.f32 3.8918573e-05, %v3033_v2  ;;  %v1114_v6 = vmul.f32 %v1098_v37, %v2727_v36 }
 0x121   : > { %v809_v29 = vmul.f32 %v808_v40, %v2983_v35  ;;  %v823_v22 = vadd.f32 1.1283791, %v822_v33  ;;  %vm3062_vm12 = vmor %vm840_vm11, %vm841_vm10  ;;  %v898_v23 = vmul.f32 %v897_v49, %v2986_v60  ;;  %v910_v61 = vadd.f32 0.112945676, %v909_v25 }
 0x122   : > { %v843_v56 = vsel %vm3062_vm12, %v2994_v63, %v839_v26  ;;  %v1070_v58 = vadd.f32 0.112945676, %v1069_v4  ;;  %v946_v59 = vadd.f32 0.001143296, %v945_v44  ;;  %2195 = vmatmul.msk.f32.gmra.mxu1 %vm1136_vm9, %v1114_v6  ;;  %v2180_v36 = vclamps-f32 %v2988_v3, 1.0 }
 0x123   : > { %v2289_v18 = vpop.eup %2288  ;;  %v847_v35 = vor.u32 1.1754944e-38, %v846_v0  ;;  %v861_v53 = vadd.f32 0.18741608, %v860_v12  ;;  %v911_v11 = vmul.f32 %v910_v61, %v2986_v60  ;;  %v936_v46 = vmul.f32 %v935_v14, %v3033_v2 }
 0x124   : > { %vm845_vm13 = vcmp.eq.f32.partialorder %v844_v38, 8.507059e+37  ;;  %v876_v43 = vmul.f32 %v2289_v18, %v3038_v9  ;;  %v947_v57 = vmul.f32 %v946_v59, %v3033_v2  ;;  %v1099_v51 = vadd.f32 1.0, %v2180_v36 }
 0x125   : > { %v824_v63 = vmul.f32 %v823_v22, %v2784_v50  ;;  %v848_v5 = vsel %vm845_vm13, %v847_v35, %v843_v56  ;;  %v899_v13 = vadd.f32 0.05243302, %v898_v23  ;;  %v912_v15 = vadd.f32 0.4994258, %v911_v11 }
 0x126   : > { %v877_v37 = vsub.f32 1.0, %v876_v43  ;;  %v948_v3 = vadd.f32 0.014752088, %v947_v57  ;;  %v1115_v33 = vmul.f32 %v1099_v51, %v2803_v52  ;;  %v2181_v49 = vclamps-f32 %v809_v29, 1.0 }
 0x127   : > { %v1071_v40 = vmul.f32 %v1070_v58, %v2958_v31  ;;  %v862_v26 = vmul.f32 %v861_v53, %v2928_v54  ;;  %v913_v4 = vmul.f32 %v912_v15, %v2986_v60  ;;  %v937_v0 = vadd.f32 0.0036580483, %v936_v46 }
 0x128   : > { %v849_v12 = vmul.f32 %v848_v5, %v824_v63  ;;  %v878_v25 = vmul.f32 %v2289_v18, %v877_v37  ;;  %vm881_vm14 = vweird.f32 %v2289_v18  ;;  %v949_v50 = vmul.f32 %v948_v3, %v3033_v2 }
 0x129   : > { %vm880_vm15 = vweird.f32 %v3038_v9  ;;  %v886_v14 = vand.u32 2147483648, %v3038_v9  ;;  %v900_v38 = vmul.f32 %v899_v13, %v2986_v60  ;;  %v3085_v52 = vadd.f32 1.0, %v913_v4 }
 0x12a   : > { %v879_v44 = vadd.f32 %v2289_v18, %v878_v25  ;;  %v884_v6 = vand.u32 2147483647, %v3038_v9  ;;  %v950_v54 = vadd.f32 0.112945676, %v949_v50  ;;  %2196 = vmatmul.msk.f32.gmra.mxu1 %vm1136_vm9, %v1115_v33  ;;  %v1100_v29 = vadd.f32 1.0, %v2181_v49  ;;  %vm3094_vm1 = vmor %vm880_vm15, %vm881_vm14 }
 0x12b   : > { %v996_v22 = vmul.f32 %v3008_v1, %v2942_v19  ;;  %v3092_v55 = vadd.f32 1.0, %v3041_v48  ;;  %2290 = vrcp.f32 %v3085_v52  ;;  %v938_v61 = vmul.f32 %v937_v0, %v3033_v2 }
 0x12c   : > { %v1072_v56 = vadd.f32 0.4994258, %v1071_v40  ;;  %v863_v9 = vadd.f32 1.1283791, %v862_v26  ;;  %v883_v58 = vsel %vm3094_vm1, %v2289_v18, %v879_v44  ;;  %v951_v59 = vmul.f32 %v950_v54, %v3033_v2 }
 0x12d   : > { %v1055_v36 = vadd.f32 0.00028619796, %v3046_v20  ;;  %v887_v35 = vor.u32 1.1754944e-38, %v886_v14  ;;  %v901_v48 = vadd.f32 0.18741608, %v900_v38  ;;  %v2182_v53 = vclamps-f32 %v849_v12, 1.0 }
 0x12e   : > { %v982_v11 = vmul.f32 %v2904_v17, %v2714_v7  ;;  %vm885_vm2 = vcmp.eq.f32.partialorder %v884_v6, 8.507059e+37  ;;  %v952_v46 = vadd.f32 0.4994258, %v951_v59  ;;  %v1116_v43 = vmul.f32 %v1100_v29, %v2855_v27 }
 0x12f   : > { %v1018_v57 = vmul.f32 %v2980_v30, %v2835_v41  ;;  %2292 = vrcp.f32 %v3092_v55  ;;  %v888_v18 = vsel %vm885_vm2, %v887_v35, %v883_v58  ;;  %v939_v51 = vadd.f32 0.05243302, %v938_v61 }
 0x130   : > { %v997_v63 = vsub.f32 1.0, %v996_v22  ;;  %v1073_v20 = vmul.f32 %v1072_v56, %v2958_v31  ;;  %v864_v5 = vmul.f32 %v863_v9, %v2910_v28  ;;  %v953_v13 = vmul.f32 %v952_v46, %v3033_v2 }
 0x131   : > { %v2291_v15 = vpop.eup %2290  ;;  %v1056_v7 = vmul.f32 %v1055_v36, %v2958_v31  ;;  %v902_v17 = vmul.f32 %v901_v48, %v2986_v60  ;;  %v1101_v27 = vadd.f32 1.0, %v2182_v53  ;;  %v983_v37 = vadd.f32 1.1283791, %v982_v11 }
 0x132   : > { %v889_v3 = vmul.f32 %v888_v18, %v864_v5  ;;  %v916_v30 = vmul.f32 %v2291_v15, %v3085_v52  ;;  %v3116_v33 = vadd.f32 1.0, %v953_v13  ;;  %2197 = vmatmul.msk.f32.gmra.mxu1 %vm1136_vm9, %v1116_v43  ;;  %vm1000_vm3 = vweird.f32 %v2942_v19 }
 0x133   : > { %v1019_v49 = vadd.f32 0.05243302, %v1018_v57  ;;  %v429_v28 = vmul.f32 0.5, %v2769_v21  ;;  %v940_v40 = vmul.f32 %v939_v51, %v3033_v2  ;;  %v998_v26 = vmul.f32 %v3008_v1, %v997_v63 }
 0x134   : > { %v3123_v4 = vadd.f32 1.0, %v1073_v20  ;;  %v917_v60 = vsub.f32 1.0, %v916_v30  ;;  %2294 = vrcp.f32 %v3116_v33  ;;  %v1057_v12 = vadd.f32 0.0036580483, %v1056_v7 }
 0x135   : > { %v3126_v0 = vpop.eup %2292  ;;  %v903_v25 = vadd.f32 1.1283791, %v902_v17  ;;  %v926_v50 = vand.u32 2147483648, %v3085_v52  ;;  %v1117_v14 = vmul.f32 %v1101_v27, %v429_v28  ;;  %vm921_vm4 = vweird.f32 %v2291_v15 }
 0x136   : > { %v918_v38 = vmul.f32 %v2291_v15, %v917_v60  ;;  %v924_v21 = vand.u32 2147483647, %v3085_v52  ;;  %v2183_v44 = vclamps-f32 %v889_v3, 1.0  ;;  %vm1001_vm5 = vweird.f32 %v3008_v1 }
 0x137   : > { %v1006_v6 = vand.u32 2147483648, %v2942_v19  ;;  %v1020_v54 = vmul.f32 %v1019_v49, %v2835_v41  ;;  %v941_v29 = vadd.f32 0.18741608, %v940_v40  ;;  %v1036_v22 = vmul.f32 %v3126_v0, %v3092_v55  ;;  %vm3142_vm8 = vmor %vm1000_vm3, %vm1001_vm5 }
 0x138   : > { %2296 = vrcp.f32 %v3123_v4  ;;  %v919_v23 = vadd.f32 %v2291_v15, %v918_v38  ;;  %vm920_vm6 = vweird.f32 %v3085_v52  ;;  %v999_v61 = vadd.f32 %v3008_v1, %v998_v26 }
 0x139   : > { %v1004_v56 = vand.u32 2147483647, %v2942_v19  ;;  %v1058_v9 = vmul.f32 %v1057_v12, %v2958_v31  ;;  %vm922_vm7 = vmor %vm920_vm6, %vm921_vm4  ;;  %v927_v58 = vor.u32 1.1754944e-38, %v926_v50  ;;  %v904_v35 = vmul.f32 %v903_v25, %v2966_v16 }
 0x13a   : > { %v2295_v59 = vpop.eup %2294  ;;  %v923_v48 = vsel %vm922_vm7, %v2291_v15, %v919_v23  ;;  %vm925_vm10 = vcmp.eq.f32.partialorder %v924_v21, 8.507059e+37  ;;  %2198 = vmatmul.msk.f32.gmra.mxu1 %vm1136_vm9, %v1117_v14  ;;  %v1102_v52 = vadd.f32 1.0, %v2183_v44  ;;  %v1007_v53 = vor.u32 1.1754944e-38, %v1006_v6 }
 0x13b   : > { %v928_v11 = vsel %vm925_vm10, %v927_v58, %v923_v48  ;;  %v942_v46 = vmul.f32 %v941_v29, %v3033_v2  ;;  %v956_v43 = vmul.f32 %v2295_v59, %v3116_v33  ;;  %v1021_v57 = vadd.f32 0.18741608, %v1020_v54 }
 0x13c   : > { %v1037_v18 = vsub.f32 1.0, %v1036_v22  ;;  %v430_v19 = vmul.f32 0.5, %v2882_v62  ;;  %v929_v51 = vmul.f32 %v928_v11, %v904_v35  ;;  %v1003_v16 = vsel %vm3142_vm8, %v3008_v1, %v999_v61 }
 0x13d   : > { %vm1005_vm11 = vcmp.eq.f32.partialorder %v1004_v56, 8.507059e+37  ;;  %v957_v63 = vsub.f32 1.0, %v956_v43  ;;  %v1059_v5 = vadd.f32 0.05243302, %v1058_v9  ;;  %v966_v13 = vand.u32 2147483648, %v3116_v33 }
 0x13e   : > { %v3154_v20 = vpop.eup %2296  ;;  %v1118_v15 = vmul.f32 %v1102_v52, %v430_v19  ;;  %v2184_v2 = vclamps-f32 %v929_v51, 1.0  ;;  %v943_v7 = vadd.f32 1.1283791, %v942_v46  ;;  %vm961_vm12 = vweird.f32 %v2295_v59 }
 0x13f   : > { %v958_v17 = vmul.f32 %v2295_v59, %v957_v63  ;;  %v964_v27 = vand.u32 2147483647, %v3116_v33  ;;  %v984_v62 = vmul.f32 %v983_v37, %v2679_v34  ;;  %v1008_v3 = vsel %vm1005_vm11, %v1007_v53, %v1003_v16 }
 0x140   : > { %v1022_v30 = vmul.f32 %v1021_v57, %v2835_v41  ;;  %v1038_v1 = vmul.f32 %v3126_v0, %v1037_v18  ;;  %vm1040_vm13 = vweird.f32 %v3092_v55  ;;  %v1076_v49 = vmul.f32 %v3154_v20, %v3123_v4 }
 0x141   : > { %v959_v28 = vadd.f32 %v2295_v59, %v958_v17  ;;  %vm960_vm14 = vweird.f32 %v3116_v33  ;;  %vm1041_vm15 = vweird.f32 %v3126_v0  ;;  %v1060_v40 = vmul.f32 %v1059_v5, %v2958_v31 }
 0x142   : > { %vm962_vm1 = vmor %vm960_vm14, %vm961_vm12  ;;  %v967_v26 = vor.u32 1.1754944e-38, %v966_v13  ;;  %2199 = vmatmul.msk.f32.gmra.mxu1 %vm1136_vm9, %v1118_v15  ;;  %v1103_v34 = vadd.f32 1.0, %v2184_v2  ;;  %v1044_v41 = vand.u32 2147483647, %v3092_v55  ;;  %v944_v37 = vmul.f32 %v943_v7, %v3012_v8  ;;  %v3182_v8 = vld [vmem:[%s3938_s4] ss:$0 sm:$0xff] }
 0x143   : > { %v963_v60 = vsel %vm962_vm1, %v2295_v59, %v959_v28  ;;  %vm965_vm2 = vcmp.eq.f32.partialorder %v964_v27, 8.507059e+37  ;;  %v1039_v12 = vadd.f32 %v3126_v0, %v1038_v1  ;;  %v1046_v25 = vand.u32 2147483648, %v3092_v55  ;;  %vm3175_vm3 = vmor %vm1040_vm13, %vm1041_vm15 }
 0x144   : > { %v431_v33 = vmul.f32 0.5, %v2937_v32  ;;  %v968_v50 = vsel %vm965_vm2, %v967_v26, %v963_v60  ;;  %v1077_v38 = vsub.f32 1.0, %v1076_v49  ;;  %v1023_v6 = vadd.f32 1.1283791, %v1022_v30 }
 0x145   : > { %v969_v21 = vmul.f32 %v968_v50, %v944_v37  ;;  %v1061_v54 = vadd.f32 0.18741608, %v1060_v40  ;;  %v1009_v22 = vmul.f32 %v1008_v3, %v984_v62  ;;  %v1043_v55 = vsel %vm3175_vm3, %v3126_v0, %v1039_v12 }
 0x146   : > { %v1119_v29 = vmul.f32 %v1103_v34, %v431_v33  ;;  %vm1045_vm4 = vcmp.eq.f32.partialorder %v1044_v41, 8.507059e+37  ;;  %v1047_v61 = vor.u32 1.1754944e-38, %v1046_v25  ;;  %v1078_v56 = vmul.f32 %v3154_v20, %v1077_v38 }
 0x147   : > { %v1202_v44 = vpop.f32.mrf.mxu1  ;;  %v2185_v32 = vclamps-f32 %v969_v21, 1.0  ;;  %v432_v9 = vmul.f32 0.5, %v2992_v47  ;;  %v1024_v36 = vmul.f32 %v1023_v6, %v2791_v39  ;;  %v1062_v35 = vmul.f32 %v1061_v54, %v2958_v31 }
 0x148   : > { %v3185_v23 = vadd.f32 %v3182_v8, %v1202_v44  ;;  %vm1080_vm5 = vweird.f32 %v3123_v4  ;;  %vm1081_vm6 = vweird.f32 %v3154_v20  ;;  %v2186_v48 = vclamps-f32 %v1009_v22, 1.0 }
 0x149   : > { %v1104_v58 = vadd.f32 1.0, %v2185_v32  ;;  %v1048_v47 = vsel %vm1045_vm4, %v1047_v61, %v1043_v55  ;;  %v1086_v53 = vand.u32 2147483648, %v3123_v4  ;;  %v1079_v11 = vadd.f32 %v3154_v20, %v1078_v56  ;;  %vm1082_vm7 = vmor %vm1080_vm5, %vm1081_vm6 }
 0x14a   : > { %v3193_v59 = vmul.f32 0.70710677, %v3185_v23  ;;  %2200 = vmatmul.msk.f32.gmra.mxu1 %vm1136_vm9, %v1119_v29  ;;  %v1084_v39 = vand.u32 2147483647, %v3123_v4  ;;  %v433_v46 = vmul.f32 0.5, %v2666_v24  ;;  %v1049_v43 = vmul.f32 %v1048_v47, %v1024_v36 }
 0x14b   : > { %v1120_v0 = vmul.f32 %v1104_v58, %v432_v9  ;;  %v1063_v57 = vadd.f32 1.1283791, %v1062_v35  ;;  %v1105_v18 = vadd.f32 1.0, %v2186_v48  ;;  %v1087_v51 = vor.u32 1.1754944e-38, %v1086_v53 }
 0x14c   : > { %v1282_v52 = vmul.f32 %v3193_v59, %v3193_v59  ;;  %v1083_v16 = vsel %vm1082_vm7, %v3154_v20, %v1079_v11  ;;  %vm1085_vm8 = vcmp.eq.f32.partialorder %v1084_v39, 8.507059e+37  ;;  %v2187_v13 = vclamps-f32 %v1049_v43, 1.0 }
 0x14d   : > { %2201 = vmatmul.msk.f32.vlgmr.msrb.gmra.mxu3 %vm1136_vm9, %v1120_v0  ;;  %v1064_v5 = vmul.f32 %v1063_v57, %v2917_v42  ;;  %v1121_v4 = vmul.f32 %v1105_v18, %v433_v46  ;;  %v1088_v2 = vsel %vm1085_vm8, %v1087_v51, %v1083_v16  ;;  %v434_v27 = vmul.f32 0.5, %v2766_v10 }
 0x14e   : > { %v3206_v31 = vmin.f32 %v1282_v52, 16.0  ;;  %v1106_v3 = vadd.f32 1.0, %v2187_v13  ;;  %v435_v25 = vmul.f32 0.5, %v2887_v45 }
 0x14f   : > { %v1205_v7 = vpop.f32.mrf.mxu1  ;;  %v1089_v62 = vmul.f32 %v1088_v2, %v1064_v5 }
 0x150   : > { %v1295_v19 = vmul.f32 3.8918573e-05, %v3206_v31  ;;  %v3215_v17 = vadd.f32 %v3182_v8, %v1205_v7  ;;  %v1284_v20 = vmul.f32 2.1237322e-06, %v3206_v31  ;;  %v1122_v40 = vmul.f32 %v1106_v3, %v434_v27 }
 0x151   : > { %v2188_v26 = vclamps-f32 %v1089_v62, 1.0 }
 0x152   : > { %v1296_v63 = vadd.f32 0.001143296, %v1295_v19  ;;  %v3221_v30 = vmul.f32 0.70710677, %v3215_v17  ;;  %v1285_v28 = vadd.f32 0.00028619796, %v1284_v20 }
 0x153   : > { %v1107_v33 = vadd.f32 1.0, %v2188_v26 }
 0x154   : > { %v1297_v15 = vmul.f32 %v1296_v63, %v3206_v31  ;;  %v1322_v49 = vmul.f32 %v3221_v30, %v3221_v30  ;;  %v1286_v37 = vmul.f32 %v1285_v28, %v3206_v31 }
 0x155   : > { %2202 = vmatmul.msk.f32.gmra.mxu3 %vm1136_vm9, %v1121_v4  ;;  %v1123_v29 = vmul.f32 %v1107_v33, %v435_v25 }
 0x156   : > { %v1298_v24 = vadd.f32 0.014752088, %v1297_v15  ;;  %v3226_v41 = vmin.f32 %v1322_v49, 16.0  ;;  %v1287_v21 = vadd.f32 0.0036580483, %v1286_v37 }
 0x158   : > { %v1299_v42 = vmul.f32 %v1298_v24, %v3206_v31  ;;  %v1324_v60 = vmul.f32 2.1237322e-06, %v3226_v41  ;;  %v1335_v12 = vmul.f32 3.8918573e-05, %v3226_v41  ;;  %v1288_v45 = vmul.f32 %v1287_v21, %v3206_v31 }
 0x15a   : > { %v1300_v1 = vadd.f32 0.112945676, %v1299_v42  ;;  %v1336_v14 = vadd.f32 0.001143296, %v1335_v12  ;;  %v1325_v44 = vadd.f32 0.00028619796, %v1324_v60 }
 0x15b   : > { %v1289_v35 = vadd.f32 0.05243302, %v1288_v45 }
 0x15c   : > { %v1301_v34 = vmul.f32 %v1300_v1, %v3206_v31  ;;  %v1337_v6 = vmul.f32 %v1336_v14, %v3226_v41  ;;  %v1326_v55 = vmul.f32 %v1325_v44, %v3226_v41 }
 0x15d   : > { %2203 = vmatmul.msk.f32.gmra.mxu3 %vm1136_vm9, %v1122_v40  ;;  %v1290_v46 = vmul.f32 %v1289_v35, %v3206_v31 }
 0x15e   : > { %v1302_v10 = vadd.f32 0.4994258, %v1301_v34  ;;  %v1338_v22 = vadd.f32 0.014752088, %v1337_v6  ;;  %v1327_v0 = vadd.f32 0.0036580483, %v1326_v55 }
 0x15f   : > { %v1291_v4 = vadd.f32 0.18741608, %v1290_v46 }
 0x160   : > { %v1303_v50 = vmul.f32 %v1302_v10, %v3206_v31  ;;  %v1208_v54 = vpop.f32.mrf.mxu1  ;;  %v1339_v61 = vmul.f32 %v1338_v22, %v3226_v41  ;;  %v1328_v43 = vmul.f32 %v1327_v0, %v3226_v41 }
 0x161   : > { %v3236_v32 = vadd.f32 %v3182_v8, %v1208_v54  ;;  %v1292_v24 = vmul.f32 %v1291_v4, %v3206_v31 }
 0x162   : > { %v1304_v38 = vadd.f32 1.0, %v1303_v50  ;;  %v1340_v9 = vadd.f32 0.112945676, %v1339_v61  ;;  %v1329_v13 = vadd.f32 0.05243302, %v1328_v43 }
 0x163   : > { %v3243_v56 = vmul.f32 0.70710677, %v3236_v32  ;;  %v1293_v26 = vadd.f32 1.1283791, %v1292_v24 }
 0x164   : > { %2298 = vrcp.f32 %v1304_v38  ;;  %v1341_v48 = vmul.f32 %v1340_v9, %v3226_v41  ;;  %v1330_v27 = vmul.f32 %v1329_v13, %v3226_v41  ;;  %v1316_v1 = vand.u32 2147483648, %v1304_v38  ;;  %v1954_v13 = vld [vmem:[%s3939_s5] sm:$0xff] }
 0x165   : > { %2204 = vmatmul.msk.f32.gmra.mxu3 %vm1136_vm9, %v1123_v29  ;;  %v1362_v36 = vmul.f32 %v3243_v56, %v3243_v56  ;;  %vm1310_vm10 = vweird.f32 %v1304_v38  ;;  %v1314_v28 = vand.u32 2147483647, %v1304_v38  ;;  %v1294_v50 = vmul.f32 %v1293_v26, %v3193_v59  ;;  %v1957_v59 = vld [vmem:[%s3939_s5 + $0x18] sm:$0xff] }
 0x166   : > { %v1342_v53 = vadd.f32 0.4994258, %v1341_v48  ;;  %v1331_v34 = vadd.f32 0.18741608, %v1330_v27  ;;  %v1317_v12 = vor.u32 1.1754944e-38, %v1316_v1  ;;  %2022 = vmatpush.msra.mxu2 %v1957_v59  ;;  %2251 = vmatpush.msra.mxu3 %v1957_v59 }
 0x167   : > { %v3248_v47 = vmin.f32 %v1362_v36, 16.0  ;;  %vm1315_vm12 = vcmp.eq.f32.partialorder %v1314_v28, 8.507059e+37  ;;  %v1251_v28 = vmul.f32 0.5, %v3215_v17 }
 0x168   : > { %v1343_v57 = vmul.f32 %v1342_v53, %v3226_v41  ;;  %v1332_v21 = vmul.f32 %v1331_v34, %v3226_v41 }
 0x169   : > { %v1364_v11 = vmul.f32 2.1237322e-06, %v3248_v47  ;;  %v1375_v39 = vmul.f32 3.8918573e-05, %v3248_v47 }
 0x16a   : > { %v2299_v58 = vpop.eup %2298  ;;  %v1344_v16 = vadd.f32 1.0, %v1343_v57  ;;  %v1333_v9 = vadd.f32 1.1283791, %v1332_v21 }
 0x16b   : > { %v1306_v52 = vmul.f32 %v2299_v58, %v1304_v38  ;;  %v1365_v19 = vadd.f32 0.00028619796, %v1364_v11  ;;  %v1376_v51 = vadd.f32 0.001143296, %v1375_v39  ;;  %vm1311_vm9 = vweird.f32 %v2299_v58 }
 0x16c   : > { %2300 = vrcp.f32 %v1344_v16  ;;  %vm1312_vm11 = vmor %vm1310_vm10, %vm1311_vm9  ;;  %v1356_v22 = vand.u32 2147483648, %v1344_v16  ;;  %vm1350_vm14 = vweird.f32 %v1344_v16  ;;  %v1354_v41 = vand.u32 2147483647, %v1344_v16 }
 0x16d   : > { %v1307_v18 = vsub.f32 1.0, %v1306_v52  ;;  %v1366_v63 = vmul.f32 %v1365_v19, %v3248_v47  ;;  %v1377_v5 = vmul.f32 %v1376_v51, %v3248_v47  ;;  %v1956_v52 = vld [vmem:[%s3939_s5 + $0x10] sm:$0xff]  ;;  %v1334_v11 = vmul.f32 %v1333_v9, %v3221_v30 }
 0x16e   : > { %v1357_v0 = vor.u32 1.1754944e-38, %v1356_v22  ;;  %vm1355_vm1 = vcmp.eq.f32.partialorder %v1354_v41, 8.507059e+37  ;;  %2023 = vmatpush.msra.mxu2 %v1956_v52  ;;  %2252 = vmatpush.msra.mxu3 %v1956_v52 }
 0x16f   : > { %v1308_v15 = vmul.f32 %v2299_v58, %v1307_v18  ;;  %v1367_v2 = vadd.f32 0.0036580483, %v1366_v63  ;;  %v1378_v7 = vadd.f32 0.014752088, %v1377_v5  ;;  %v1955_v18 = vld [vmem:[%s3939_s5 + $0x8] sm:$0xff] }
 0x170   : > { %2024 = vmatpush.msra.mxu2 %v1955_v18  ;;  %2253 = vmatpush.msra.mxu3 %v1955_v18 }
 0x171   : > { %v1379_v20 = vmul.f32 %v1378_v7, %v3248_v47  ;;  %v1309_v62 = vadd.f32 %v2299_v58, %v1308_v15  ;;  %v1368_v3 = vmul.f32 %v1367_v2, %v3248_v47 }
 0x172   : > { %v2301_v42 = vpop.eup %2300  ;;  %2025 = vmatpush.msra.mxu2 %v1954_v13  ;;  %2254 = vmatpush.msra.mxu3 %v1954_v13 }
 0x173   : > { %v1380_v49 = vadd.f32 0.112945676, %v1379_v20  ;;  %v1346_v40 = vmul.f32 %v2301_v42, %v1344_v16  ;;  %v1313_v31 = vsel %vm1312_vm11, %v2299_v58, %v1309_v62  ;;  %v1369_v60 = vadd.f32 0.05243302, %v1368_v3 }
 0x174   : > { %v1318_v14 = vsel %vm1315_vm12, %v1317_v12, %v1313_v31  ;;  %vm1351_vm13 = vweird.f32 %v2301_v42  ;;  %v1250_v16 = vmul.f32 0.5, %v3185_v23 }
 0x175   : > { %v1381_v10 = vmul.f32 %v1380_v49, %v3248_v47  ;;  %v1347_v37 = vsub.f32 1.0, %v1346_v40  ;;  %v1370_v54 = vmul.f32 %v1369_v60, %v3248_v47  ;;  %v1319_v55 = vmul.f32 %v1318_v14, %v1294_v50  ;;  %vm1352_vm15 = vmor %vm1350_vm14, %vm1351_vm13 }
 0x177   : > { %v1382_v25 = vadd.f32 0.4994258, %v1381_v10  ;;  %v1348_v33 = vmul.f32 %v2301_v42, %v1347_v37  ;;  %v1371_v36 = vadd.f32 0.18741608, %v1370_v54  ;;  %v2205_v53 = vclamps-f32 %v1319_v55, 1.0 }
 0x179   : > { %v1383_v38 = vmul.f32 %v1382_v25, %v3248_v47  ;;  %v1349_v6 = vadd.f32 %v2301_v42, %v1348_v33  ;;  %v1372_v46 = vmul.f32 %v1371_v36, %v3248_v47  ;;  %v1922_v19 = vadd.f32 1.0, %v2205_v53 }
 0x17b   : > { %v3269_v45 = vadd.f32 1.0, %v1383_v38  ;;  %v1353_v58 = vsel %vm1352_vm15, %v2301_v42, %v1349_v6  ;;  %v1938_v2 = vmul.f32 %v1922_v19, %v1250_v16  ;;  %v1373_v7 = vadd.f32 1.1283791, %v1372_v46 }
 0x17c   : > { %v1358_v39 = vsel %vm1355_vm1, %v1357_v0, %v1353_v58 }
 0x17d   : > { %2302 = vrcp.f32 %v3269_v45  ;;  %v1359_v30 = vmul.f32 %v1358_v39, %v1334_v11  ;;  %v1394_v20 = vand.u32 2147483647, %v3269_v45  ;;  %v1396_v62 = vand.u32 2147483648, %v3269_v45  ;;  %2221 = vmatmul.msk.f32.vlgmr.msra.gmra.mxu2 %vm306_vm0, %v1938_v2 }
 0x17e   : > { %v1211_v44 = vpop.f32.mrf.mxu1  ;;  %vm1390_vm3 = vweird.f32 %v3269_v45  ;;  %v1374_v37 = vmul.f32 %v1373_v7, %v3243_v56  ;;  %v1252_v39 = vmul.f32 0.5, %v3236_v32 }
 0x17f   : > { %v3267_v29 = vadd.f32 %v3182_v8, %v1211_v44  ;;  %v2206_v49 = vclamps-f32 %v1359_v30, 1.0  ;;  %v1397_v60 = vor.u32 1.1754944e-38, %v1396_v62  ;;  %vm1395_vm5 = vcmp.eq.f32.partialorder %v1394_v20, 8.507059e+37 }
 0x181   : > { %v3275_v61 = vmul.f32 0.70710677, %v3267_v29  ;;  %v1923_v31 = vadd.f32 1.0, %v2206_v49 }
 0x183   : > { %v1402_v35 = vmul.f32 %v3275_v61, %v3275_v61  ;;  %v2303_v51 = vpop.eup %2302  ;;  %v1939_v17 = vmul.f32 %v1923_v31, %v1251_v28 }
 0x184   : > { %v1386_v5 = vmul.f32 %v2303_v51, %v3269_v45  ;;  %vm1391_vm2 = vweird.f32 %v2303_v51 }
 0x185   : > { %v3280_v48 = vmin.f32 %v1402_v35, 16.0  ;;  %vm1392_vm4 = vmor %vm1390_vm3, %vm1391_vm2  ;;  %2222 = vmatmul.msk.f32.gmra.mxu2 %vm306_vm0, %v1939_v17 }
 0x186   : > { %v1387_v23 = vsub.f32 1.0, %v1386_v5 }
 0x187   : > { %v1404_v43 = vmul.f32 2.1237322e-06, %v3280_v48  ;;  %v1415_v57 = vmul.f32 3.8918573e-05, %v3280_v48 }
 0x188   : > { %v1214_v63 = vpop.f32.mrf.mxu1  ;;  %v1388_v42 = vmul.f32 %v2303_v51, %v1387_v23 }
 0x189   : > { %v1405_v4 = vadd.f32 0.00028619796, %v1404_v43  ;;  %v1416_v47 = vadd.f32 0.001143296, %v1415_v57  ;;  %v3298_v15 = vadd.f32 %v3182_v8, %v1214_v63 }
 0x18a   : > { %v1389_v26 = vadd.f32 %v2303_v51, %v1388_v42 }
 0x18b   : > { %v1406_v24 = vmul.f32 %v1405_v4, %v3280_v48  ;;  %v1417_v27 = vmul.f32 %v1416_v47, %v3280_v48  ;;  %v3305_v3 = vmul.f32 0.70710677, %v3298_v15 }
 0x18c   : > { %v1393_v25 = vsel %vm1392_vm4, %v2303_v51, %v1389_v26 }
 0x18d   : > { %v1418_v1 = vadd.f32 0.014752088, %v1417_v27  ;;  %v1442_v40 = vmul.f32 %v3305_v3, %v3305_v3  ;;  %v1407_v34 = vadd.f32 0.0036580483, %v1406_v24  ;;  %v1398_v50 = vsel %vm1395_vm5, %v1397_v60, %v1393_v25 }
 0x18e   : > { %v1399_v44 = vmul.f32 %v1398_v50, %v1374_v37 }
 0x18f   : > { %v1419_v10 = vmul.f32 %v1418_v1, %v3280_v48  ;;  %v3314_v12 = vmin.f32 %v1442_v40, 16.0  ;;  %v1408_v6 = vmul.f32 %v1407_v34, %v3280_v48 }
 0x190   : > { %v2207_v36 = vclamps-f32 %v1399_v44, 1.0 }
 0x191   : > { %v1420_v33 = vadd.f32 0.112945676, %v1419_v10  ;;  %v1444_v14 = vmul.f32 2.1237322e-06, %v3314_v12  ;;  %v1455_v21 = vmul.f32 3.8918573e-05, %v3314_v12 }
 0x192   : > { %v1217_v38 = vpop.f32.mrf.mxu1  ;;  %v1409_v9 = vadd.f32 0.05243302, %v1408_v6  ;;  %v1924_v11 = vadd.f32 1.0, %v2207_v36 }
 0x193   : > { %v1421_v54 = vmul.f32 %v1420_v33, %v3280_v48  ;;  %v3321_v56 = vadd.f32 %v3182_v8, %v1217_v38  ;;  %v1456_v22 = vadd.f32 0.001143296, %v1455_v21  ;;  %v1445_v59 = vadd.f32 0.00028619796, %v1444_v14 }
 0x194   : > { %v1410_v57 = vmul.f32 %v1409_v9, %v3280_v48  ;;  %v1940_v19 = vmul.f32 %v1924_v11, %v1252_v39 }
 0x195   : > { %v1422_v45 = vadd.f32 0.4994258, %v1421_v54  ;;  %v1457_v55 = vmul.f32 %v1456_v22, %v3314_v12  ;;  %v3326_v41 = vmul.f32 0.70710677, %v3321_v56  ;;  %v1446_v53 = vmul.f32 %v1445_v59, %v3314_v12 }
 0x196   : > { %2223 = vmatmul.msk.f32.gmra.mxu2 %vm306_vm0, %v1940_v19  ;;  %v1411_v5 = vadd.f32 0.18741608, %v1410_v57 }
 0x197   : > { %v1423_v58 = vmul.f32 %v1422_v45, %v3280_v48  ;;  %v1458_v35 = vadd.f32 0.014752088, %v1457_v55  ;;  %v1482_v0 = vmul.f32 %v3326_v41, %v3326_v41  ;;  %v1447_v51 = vadd.f32 0.0036580483, %v1446_v53 }
 0x198   : > { %v1412_v42 = vmul.f32 %v1411_v5, %v3280_v48 }
 0x199   : > { %v1424_v52 = vadd.f32 1.0, %v1423_v58  ;;  %v1459_v46 = vmul.f32 %v1458_v35, %v3314_v12  ;;  %v3334_v43 = vmin.f32 %v1482_v0, 16.0  ;;  %v1448_v23 = vmul.f32 %v1447_v51, %v3314_v12 }
 0x19a   : > { %v1413_v25 = vadd.f32 1.1283791, %v1412_v42  ;;  %v3399_v42 = vmul.f32 0.5, %v3321_v56 }
 0x19b   : > { %2304 = vrcp.f32 %v1424_v52  ;;  %v1460_v18 = vadd.f32 0.112945676, %v1459_v46  ;;  %v1484_v16 = vmul.f32 2.1237322e-06, %v3334_v43  ;;  %v1495_v63 = vmul.f32 3.8918573e-05, %v3334_v43 }
 0x19c   : > { %v1434_v28 = vand.u32 2147483647, %v1424_v52  ;;  %v1436_v26 = vand.u32 2147483648, %v1424_v52  ;;  %v1449_v34 = vadd.f32 0.05243302, %v1448_v23  ;;  %vm1430_vm7 = vweird.f32 %v1424_v52 }
 0x19d   : > { %v1461_v30 = vmul.f32 %v1460_v18, %v3314_v12  ;;  %v1485_v32 = vadd.f32 0.00028619796, %v1484_v16  ;;  %v1496_v4 = vadd.f32 0.001143296, %v1495_v63  ;;  %v1414_v58 = vmul.f32 %v1413_v25, %v3275_v61 }
 0x19e   : > { %vm1435_vm8 = vcmp.eq.f32.partialorder %v1434_v28, 8.507059e+37  ;;  %v1437_v21 = vor.u32 1.1754944e-38, %v1436_v26  ;;  %v1450_v38 = vmul.f32 %v1449_v34, %v3314_v12 }
 0x19f   : > { %v1220_v47 = vpop.f32.mrf.mxu1  ;;  %v1462_v13 = vadd.f32 0.4994258, %v1461_v30  ;;  %v1486_v24 = vmul.f32 %v1485_v32, %v3334_v43  ;;  %v1497_v27 = vmul.f32 %v1496_v4, %v3334_v43 }
 0x1a0   : > { %v3342_v2 = vadd.f32 %v3182_v8, %v1220_v47  ;;  %v1451_v0 = vadd.f32 0.18741608, %v1450_v38 }
 0x1a1   : > { %v2305_v7 = vpop.eup %2304  ;;  %v1463_v62 = vmul.f32 %v1462_v13, %v3314_v12  ;;  %v1498_v1 = vadd.f32 0.014752088, %v1497_v27  ;;  %v1487_v10 = vadd.f32 0.0036580483, %v1486_v24  ;;  %v1253_v27 = vmul.f32 0.5, %v3267_v29 }
 0x1a2   : > { %v1426_v20 = vmul.f32 %v2305_v7, %v1424_v52  ;;  %v3350_v40 = vmul.f32 0.70710677, %v3342_v2  ;;  %vm1431_vm6 = vweird.f32 %v2305_v7  ;;  %v1452_v30 = vmul.f32 %v1451_v0, %v3314_v12 }
 0x1a3   : > { %v1499_v31 = vmul.f32 %v1498_v1, %v3334_v43  ;;  %v3353_v60 = vadd.f32 1.0, %v1463_v62  ;;  %vm1432_vm9 = vmor %vm1430_vm7, %vm1431_vm6  ;;  %v1488_v44 = vmul.f32 %v1487_v10, %v3334_v43  ;;  %v3396_v12 = vmul.f32 0.5, %v3298_v15 }
 0x1a4   : > { %v1427_v49 = vsub.f32 1.0, %v1426_v20  ;;  %v1522_v48 = vmul.f32 %v3350_v40, %v3350_v40  ;;  %v1453_v62 = vadd.f32 1.1283791, %v1452_v30  ;;  %v3407_v29 = vmul.f32 0.5, %v3342_v2 }
 0x1a5   : > { %v1500_v50 = vadd.f32 0.112945676, %v1499_v31  ;;  %2306 = vrcp.f32 %v3353_v60  ;;  %v1489_v52 = vadd.f32 0.05243302, %v1488_v44  ;;  %vm1470_vm10 = vweird.f32 %v3353_v60 }
 0x1a6   : > { %v1428_v37 = vmul.f32 %v2305_v7, %v1427_v49  ;;  %v3362_v6 = vmin.f32 %v1522_v48, 16.0  ;;  %v1474_v44 = vand.u32 2147483647, %v3353_v60 }
 0x1a7   : > { %v1223_v33 = vpop.f32.mrf.mxu1  ;;  %v1501_v22 = vmul.f32 %v1500_v50, %v3334_v43  ;;  %v1490_v5 = vmul.f32 %v1489_v52, %v3334_v43 }
 0x1a8   : > { %v1429_v17 = vadd.f32 %v2305_v7, %v1428_v37  ;;  %v3358_v14 = vadd.f32 %v3182_v8, %v1223_v33  ;;  %v1524_v55 = vmul.f32 2.1237322e-06, %v3362_v6  ;;  %v1535_v9 = vmul.f32 3.8918573e-05, %v3362_v6 }
 0x1a9   : > { %v1502_v36 = vadd.f32 0.4994258, %v1501_v22  ;;  %v1491_v1 = vadd.f32 0.18741608, %v1490_v5  ;;  %vm3449_vm12 = vcmp.eq.f32.partialorder %v1474_v44, 8.507059e+37 }
 0x1aa   : > { %v1433_v54 = vsel %vm1432_vm9, %v2305_v7, %v1429_v17  ;;  %v3367_v45 = vmul.f32 0.70710677, %v3358_v14  ;;  %v1525_v53 = vadd.f32 0.00028619796, %v1524_v55  ;;  %v1536_v46 = vadd.f32 0.001143296, %v1535_v9 }
 0x1ab   : > { %v1438_v59 = vsel %vm1435_vm8, %v1437_v21, %v1433_v54  ;;  %v1503_v39 = vmul.f32 %v1502_v36, %v3334_v43  ;;  %v3378_v51 = vpop.eup %2306  ;;  %v3417_v21 = vmul.f32 %v1453_v62, %v3305_v3  ;;  %v1492_v2 = vmul.f32 %v1491_v1, %v3334_v43 }
 0x1ac   : > { %v1562_v35 = vmul.f32 %v3367_v45, %v3367_v45  ;;  %v1439_v11 = vmul.f32 %v1438_v59, %v1414_v58  ;;  %v1526_v18 = vmul.f32 %v1525_v53, %v3362_v6  ;;  %v1537_v61 = vmul.f32 %v1536_v46, %v3362_v6 }
 0x1ad   : > { %v3380_v16 = vadd.f32 1.0, %v1503_v39  ;;  %v1466_v7 = vmul.f32 %v3378_v51, %v3353_v60  ;;  %v1476_v43 = vand.u32 2147483648, %v3353_v60  ;;  %vm1471_vm11 = vweird.f32 %v3378_v51 }
 0x1ae   : > { %v3375_v57 = vmin.f32 %v1562_v35, 16.0  ;;  %v1527_v32 = vadd.f32 0.0036580483, %v1526_v18  ;;  %v2208_v13 = vclamps-f32 %v1439_v11, 1.0  ;;  %v1538_v24 = vadd.f32 0.014752088, %v1537_v61  ;;  %vm3461_vm13 = vmor %vm1470_vm10, %vm1471_vm11 }
 0x1af   : > { %v1226_v19 = vpop.f32.mrf.mxu1  ;;  %2308 = vrcp.f32 %v3380_v16  ;;  %v1467_v31 = vsub.f32 1.0, %v1466_v7  ;;  %v1493_v52 = vadd.f32 1.1283791, %v1492_v2  ;;  %v1514_v62 = vand.u32 2147483647, %v3380_v16 }
 0x1b0   : > { %v1575_v63 = vmul.f32 3.8918573e-05, %v3375_v57  ;;  %v1564_v4 = vmul.f32 2.1237322e-06, %v3375_v57  ;;  %v3388_v47 = vadd.f32 %v3182_v8, %v1226_v19  ;;  %v1528_v23 = vmul.f32 %v1527_v32, %v3362_v6 }
 0x1b1   : > { %v1539_v49 = vmul.f32 %v1538_v24, %v3362_v6  ;;  %v1925_v10 = vadd.f32 1.0, %v2208_v13  ;;  %v1468_v55 = vmul.f32 %v3378_v51, %v1467_v31  ;;  %v1477_v24 = vor.u32 1.1754944e-38, %v1476_v43 }
 0x1b2   : > { %v1576_v20 = vadd.f32 0.001143296, %v1575_v63  ;;  %v1565_v28 = vadd.f32 0.00028619796, %v1564_v4  ;;  %v3404_v34 = vmul.f32 0.70710677, %v3388_v47  ;;  %vm1510_vm14 = vweird.f32 %v3380_v16 }
 0x1b3   : > { %v1529_v15 = vadd.f32 0.05243302, %v1528_v23  ;;  %v1540_v37 = vadd.f32 0.112945676, %v1539_v49  ;;  %v1941_v17 = vmul.f32 %v1925_v10, %v1253_v27  ;;  %v1469_v61 = vadd.f32 %v3378_v51, %v1468_v55 }
 0x1b4   : > { %v1577_v26 = vmul.f32 %v1576_v20, %v3375_v57  ;;  %v1602_v56 = vmul.f32 %v3404_v34, %v3404_v34  ;;  %v1566_v54 = vmul.f32 %v1565_v28, %v3375_v57  ;;  %v3455_v27 = vmul.f32 0.5, %v3358_v14 }
 0x1b5   : > { %v3414_v50 = vpop.eup %2308  ;;  %v1541_v38 = vmul.f32 %v1540_v37, %v3362_v6  ;;  %2224 = vmatmul.msk.f32.gmra.mxu2 %vm306_vm0, %v1941_v17  ;;  %v1530_v3 = vmul.f32 %v1529_v15, %v3362_v6  ;;  %v1516_v1 = vand.u32 2147483648, %v3380_v16  ;;  %v1473_v14 = vsel %vm3461_vm13, %v3378_v51, %v1469_v61 }
 0x1b6   : > { %v1578_v48 = vadd.f32 0.014752088, %v1577_v26  ;;  %v3425_v59 = vmin.f32 %v1602_v56, 16.0  ;;  %v1506_v36 = vmul.f32 %v3414_v50, %v3380_v16  ;;  %v1567_v39 = vadd.f32 0.0036580483, %v1566_v54 }
 0x1b7   : > { %v1229_v25 = vpop.f32.mrf.mxu1  ;;  %v1542_v9 = vadd.f32 0.4994258, %v1541_v38  ;;  %v1531_v63 = vadd.f32 0.18741608, %v1530_v3  ;;  %v3475_v15 = vmul.f32 %v1493_v52, %v3326_v41  ;;  %v1478_v17 = vsel %vm3449_vm12, %v1477_v24, %v1473_v14 }
 0x1b8   : > { %v3412_v33 = vadd.f32 %v3182_v8, %v1229_v25  ;;  %v1579_v22 = vmul.f32 %v1578_v48, %v3375_v57  ;;  %v1604_v0 = vmul.f32 2.1237322e-06, %v3425_v59  ;;  %v1615_v11 = vmul.f32 3.8918573e-05, %v3425_v59 }
 0x1b9   : > { %v1543_v53 = vmul.f32 %v1542_v9, %v3362_v6  ;;  %v1507_v32 = vsub.f32 1.0, %v1506_v36  ;;  %v1568_v49 = vmul.f32 %v1567_v39, %v3375_v57  ;;  %v1532_v26 = vmul.f32 %v1531_v63, %v3362_v6 }
 0x1ba   : > { %v3431_v58 = vmul.f32 0.70710677, %v3412_v33  ;;  %v1580_v35 = vadd.f32 0.112945676, %v1579_v22  ;;  %v1605_v18 = vadd.f32 0.00028619796, %v1604_v0  ;;  %vm1511_vm1 = vweird.f32 %v3414_v50 }
 0x1bb   : > { %v3444_v30 = vadd.f32 1.0, %v1543_v53  ;;  %v1616_v5 = vadd.f32 0.001143296, %v1615_v11  ;;  %v1508_v37 = vmul.f32 %v3414_v50, %v1507_v32  ;;  %vm3486_vm15 = vcmp.eq.f32.partialorder %v1514_v62, 8.507059e+37  ;;  %vm3510_vm2 = vmor %vm1510_vm14, %vm1511_vm1 }
 0x1bc   : > { %v1581_v46 = vmul.f32 %v1580_v35, %v3375_v57  ;;  %v1642_v19 = vmul.f32 %v3431_v58, %v3431_v58  ;;  %v1606_v13 = vmul.f32 %v1605_v18, %v3425_v59  ;;  %v1569_v41 = vadd.f32 0.05243302, %v1568_v49 }
 0x1bd   : > { %2310 = vrcp.f32 %v3444_v30  ;;  %v1617_v60 = vmul.f32 %v1616_v5, %v3425_v59  ;;  %v1517_v54 = vor.u32 1.1754944e-38, %v1516_v1  ;;  %v1533_v22 = vadd.f32 1.1283791, %v1532_v26 }
 0x1be   : > { %v1582_v4 = vadd.f32 0.4994258, %v1581_v46  ;;  %v3447_v7 = vmin.f32 %v1642_v19, 16.0  ;;  %v1607_v10 = vadd.f32 0.0036580483, %v1606_v13  ;;  %v1509_v9 = vadd.f32 %v3414_v50, %v1508_v37 }
 0x1bf   : > { %v1232_v31 = vpop.f32.mrf.mxu1  ;;  %v1618_v51 = vadd.f32 0.014752088, %v1617_v60  ;;  %v1479_v35 = vmul.f32 %v1478_v17, %v3417_v21  ;;  %v1570_v39 = vmul.f32 %v1569_v41, %v3375_v57  ;;  %v3515_v21 = vmul.f32 %v1533_v22, %v3350_v40 }
 0x1c0   : > { %v1583_v28 = vmul.f32 %v1582_v4, %v3375_v57  ;;  %v1644_v48 = vmul.f32 2.1237322e-06, %v3447_v7  ;;  %v1608_v56 = vmul.f32 %v1607_v10, %v3425_v59  ;;  %v1655_v6 = vmul.f32 3.8918573e-05, %v3447_v7 }
 0x1c1   : > { %v3492_v38 = vadd.f32 %v3182_v8, %v1232_v31  ;;  %v1619_v55 = vmul.f32 %v1618_v51, %v3425_v59  ;;  %v3518_v61 = vmul.f32 0.5, %v3388_v47  ;;  %v1513_v4 = vsel %vm3510_vm2, %v3414_v50, %v1509_v9 }
 0x1c2   : > { %v3478_v25 = vadd.f32 1.0, %v1583_v28  ;;  %v1645_v3 = vadd.f32 0.00028619796, %v1644_v48  ;;  %v1656_v36 = vadd.f32 0.001143296, %v1655_v6  ;;  %v2209_v20 = vclamps-f32 %v1479_v35, 1.0 }
 0x1c3   : > { %v3494_v44 = vpop.eup %2310  ;;  %v1609_v0 = vadd.f32 0.05243302, %v1608_v56  ;;  %v1620_v52 = vadd.f32 0.112945676, %v1619_v55  ;;  %v3506_v18 = vmul.f32 0.70710677, %v3492_v38  ;;  %vm1550_vm3 = vweird.f32 %v3444_v30 }
 0x1c4   : > { %2312 = vrcp.f32 %v3478_v25  ;;  %v1546_v43 = vmul.f32 %v3494_v44, %v3444_v30  ;;  %v1646_v53 = vmul.f32 %v1645_v3, %v3447_v7  ;;  %v1657_v46 = vmul.f32 %v1656_v36, %v3447_v7 }
 0x1c5   : > { %v1621_v63 = vmul.f32 %v1620_v52, %v3425_v59  ;;  %v1682_v23 = vmul.f32 %v3506_v18, %v3506_v18  ;;  %v1610_v47 = vmul.f32 %v1609_v0, %v3425_v59  ;;  %v1571_v62 = vadd.f32 0.18741608, %v1570_v39 }
 0x1c6   : > { %v1547_v11 = vsub.f32 1.0, %v1546_v43  ;;  %v1647_v5 = vadd.f32 0.0036580483, %v1646_v53  ;;  %v1658_v13 = vadd.f32 0.014752088, %v1657_v46  ;;  %v1518_v50 = vsel %vm3486_vm15, %v1517_v54, %v1513_v4 }
 0x1c7   : > { %v1622_v24 = vadd.f32 0.4994258, %v1621_v63  ;;  %v3534_v49 = vmin.f32 %v1682_v23, 16.0  ;;  %v1556_v28 = vand.u32 2147483648, %v3444_v30  ;;  %vm1551_vm4 = vweird.f32 %v3494_v44  ;;  %v1235_v37 = vpop.f32.mrf.mxu1 }
 0x1c8   : > { %v1548_v16 = vmul.f32 %v3494_v44, %v1547_v11  ;;  %v1659_v1 = vmul.f32 %v1658_v13, %v3447_v7  ;;  %v1648_v26 = vmul.f32 %v1647_v5, %v3447_v7  ;;  %v1611_v56 = vadd.f32 0.18741608, %v1610_v47  ;;  %vm3552_vm5 = vmor %vm1550_vm3, %vm1551_vm4 }
 0x1c9   : > { %v1623_v14 = vmul.f32 %v1622_v24, %v3425_v59  ;;  %v1684_v31 = vmul.f32 2.1237322e-06, %v3534_v49  ;;  %v1926_v6 = vadd.f32 1.0, %v2209_v20  ;;  %v1554_v17 = vand.u32 2147483647, %v3444_v30 }
 0x1ca   : > { %v3521_v32 = vpop.eup %2312  ;;  %v1549_v10 = vadd.f32 %v3494_v44, %v1548_v16  ;;  %v1660_v60 = vadd.f32 0.112945676, %v1659_v1  ;;  %v1572_v2 = vmul.f32 %v1571_v62, %v3375_v57  ;;  %v1519_v22 = vmul.f32 %v1518_v50, %v3475_v15 }
 0x1cb   : > { %v1586_v40 = vmul.f32 %v3521_v32, %v3478_v25  ;;  %v3544_v51 = vadd.f32 1.0, %v1623_v14  ;;  %v1685_v54 = vadd.f32 0.00028619796, %v1684_v31  ;;  %v1557_v3 = vor.u32 1.1754944e-38, %v1556_v28 }
 0x1cc   : > { %v1661_v41 = vmul.f32 %v1660_v60, %v3447_v7  ;;  %v1649_v9 = vadd.f32 0.05243302, %v1648_v26  ;;  %v3557_v43 = vadd.f32 %v3182_v8, %v1235_v37  ;;  %v1553_v57 = vsel %vm3552_vm5, %v3494_v44, %v1549_v10 }
 0x1cd   : > { %v1587_v48 = vsub.f32 1.0, %v1586_v40  ;;  %2314 = vrcp.f32 %v3544_v51  ;;  %v1686_v15 = vmul.f32 %v1685_v54, %v3534_v49  ;;  %v1612_v35 = vmul.f32 %v1611_v56, %v3425_v59 }
 0x1ce   : > { %v1662_v36 = vadd.f32 0.4994258, %v1661_v41  ;;  %v1695_v0 = vmul.f32 3.8918573e-05, %v3534_v49  ;;  %v1942_v52 = vmul.f32 %v1926_v6, %v3396_v12  ;;  %vm1555_vm6 = vcmp.eq.f32.partialorder %v1554_v17, 8.507059e+37 }
 0x1cf   : > { %v1588_v30 = vmul.f32 %v3521_v32, %v1587_v48  ;;  %v1573_v53 = vadd.f32 1.1283791, %v1572_v2  ;;  %v1594_v11 = vand.u32 2147483647, %v3478_v25  ;;  %v1558_v44 = vsel %vm1555_vm6, %v1557_v3, %v1553_v57 }
 0x1d0   : > { %v1663_v39 = vmul.f32 %v1662_v36, %v3447_v7  ;;  %v1650_v46 = vmul.f32 %v1649_v9, %v3447_v7  ;;  %v1687_v19 = vadd.f32 0.0036580483, %v1686_v15  ;;  %v1696_v63 = vadd.f32 0.001143296, %v1695_v0  ;;  %2225 = vmatmul.msk.f32.gmra.mxu2 %vm306_vm0, %v1942_v52  ;;  %v1238_v5 = vpop.f32.mrf.mxu3 }
 0x1d1   : > { %v1596_v59 = vand.u32 2147483648, %v3478_v25  ;;  %v3576_v12 = vmul.f32 0.70710677, %v3557_v43  ;;  %v2210_v16 = vclamps-f32 %v1519_v22, 1.0  ;;  %v1589_v13 = vadd.f32 %v3521_v32, %v1588_v30 }
 0x1d2   : > { %v3573_v4 = vadd.f32 1.0, %v1663_v39  ;;  %vm1591_vm7 = vweird.f32 %v3521_v32  ;;  %v1613_v23 = vadd.f32 1.1283791, %v1612_v35  ;;  %v1697_v40 = vmul.f32 %v1696_v63, %v3534_v49 }
 0x1d3   : > { %v3581_v47 = vpop.eup %2314  ;;  %v1559_v24 = vmul.f32 %v1558_v44, %v3515_v21  ;;  %v1574_v20 = vmul.f32 %v1573_v53, %v3367_v45  ;;  %v3586_v62 = vmul.f32 0.5, %v3412_v33  ;;  %vm1590_vm8 = vweird.f32 %v3478_v25 }
 0x1d4   : > { %2316 = vrcp.f32 %v3573_v4  ;;  %v1651_v1 = vadd.f32 0.18741608, %v1650_v46  ;;  %v1688_v50 = vmul.f32 %v1687_v19, %v3534_v49  ;;  %v3592_v28 = vadd.f32 %v3182_v8, %v1238_v5  ;;  %vm3594_vm9 = vmor %vm1590_vm8, %vm1591_vm7  ;;  %v3644_v19 = vld [vmem:[%s3938_s4] ss:$0 sm:$0xff] }
 0x1d5   : > { %vm3598_vm10 = vcmp.eq.f32.partialorder %v1594_v11, 8.507059e+37  ;;  %v1698_v45 = vadd.f32 0.014752088, %v1697_v40  ;;  %v1722_v33 = vmul.f32 %v3576_v12, %v3576_v12  ;;  %v1927_v26 = vadd.f32 1.0, %v2210_v16 }
 0x1d6   : > { %v1593_v25 = vsel %vm3594_vm9, %v3521_v32, %v1589_v13  ;;  %v1597_v10 = vor.u32 1.1754944e-38, %v1596_v59  ;;  %v3608_v8 = vmul.f32 %v1613_v23, %v3404_v34  ;;  %v1626_v60 = vmul.f32 %v3581_v47, %v3544_v51 }
 0x1d7   : > { %v1699_v31 = vmul.f32 %v1698_v45, %v3534_v49  ;;  %v3613_v37 = vmin.f32 %v1722_v33, 16.0  ;;  %v1943_v48 = vmul.f32 %v1927_v26, %v3399_v42  ;;  %v2211_v56 = vclamps-f32 %v1559_v24, 1.0 }
 0x1d8   : > { %v1634_v6 = vand.u32 2147483647, %v3544_v51  ;;  %v1652_v17 = vmul.f32 %v1651_v1, %v3447_v7  ;;  %v1689_v2 = vadd.f32 0.05243302, %v1688_v50  ;;  %v3619_v32 = vmul.f32 0.70710677, %v3592_v28  ;;  %v1241_v57 = vpop.f32.mrf.mxu3 }
 0x1d9   : > { %v1598_v41 = vsel %vm3598_vm10, %v1597_v10, %v1593_v25  ;;  %v1700_v54 = vadd.f32 0.112945676, %v1699_v31  ;;  %v1724_v22 = vmul.f32 2.1237322e-06, %v3613_v37  ;;  %v1735_v55 = vmul.f32 3.8918573e-05, %v3613_v37  ;;  %2226 = vmatmul.msk.f32.gmra.mxu2 %vm306_vm0, %v1943_v48 }
 0x1da   : > { %v3621_v34 = vpop.eup %2316  ;;  %v1627_v42 = vsub.f32 1.0, %v1626_v60  ;;  %v1636_v3 = vand.u32 2147483648, %v3544_v51  ;;  %v1762_v9 = vmul.f32 %v3619_v32, %v3619_v32  ;;  %v1928_v35 = vadd.f32 1.0, %v2211_v56 }
 0x1db   : > { %v1666_v7 = vmul.f32 %v3621_v34, %v3573_v4  ;;  %v1701_v36 = vmul.f32 %v1700_v54, %v3534_v49  ;;  %v1725_v15 = vadd.f32 0.00028619796, %v1724_v22  ;;  %v1736_v30 = vadd.f32 0.001143296, %v1735_v55 }
 0x1dc   : > { %v1599_v0 = vmul.f32 %v1598_v41, %v1574_v20  ;;  %v3634_v52 = vadd.f32 1.1283791, %v1652_v17  ;;  %v1690_v53 = vmul.f32 %v1689_v2, %v3534_v49  ;;  %v3637_v11 = vmin.f32 %v1762_v9, 16.0 }
 0x1dd   : > { %v1702_v39 = vadd.f32 0.4994258, %v1701_v36  ;;  %v1726_v44 = vmul.f32 %v1725_v15, %v3613_v37  ;;  %v1737_v46 = vmul.f32 %v1736_v30, %v3613_v37  ;;  %v3647_v63 = vadd.f32 %v3644_v19, %v1241_v57 }
 0x1de   : > { %v1628_v5 = vmul.f32 %v3581_v47, %v1627_v42  ;;  %v1667_v59 = vsub.f32 1.0, %v1666_v7  ;;  %v1764_v16 = vmul.f32 2.1237322e-06, %v3637_v11  ;;  %v1775_v13 = vmul.f32 3.8918573e-05, %v3637_v11 }
 0x1df   : > { %v1703_v23 = vmul.f32 %v1702_v39, %v3534_v49  ;;  %v1727_v40 = vadd.f32 0.0036580483, %v1726_v44  ;;  %v1738_v24 = vadd.f32 0.014752088, %v1737_v46  ;;  %v1944_v20 = vmul.f32 %v1928_v35, %v3407_v29 }
 0x1e0   : > { %vm1630_vm11 = vweird.f32 %v3544_v51  ;;  %v1674_v1 = vand.u32 2147483647, %v3573_v4  ;;  %v1765_v50 = vadd.f32 0.00028619796, %v1764_v16  ;;  %v1776_v14 = vadd.f32 0.001143296, %v1775_v13 }
 0x1e1   : > { %vm3656_vm12 = vcmp.eq.f32.partialorder %v1634_v6, 8.507059e+37  ;;  %v3660_v45 = vadd.f32 1.0, %v1703_v23  ;;  %v1728_v33 = vmul.f32 %v1727_v40, %v3613_v37  ;;  %v1739_v26 = vmul.f32 %v1738_v24, %v3613_v37  ;;  %2227 = vmatmul.msk.f32.gmra.mxu2 %vm306_vm0, %v1944_v20 }
 0x1e2   : > { %v3666_v29 = vmul.f32 0.70710677, %v3647_v63  ;;  %v1691_v25 = vadd.f32 0.18741608, %v1690_v53  ;;  %v1766_v10 = vmul.f32 %v1765_v50, %v3637_v11  ;;  %v1777_v60 = vmul.f32 %v1776_v14, %v3637_v11 }
 0x1e3   : > { %v2212_v31 = vclamps-f32 %v1599_v0, 1.0  ;;  %v1629_v48 = vadd.f32 %v3581_v47, %v1628_v5  ;;  %vm1631_vm13 = vweird.f32 %v3581_v47  ;;  %v1668_v56 = vmul.f32 %v3621_v34, %v1667_v59  ;;  %v1244_v0 = vpop.f32.mrf.mxu3 }
 0x1e4   : > { %2318 = vrcp.f32 %v3660_v45  ;;  %v1637_v6 = vor.u32 1.1754944e-38, %v1636_v3  ;;  %v1676_v17 = vand.u32 2147483648, %v3573_v4  ;;  %v1729_v2 = vadd.f32 0.05243302, %v1728_v33  ;;  %vm3684_vm1 = vmor %vm1630_vm11, %vm1631_vm13 }
 0x1e5   : > { %v1740_v41 = vadd.f32 0.112945676, %v1739_v26  ;;  %vm1671_vm14 = vweird.f32 %v3621_v34  ;;  %vm3676_vm15 = vcmp.eq.f32.partialorder %v1674_v1, 8.507059e+37  ;;  %v1767_v22 = vadd.f32 0.0036580483, %v1766_v10 }
 0x1e6   : > { %v1778_v55 = vadd.f32 0.014752088, %v1777_v60  ;;  %v1802_v42 = vmul.f32 %v3666_v29, %v3666_v29  ;;  %v1692_v3 = vmul.f32 %v1691_v25, %v3534_v49  ;;  %v1730_v9 = vmul.f32 %v1729_v2, %v3613_v37 }
 0x1e7   : > { %v1741_v57 = vmul.f32 %v1740_v41, %v3613_v37  ;;  %v1929_v36 = vadd.f32 1.0, %v2212_v31  ;;  %v1633_v15 = vsel %vm3684_vm1, %v3581_v47, %v1629_v48  ;;  %v1669_v30 = vadd.f32 %v3621_v34, %v1668_v56 }
 0x1e8   : > { %v1779_v35 = vmul.f32 %v1778_v55, %v3637_v11  ;;  %v3696_v51 = vmin.f32 %v1802_v42, 16.0  ;;  %v1677_v53 = vor.u32 1.1754944e-38, %v1676_v17  ;;  %v1768_v49 = vmul.f32 %v1767_v22, %v3637_v11 }
 0x1e9   : > { %v1742_v39 = vadd.f32 0.4994258, %v1741_v57  ;;  %v1945_v44 = vmul.f32 %v1929_v36, %v3455_v27  ;;  %vm1670_vm2 = vweird.f32 %v3573_v4  ;;  %v1731_v5 = vadd.f32 0.18741608, %v1730_v9 }
 0x1ea   : > { %v3700_v46 = vpop.eup %2318  ;;  %v1780_v59 = vadd.f32 0.112945676, %v1779_v35  ;;  %v1804_v47 = vmul.f32 2.1237322e-06, %v3696_v51  ;;  %v1638_v16 = vsel %vm3656_vm12, %v1637_v6, %v1633_v15  ;;  %vm3708_vm3 = vmor %vm1670_vm2, %vm1671_vm14  ;;  %v1693_v23 = vadd.f32 1.1283791, %v1692_v3 }
 0x1eb   : > { %v1706_v27 = vmul.f32 %v3700_v46, %v3660_v45  ;;  %v1743_v40 = vmul.f32 %v1742_v39, %v3613_v37  ;;  %2228 = vmatmul.msk.f32.gmra.mxu2 %vm306_vm0, %v1945_v44  ;;  %v1673_v4 = vsel %vm3708_vm3, %v3621_v34, %v1669_v30  ;;  %v1815_v1 = vmul.f32 3.8918573e-05, %v3696_v51  ;;  %v1247_v55 = vpop.f32.mrf.mxu3 }
 0x1ec   : > { %v1781_v24 = vmul.f32 %v1780_v59, %v3637_v11  ;;  %v1805_v20 = vadd.f32 0.00028619796, %v1804_v47  ;;  %v1769_v21 = vadd.f32 0.05243302, %v1768_v49  ;;  %v3724_v33 = vadd.f32 %v3644_v19, %v1244_v0 }
 0x1ed   : > { %v1707_v50 = vsub.f32 1.0, %v1706_v27  ;;  %v3721_v14 = vadd.f32 1.0, %v1743_v40  ;;  %v1732_v26 = vmul.f32 %v1731_v5, %v3613_v37  ;;  %v1816_v60 = vadd.f32 0.001143296, %v1815_v1 }
 0x1ee   : > { %v1782_v25 = vadd.f32 0.4994258, %v1781_v24  ;;  %v1806_v10 = vmul.f32 %v1805_v20, %v3696_v51  ;;  %v1639_v34 = vmul.f32 %v1638_v16, %v3608_v8  ;;  %v1654_v31 = vmul.f32 %v3634_v52, %v3431_v58 }
 0x1ef   : > { %v1678_v48 = vsel %vm3676_vm15, %v1677_v53, %v1673_v4  ;;  %2320 = vrcp.f32 %v3721_v14  ;;  %v1708_v56 = vmul.f32 %v3700_v46, %v1707_v50  ;;  %v1714_v6 = vand.u32 2147483647, %v3660_v45 }
 0x1f0   : > { %v1716_v37 = vand.u32 2147483648, %v3660_v45  ;;  %v1783_v17 = vmul.f32 %v1782_v25, %v3637_v11  ;;  %v1770_v2 = vmul.f32 %v1769_v21, %v3637_v11  ;;  %v1807_v41 = vadd.f32 0.0036580483, %v1806_v10 }
 0x1f1   : > { %v1817_v8 = vmul.f32 %v1816_v60, %v3696_v51  ;;  %v3741_v58 = vmul.f32 0.70710677, %v3724_v33  ;;  %v1694_v52 = vmul.f32 %v1693_v23, %v3506_v18  ;;  %vm1710_vm4 = vweird.f32 %v3660_v45 }
 0x1f2   : > { %v1733_v54 = vadd.f32 1.1283791, %v1732_v26  ;;  %v3745_v22 = vadd.f32 1.0, %v1783_v17  ;;  %v1808_v42 = vmul.f32 %v1807_v41, %v3696_v51  ;;  %v2213_v9 = vclamps-f32 %v1639_v34, 1.0 }
 0x1f3   : > { %v1818_v7 = vadd.f32 0.014752088, %v1817_v8  ;;  %v1842_v3 = vmul.f32 %v3741_v58, %v3741_v58  ;;  %v1679_v57 = vmul.f32 %v1678_v48, %v1654_v31  ;;  %v1709_v36 = vadd.f32 %v3700_v46, %v1708_v56 }
 0x1f4   : > { %vm1711_vm5 = vweird.f32 %v3700_v46  ;;  %2322 = vrcp.f32 %v3745_v22  ;;  %vm3753_vm6 = vcmp.eq.f32.partialorder %v1714_v6, 8.507059e+37  ;;  %v1717_v30 = vor.u32 1.1754944e-38, %v1716_v37 }
 0x1f5   : > { %v2321_v18 = vpop.eup %2320  ;;  %v1771_v35 = vadd.f32 0.18741608, %v1770_v2  ;;  %v3758_v0 = vadd.f32 %v3644_v19, %v1247_v55  ;;  %v1734_v53 = vmul.f32 %v1733_v54, %v3576_v12  ;;  %v1819_v49 = vmul.f32 %v1818_v7, %v3696_v51  ;;  %vm3767_vm7 = vmor %vm1710_vm4, %vm1711_vm5 }
 0x1f6   : > { %v1746_v39 = vmul.f32 %v2321_v18, %v3721_v14  ;;  %v3763_v44 = vmin.f32 %v1842_v3, 16.0  ;;  %vm1750_vm8 = vweird.f32 %v3721_v14  ;;  %v1754_v59 = vand.u32 2147483647, %v3721_v14 }
 0x1f7   : > { %v1809_v19 = vadd.f32 0.05243302, %v1808_v42  ;;  %v1930_v47 = vadd.f32 1.0, %v2213_v9  ;;  %v1713_v12 = vsel %vm3767_vm7, %v3700_v46, %v1709_v36  ;;  %v1820_v13 = vadd.f32 0.112945676, %v1819_v49 }
 0x1f8   : > { %v1747_v16 = vsub.f32 1.0, %v1746_v39  ;;  %v1844_v23 = vmul.f32 2.1237322e-06, %v3763_v44  ;;  %vm1751_vm9 = vweird.f32 %v2321_v18  ;;  %v1855_v45 = vmul.f32 3.8918573e-05, %v3763_v44 }
 0x1f9   : > { %v1946_v27 = vmul.f32 %v1930_v47, %v3518_v61  ;;  %v3780_v40 = vmul.f32 0.70710677, %v3758_v0  ;;  %v1821_v20 = vmul.f32 %v1820_v13, %v3696_v51  ;;  %v2214_v50 = vclamps-f32 %v1679_v57, 1.0  ;;  %vm3798_vm10 = vmor %vm1750_vm8, %vm1751_vm9 }
 0x1fa   : > { %v3782_v4 = vpop.eup %2322  ;;  %v1748_v24 = vmul.f32 %v2321_v18, %v1747_v16  ;;  %v1845_v1 = vadd.f32 0.00028619796, %v1844_v23  ;;  %v1756_v46 = vand.u32 2147483648, %v3721_v14  ;;  %v1772_v21 = vmul.f32 %v1771_v35, %v3637_v11 }
 0x1fb   : > { %v1786_v26 = vmul.f32 %v3782_v4, %v3745_v22  ;;  %v1856_v25 = vadd.f32 0.001143296, %v1855_v45  ;;  %2229 = vmatmul.msk.f32.gmra.mxu2 %vm306_vm0, %v1946_v27  ;;  %v1822_v10 = vadd.f32 0.4994258, %v1821_v20  ;;  %v1882_v34 = vmul.f32 %v3780_v40, %v3780_v40 }
 0x1fc   : > { %v1749_v61 = vadd.f32 %v2321_v18, %v1748_v24  ;;  %v1846_v60 = vmul.f32 %v1845_v1, %v3763_v44  ;;  %v1718_v31 = vsel %vm3753_vm6, %v1717_v30, %v1713_v12  ;;  %v1931_v6 = vadd.f32 1.0, %v2214_v50 }
 0x1fd   : > { %v1787_v48 = vsub.f32 1.0, %v1786_v26  ;;  %v1857_v56 = vmul.f32 %v1856_v25, %v3763_v44  ;;  %v1810_v17 = vmul.f32 %v1809_v19, %v3696_v51  ;;  %v1823_v2 = vmul.f32 %v1822_v10, %v3696_v51 }
 0x1fe   : > { %v1753_v37 = vsel %vm3798_vm10, %v2321_v18, %v1749_v61  ;;  %v3807_v41 = vmin.f32 %v1882_v34, 16.0  ;;  %v1757_v8 = vor.u32 1.1754944e-38, %v1756_v46  ;;  %v1847_v54 = vadd.f32 0.0036580483, %v1846_v60 }
 0x1ff   : > { %v1788_v14 = vmul.f32 %v3782_v4, %v1787_v48  ;;  %v1858_v55 = vadd.f32 0.014752088, %v1857_v56  ;;  %v1719_v42 = vmul.f32 %v1718_v31, %v1694_v52  ;;  %vm1755_vm11 = vcmp.eq.f32.partialorder %v1754_v59, 8.507059e+37 }
 0x200   : > { %v3810_v7 = vadd.f32 1.0, %v1823_v2  ;;  %v1884_v3 = vmul.f32 2.1237322e-06, %v3807_v41  ;;  %v1758_v9 = vsel %vm1755_vm11, %v1757_v8, %v1753_v37  ;;  %v1895_v36 = vmul.f32 3.8918573e-05, %v3807_v41 }
 0x201   : > { %v1859_v57 = vmul.f32 %v1858_v55, %v3763_v44  ;;  %v1947_v18 = vmul.f32 %v1931_v6, %v3586_v62  ;;  %v1789_v15 = vadd.f32 %v3782_v4, %v1788_v14  ;;  %vm1791_vm12 = vweird.f32 %v3782_v4 }
 0x202   : > { %v1811_v30 = vadd.f32 0.18741608, %v1810_v17  ;;  %2324 = vrcp.f32 %v3810_v7  ;;  %v1796_v52 = vand.u32 2147483648, %v3745_v22  ;;  %v1848_v35 = vmul.f32 %v1847_v54, %v3763_v44 }
 0x203   : > { %v1860_v39 = vadd.f32 0.112945676, %v1859_v57  ;;  %v1885_v49 = vadd.f32 0.00028619796, %v1884_v3  ;;  %2230 = vmatmul.msk.f32.gmra.mxu2 %vm306_vm0, %v1947_v18  ;;  %v1759_v5 = vmul.f32 %v1758_v9, %v1734_v53  ;;  %vm1790_vm13 = vweird.f32 %v3745_v22  ;;  %v3855_v9 = vld [vmem:[%s3940_s6] ss:$0 sm:$0xff]  ;;  %v2027_v57 = vpop.f32.mrf.mxu2 }
 0x204   : > { %v1794_v62 = vand.u32 2147483647, %v3745_v22  ;;  %v1896_v59 = vadd.f32 0.001143296, %v1895_v36  ;;  %v1773_v19 = vadd.f32 1.1283791, %v1772_v21  ;;  %vm3824_vm14 = vmor %vm1790_vm13, %vm1791_vm12  ;;  %v1812_v53 = vmul.f32 %v1811_v30, %v3696_v51 }
 0x205   : > { %v1861_v12 = vmul.f32 %v1860_v39, %v3763_v44  ;;  %v1886_v16 = vmul.f32 %v1885_v49, %v3807_v41  ;;  %v1793_v13 = vsel %vm3824_vm14, %v3782_v4, %v1789_v15  ;;  %v2215_v45 = vclamps-f32 %v1719_v42, 1.0 }
 0x206   : > { %v1897_v23 = vmul.f32 %v1896_v59, %v3807_v41  ;;  %v1260_v22 = vmul.f32 0.5, %v3492_v38  ;;  %v1797_v27 = vor.u32 1.1754944e-38, %v1796_v52  ;;  %v1849_v24 = vadd.f32 0.05243302, %v1848_v35 }
 0x207   : > { %v1862_v20 = vadd.f32 0.4994258, %v1861_v12  ;;  %vm1795_vm15 = vcmp.eq.f32.partialorder %v1794_v62, 8.507059e+37  ;;  %v1932_v46 = vadd.f32 1.0, %v2215_v45  ;;  %v2216_v21 = vclamps-f32 %v1759_v5, 1.0 }
 0x208   : > { %v2325_v1 = vpop.eup %2324  ;;  %v1898_v50 = vadd.f32 0.014752088, %v1897_v23  ;;  %v1798_v26 = vsel %vm1795_vm15, %v1797_v27, %v1793_v13  ;;  %v1887_v61 = vadd.f32 0.0036580483, %v1886_v16  ;;  %v1774_v51 = vmul.f32 %v1773_v19, %v3619_v32 }
 0x209   : > { %v1826_v25 = vmul.f32 %v2325_v1, %v3810_v7  ;;  %v1863_v4 = vmul.f32 %v1862_v20, %v3763_v44  ;;  %v1813_v10 = vadd.f32 1.1283791, %v1812_v53  ;;  %v1948_v38 = vmul.f32 %v1932_v46, %v1260_v22 }
 0x20a   : > { %v1899_v60 = vmul.f32 %v1898_v50, %v3807_v41  ;;  %v1836_v31 = vand.u32 2147483648, %v3810_v7  ;;  %v1850_v11 = vmul.f32 %v1849_v24, %v3763_v44  ;;  %v1799_v56 = vmul.f32 %v1798_v26, %v1774_v51 }
 0x20b   : > { %v1827_v34 = vsub.f32 1.0, %v1826_v25  ;;  %v3842_v48 = vadd.f32 1.0, %v1863_v4  ;;  %v1834_v6 = vand.u32 2147483647, %v3810_v7  ;;  %2231 = vmatmul.msk.f32.gmra.mxu2 %vm306_vm0, %v1948_v38  ;;  %v1933_v17 = vadd.f32 1.0, %v2216_v21  ;;  %v2030_v22 = vpop.f32.mrf.mxu2 }
 0x20c   : > { %v1900_v37 = vadd.f32 0.112945676, %v1899_v60  ;;  %vm1831_vm1 = vweird.f32 %v2325_v1  ;;  %v1888_v2 = vmul.f32 %v1887_v61, %v3807_v41  ;;  %v1261_v8 = vmul.f32 0.5, %v3557_v43 }
 0x20d   : > { %v1828_v32 = vmul.f32 %v2325_v1, %v1827_v34  ;;  %2326 = vrcp.f32 %v3842_v48  ;;  %v1814_v14 = vmul.f32 %v1813_v10, %v3666_v29  ;;  %vm1830_vm2 = vweird.f32 %v3810_v7 }
 0x20e   : > { %v1901_v54 = vmul.f32 %v1900_v37, %v3807_v41  ;;  %v1837_v42 = vor.u32 1.1754944e-38, %v1836_v31  ;;  %v1851_v3 = vadd.f32 0.18741608, %v1850_v11  ;;  %vm1832_vm3 = vmor %vm1830_vm2, %vm1831_vm1  ;;  %v1949_v29 = vmul.f32 %v1933_v17, %v1261_v8 }
 0x20f   : > { %v1829_v55 = vadd.f32 %v2325_v1, %v1828_v32  ;;  %v2217_v36 = vclamps-f32 %v1799_v56, 1.0  ;;  %vm2075_vm4 = vcmask 130048   ;;  %vm1835_vm5 = vcmp.eq.f32.partialorder %v1834_v6, 8.507059e+37 }
 0x210   : > { %v1902_v43 = vadd.f32 0.4994258, %v1901_v54  ;;  %v1889_v18 = vadd.f32 0.05243302, %v1888_v2  ;;  %v2028_v15 = vadd.f32 %v3855_v9, %v2027_v57  ;;  %v1852_v49 = vmul.f32 %v1851_v3, %v3763_v44 }
 0x211   : > { %v1833_v7 = vsel %vm1832_vm3, %v2325_v1, %v1829_v55  ;;  %v1934_v59 = vadd.f32 1.0, %v2217_v36  ;;  %v1262_v12 = vmul.f32 0.5, %v3592_v28  ;;  %v1263_v16 = vmul.f32 0.5, %v3647_v63 }
 0x212   : > { %v1838_v30 = vsel %vm1835_vm5, %v1837_v42, %v1833_v7  ;;  %v1903_v52 = vmul.f32 %v1902_v43, %v3807_v41  ;;  %2076 = vst.msk [vmem:[%s3862_s9] sm:$0xff] %vm2075_vm4, %v2028_v15  ;;  %v1890_v47 = vmul.f32 %v1889_v18, %v3807_v41  ;;  %v1853_v44 = vadd.f32 1.1283791, %v1852_v49 }
 0x213   : > { %v2327_v35 = vpop.eup %2326  ;;  %v1839_v39 = vmul.f32 %v1838_v30, %v1814_v14  ;;  %2232 = vmatmul.msk.f32.gmra.mxu2 %vm306_vm0, %v1949_v29  ;;  %v1874_v23 = vand.u32 2147483647, %v3842_v48  ;;  %v1876_v45 = vand.u32 2147483648, %v3842_v48  ;;  %v1950_v24 = vmul.f32 %v1934_v59, %v1262_v12 }
 0x214   : > { %v1866_v5 = vmul.f32 %v2327_v35, %v3842_v48  ;;  %v1904_v62 = vadd.f32 1.0, %v1903_v52  ;;  %vm1871_vm6 = vweird.f32 %v2327_v35  ;;  %v2031_v20 = vadd.f32 %v3855_v9, %v2030_v22 }
 0x215   : > { %v2218_v19 = vclamps-f32 %v1839_v39, 1.0  ;;  %v1891_v50 = vadd.f32 0.18741608, %v1890_v47  ;;  %vm1870_vm7 = vweird.f32 %v3842_v48  ;;  %v1877_v63 = vor.u32 1.1754944e-38, %v1876_v45 }
 0x216   : > { %v1867_v13 = vsub.f32 1.0, %v1866_v5  ;;  %2328 = vrcp.f32 %v1904_v62  ;;  %2077 = vst.msk [vmem:[%s3862_s9 + $0x8] sm:$0xff] %vm2075_vm4, %v2031_v20  ;;  %vm1872_vm8 = vmor %vm1870_vm7, %vm1871_vm6  ;;  %v1854_v21 = vmul.f32 %v1853_v44, %v3741_v58  ;;  %vm1875_vm9 = vcmp.eq.f32.partialorder %v1874_v23, 8.507059e+37 }
 0x217   : > { %v1935_v53 = vadd.f32 1.0, %v2218_v19  ;;  %v1892_v4 = vmul.f32 %v1891_v50, %v3807_v41  ;;  %v1916_v38 = vand.u32 2147483648, %v1904_v62  ;;  %v1914_v58 = vand.u32 2147483647, %v1904_v62 }
 0x218   : > { %v1868_v27 = vmul.f32 %v2327_v35, %v1867_v13  ;;  %v1264_v56 = vmul.f32 0.5, %v3724_v33  ;;  %vm1910_vm11 = vweird.f32 %v1904_v62  ;;  %v1265_v54 = vmul.f32 0.5, %v3758_v0 }
 0x219   : > { %v1951_v1 = vmul.f32 %v1935_v53, %v1263_v16  ;;  %v2033_v60 = vpop.f32.mrf.mxu2  ;;  %v1893_v11 = vadd.f32 1.1283791, %v1892_v4  ;;  %v1917_v41 = vor.u32 1.1754944e-38, %v1916_v38  ;;  %vm1915_vm13 = vcmp.eq.f32.partialorder %v1914_v58, 8.507059e+37 }
 0x21a   : > { %v1869_v28 = vadd.f32 %v2327_v35, %v1868_v27  ;;  %v2034_v31 = vadd.f32 %v3855_v9, %v2033_v60 }
 0x21b   : > { %2234 = vmatmul.msk.f32.vlgmr.msra.gmra.mxu3 %vm306_vm0, %v1951_v1  ;;  %2233 = vmatmul.msk.f32.gmra.mxu2 %vm306_vm0, %v1950_v24  ;;  %v1894_v32 = vmul.f32 %v1893_v11, %v3780_v40 }
 0x21c   : > { %v2329_v46 = vpop.eup %2328  ;;  %v1873_v26 = vsel %vm1872_vm8, %v2327_v35, %v1869_v28  ;;  %2078 = vst.msk [vmem:[%s3862_s9 + $0x10] sm:$0xff] %vm2075_vm4, %v2034_v31 }
 0x21d   : > { %v1878_v25 = vsel %vm1875_vm9, %v1877_v63, %v1873_v26  ;;  %v1906_v61 = vmul.f32 %v2329_v46, %v1904_v62  ;;  %vm1911_vm10 = vweird.f32 %v2329_v46 }
 0x21e   : > { %v1879_v51 = vmul.f32 %v1878_v25, %v1854_v21  ;;  %vm1912_vm12 = vmor %vm1910_vm11, %vm1911_vm10 }
 0x21f   : > { %v1907_v10 = vsub.f32 1.0, %v1906_v61 }
 0x220   : > { %v2219_v34 = vclamps-f32 %v1879_v51, 1.0 }
 0x221   : > { %v1908_v48 = vmul.f32 %v2329_v46, %v1907_v10 }
 0x222   : > { %v1936_v6 = vadd.f32 1.0, %v2219_v34 }
 0x223   : > { %v1909_v37 = vadd.f32 %v2329_v46, %v1908_v48 }
 0x224   : > { %v1952_v17 = vmul.f32 %v1936_v6, %v1264_v56 }
 0x225   : > { %v1913_v2 = vsel %vm1912_vm12, %v2329_v46, %v1909_v37 }
 0x226   : > { %v1918_v8 = vsel %vm1915_vm13, %v1917_v41, %v1913_v2  ;;  %2235 = vmatmul.msk.f32.gmra.mxu3 %vm306_vm0, %v1952_v17 }
 0x227   : > { %v1919_v14 = vmul.f32 %v1918_v8, %v1894_v32 }
 0x229   : > { %v2220_v33 = vclamps-f32 %v1919_v14, 1.0 }
 0x22b   : > { %v1937_v55 = vadd.f32 1.0, %v2220_v33 }
 0x22d   : > { %v1953_v42 = vmul.f32 %v1937_v55, %v1265_v54 }
 0x22f   : > { %2236 = vmatmul.msk.f32.gmra.mxu3 %vm306_vm0, %v1953_v42 }
 0x238   : > { %v2036_v3 = vpop.f32.mrf.mxu2 }
 0x239   : > { %v2037_v40 = vadd.f32 %v3855_v9, %v2036_v3 }
 0x23b   : > { %2079 = vst.msk [vmem:[%s3862_s9 + $0x18] sm:$0xff] %vm2075_vm4, %v2037_v40 }
 0x253   : > { %v2039_v57 = vpop.f32.mrf.mxu2 }
 0x254   : > { %v2040_v43 = vadd.f32 %v3855_v9, %v2039_v57 }
 0x256   : > { %2080 = vst.msk [vmem:[%s3862_s9 + $0x20] sm:$0xff] %vm2075_vm4, %v2040_v43 }
 0x25c   : > { %v2042_v29 = vpop.f32.mrf.mxu2 }
 0x25d   : > { %v2043_v0 = vadd.f32 %v3855_v9, %v2042_v29 }
 0x25f   : > { %2081 = vst.msk [vmem:[%s3862_s9 + $0x28] sm:$0xff] %vm2075_vm4, %v2043_v0 }
 0x264   : > { %v2045_v36 = vpop.f32.mrf.mxu2 }
 0x265   : > { %v2046_v7 = vadd.f32 %v3855_v9, %v2045_v36 }
 0x267   : > { %2082 = vst.msk [vmem:[%s3862_s9 + $0x30] sm:$0xff] %vm2075_vm4, %v2046_v7 }
 0x26e   : > { %v2048_v18 = vpop.f32.mrf.mxu2 }
 0x26f   : > { %v2049_v15 = vadd.f32 %v3855_v9, %v2048_v18 }
 0x271   : > { %2083 = vst.msk [vmem:[%s3862_s9 + $0x38] sm:$0xff] %vm2075_vm4, %v2049_v15 }
 0x27e   : > { %v2051_v30 = vpop.f32.mrf.mxu2 }
 0x27f   : > { %v2052_v52 = vadd.f32 %v3855_v9, %v2051_v30 }
 0x281   : > { %2084 = vst.msk [vmem:[%s3862_s9 + $0x40] sm:$0xff] %vm2075_vm4, %v2052_v52 }
 0x286   : > { %v2054_v35 = vpop.f32.mrf.mxu2 }
 0x287   : > { %v2055_v39 = vadd.f32 %v3855_v9, %v2054_v35 }
 0x289   : > { %2085 = vst.msk [vmem:[%s3862_s9 + $0x48] sm:$0xff] %vm2075_vm4, %v2055_v39 }
 0x28e   : > { %v2057_v49 = vpop.f32.mrf.mxu2 }
 0x28f   : > { %v2058_v5 = vadd.f32 %v3855_v9, %v2057_v49 }
 0x291   : > { %2086 = vst.msk [vmem:[%s3862_s9 + $0x50] sm:$0xff] %vm2075_vm4, %v2058_v5 }
 0x296   : > { %v2060_v62 = vpop.f32.mrf.mxu2 }
 0x297   : > { %v2061_v59 = vadd.f32 %v3855_v9, %v2060_v62 }
 0x299   : > { %2087 = vst.msk [vmem:[%s3862_s9 + $0x58] sm:$0xff] %vm2075_vm4, %v2061_v59 }
 0x29e   : > { %v2066_v19 = vpop.f32.mrf.mxu3  ;;  %v2063_v47 = vpop.f32.mrf.mxu2 }
 0x29f   : > { %v2067_v12 = vadd.f32 %v3855_v9, %v2066_v19  ;;  %v2064_v16 = vadd.f32 %v3855_v9, %v2063_v47 }
 0x2a1   : > { %2089 = vst.msk [vmem:[%s3862_s9 + $0x68] sm:$0xff] %vm2075_vm4, %v2067_v12 }
 0x2a2   : > { %2088 = vst.msk [vmem:[%s3862_s9 + $0x60] sm:$0xff] %vm2075_vm4, %v2064_v16 }
 0x2a9   : > { %v2069_v13 = vpop.f32.mrf.mxu3 }
 0x2aa   : > { %v2070_v53 = vadd.f32 %v3855_v9, %v2069_v13 }
 0x2ac   : > { %2090 = vst.msk [vmem:[%s3862_s9 + $0x70] sm:$0xff] %vm2075_vm4, %v2070_v53 }
 0x2b2   : > { %v2072_v44 = vpop.f32.mrf.mxu3 }
 0x2b3   : > { %v2073_v23 = vadd.f32 %v3855_v9, %v2072_v44 }
 0x2b5   : > { %2091 = vst.msk [vmem:[%s3862_s9 + $0x78] sm:$0xff] %vm2075_vm4, %v2073_v23 }
 0x2b6 PF: > { %s17_s24 = sadd.s32 1, %s2337_s24  }
 0x2b7   : > { %p14_p4 = scmp.ge.s32.totalorder %s17_s24, 4  }
 0x2b9   :  { %16 = sbr.rel (!%p14_p4) target bundleno = 1 (0x1), region = 78 }

// kernel: tpu_custom_call.1
= control target key start
LH: loop header
LB: loop body
LE: loop exit
PB: predicated region body
PF: predicated region fallthrough
CT: control target
= control target key end

     0   :  { %s2379_s24 = smov 0   ;;  %s3934_s0 = inlined_call_operand.vmem [shape: f32[256,32], index: 0, kind: input, shape index: {}]   ;;  %s3935_s1 = inlined_call_operand.vmem [shape: f32[32,64], index: 1, kind: input, shape index: {}]   ;;  %s3936_s2 = inlined_call_operand.vmem [shape: f32[1,64], index: 2, kind: input, shape index: {}]   ;;  %s3937_s3 = inlined_call_operand.vmem [shape: f32[64,32], index: 3, kind: input, shape index: {}]   ;;  %s3938_s4 = inlined_call_operand.vmem [shape: f32[1,32], index: 4, kind: input, shape index: {}]   ;;  %s3939_s5 = inlined_call_operand.vmem [shape: f32[32,16], index: 5, kind: input, shape index: {}]   ;;  %s3940_s6 = inlined_call_operand.vmem [shape: f32[1,16], index: 6, kind: input, shape index: {}]   ;;  %s3941_s7 = inlined_call_operand.vmem [shape: f32[256,16], index: 7, kind: output, shape index: {}]  }
   0x1 LB: > { %s2148_s25 = sadd.s32 4294967295, %s2337_s24   ;;  %p2152_p0 = scmp.ge.s32.totalorder %s2337_s24, 1  ;;  %s2337_s24 = sphi %s2379_s24, %s17_s24  }
   0x2   : > { %p238_p1 = scmp.lt.s32.totalorder %s2337_s24, 3 }
   0x4   : > { %p239_p2 = pnand %p2152_p0, %p238_p1 }
   0x5   : > { %s2153_s30 = sshll.u32 (!%p239_p2), %s2148_s25, 4 }
   0x6   : > { %242 = sbr.rel (%p239_p2) target bundleno = 694 (0x2b6), region = 48  ;;  %p271_p3 = scmp.lt.s32.totalorder (!%p239_p2), %s2153_s30, 31 }
   0xb   : > { %v301_v0 = vld [vmem:[%s3935_s1 + $0x18] sm:$0xff]  ;;  %v300_v1 = vld [vmem:[%s3935_s1 + $0x10] sm:$0xff]  ;;  %v299_v2 = vld [vmem:[%s3935_s1 + $0x8] sm:$0xff]  ;;  %s4005_s30 = smov (!%p271_p3, %s2153_s30), 31  ;;  %vm306_vm0 = vcmask 261120   ;;  %vm1136_vm9 = vcmask 523264  }
   0xc   : > { %367 = vmatpush.msra.mxu0 %v301_v0  ;;  %2239 = vmatpush.msra.mxu3 %v301_v0  ;;  %v298_v3 = vld [vmem:[%s3935_s1] sm:$0xff]  ;;  %s2154_s12 = sshll.u32 %s4005_s30, 3  ;;  %v1131_v36 = vld [vmem:[%s3937_s3 + $0x38] sm:$0xff]  ;;  %v1130_v40 = vld [vmem:[%s3937_s3 + $0x30] sm:$0xff] }
   0xd   : > { %s2407_s15 = scalar_lea.vmem %s3934_s0, %s2154_s12  ;;  %v2444_v20 = vld [vmem:[%s3936_s2] ss:$0 sm:$0xff]  ;;  %1193 = vmatpush.msra.mxu1 %v1131_v36  ;;  %v1129_v46 = vld [vmem:[%s3937_s3 + $0x28] sm:$0xff]  ;;  %v1127_v55 = vld [vmem:[%s3937_s3 + $0x18] sm:$0xff]  ;;  %s3862_s9 = scalar_lea.vmem %s3941_s7, %s2154_s12 }
   0xe   : > { %368 = vmatpush.msra.mxu0 %v300_v1  ;;  %2240 = vmatpush.msra.mxu3 %v300_v1  ;;  %v282_v4 = vld [vmem:[%s2407_s15] sm:$0xff]  ;;  %v283_v5 = vld [vmem:[%s2407_s15 + $0x8] sm:$0xff]  ;;  %v284_v6 = vld [vmem:[%s2407_s15 + $0x10] sm:$0xff] }
   0xf   : > { %v295_v7 = vld [vmem:[%s2407_s15 + $0x68] sm:$0xff]  ;;  %v285_v8 = vld [vmem:[%s2407_s15 + $0x18] sm:$0xff]  ;;  %v296_v9 = vld [vmem:[%s2407_s15 + $0x70] sm:$0xff]  ;;  %1194 = vmatpush.msra.mxu1 %v1130_v40 }
  0x10   : > { %369 = vmatpush.msra.mxu0 %v299_v2  ;;  %2241 = vmatpush.msra.mxu3 %v299_v2  ;;  %v286_v10 = vld [vmem:[%s2407_s15 + $0x20] sm:$0xff]  ;;  %v297_v11 = vld [vmem:[%s2407_s15 + $0x78] sm:$0xff]  ;;  %v287_v12 = vld [vmem:[%s2407_s15 + $0x28] sm:$0xff] }
  0x11   : > { %v288_v13 = vld [vmem:[%s2407_s15 + $0x30] sm:$0xff]  ;;  %v289_v14 = vld [vmem:[%s2407_s15 + $0x38] sm:$0xff]  ;;  %v290_v15 = vld [vmem:[%s2407_s15 + $0x40] sm:$0xff]  ;;  %1195 = vmatpush.msra.mxu1 %v1129_v46 }
  0x12   : > { %370 = vmatpush.msra.mxu0 %v298_v3  ;;  %2242 = vmatpush.msra.mxu3 %v298_v3  ;;  %v291_v16 = vld [vmem:[%s2407_s15 + $0x48] sm:$0xff]  ;;  %v292_v17 = vld [vmem:[%s2407_s15 + $0x50] sm:$0xff]  ;;  %v293_v18 = vld [vmem:[%s2407_s15 + $0x58] sm:$0xff] }
  0x13   : > { %2157 = vmatmul.msk.f32.vlgmr.msra.gmra.mxu0 %vm306_vm0, %v282_v4  ;;  %2170 = vmatmul.msk.f32.vlgmr.msra.gmra.mxu3 %vm306_vm0, %v295_v7  ;;  %v294_v19 = vld [vmem:[%s2407_s15 + $0x60] sm:$0xff]  ;;  %v1126_v0 = vld [vmem:[%s3937_s3 + $0x10] sm:$0xff]  ;;  %v1125_v4 = vld [vmem:[%s3937_s3 + $0x8] sm:$0xff] }
  0x14   : > { %2243 = vmatpush.msrb.mxu3 %v1131_v36  ;;  %v1128_v49 = vld [vmem:[%s3937_s3 + $0x20] sm:$0xff] }
  0x15   : > { %1196 = vmatpush.msra.mxu1 %v1128_v49 }
  0x16   : > { %2244 = vmatpush.msrb.mxu3 %v1130_v40 }
  0x17   : > { %1197 = vmatpush.msra.mxu1 %v1127_v55 }
  0x18   : > { %2245 = vmatpush.msrb.mxu3 %v1129_v46 }
  0x19   : > { %1198 = vmatpush.msra.mxu1 %v1126_v0 }
  0x1a   : > { %2246 = vmatpush.msrb.mxu3 %v1128_v49 }
  0x1b   : > { %2158 = vmatmul.msk.f32.gmra.mxu0 %vm306_vm0, %v283_v5  ;;  %2171 = vmatmul.msk.f32.gmra.mxu3 %vm306_vm0, %v296_v9 }
  0x1c   : > { %2247 = vmatpush.msrb.mxu3 %v1127_v55  ;;  %1199 = vmatpush.msra.mxu1 %v1125_v4 }
  0x1e   : > { %2248 = vmatpush.msrb.mxu3 %v1126_v0 }
  0x20   : > { %2249 = vmatpush.msrb.mxu3 %v1125_v4 }
  0x23   : > { %2159 = vmatmul.msk.f32.gmra.mxu0 %vm306_vm0, %v284_v6  ;;  %2172 = vmatmul.msk.f32.gmra.mxu3 %vm306_vm0, %v297_v11 }
  0x2b   : > { %2160 = vmatmul.msk.f32.gmra.mxu0 %vm306_vm0, %v285_v8 }
  0x33   : > { %2161 = vmatmul.msk.f32.gmra.mxu0 %vm306_vm0, %v286_v10  ;;  %v1124_v10 = vld [vmem:[%s3937_s3] sm:$0xff] }
  0x34   : > { %1200 = vmatpush.msra.mxu1 %v1124_v10  ;;  %2250 = vmatpush.msrb.mxu3 %v1124_v10 }
  0x3b   : > { %2162 = vmatmul.msk.f32.gmra.mxu0 %vm306_vm0, %v287_v12 }
  0x43   : > { %2163 = vmatmul.msk.f32.gmra.mxu0 %vm306_vm0, %v288_v13 }
  0x4b   : > { %2164 = vmatmul.msk.f32.gmra.mxu0 %vm306_vm0, %v289_v14 }
  0x53   : > { %2165 = vmatmul.msk.f32.gmra.mxu0 %vm306_vm0, %v290_v15 }
  0x5b   : > { %2166 = vmatmul.msk.f32.gmra.mxu0 %vm306_vm0, %v291_v16 }
  0x63   : > { %2167 = vmatmul.msk.f32.gmra.mxu0 %vm306_vm0, %v292_v17 }
  0x6b   : > { %2168 = vmatmul.msk.f32.gmra.mxu0 %vm306_vm0, %v293_v18 }
  0x73   : > { %2169 = vmatmul.msk.f32.gmra.mxu0 %vm306_vm0, %v294_v19 }
  0x90   : > { %v372_v21 = vpop.f32.mrf.mxu0 }
  0x91   : > { %v2447_v22 = vadd.f32 %v2444_v20, %v372_v21 }
  0x93   : > { %v2450_v23 = vmul.f32 0.70710677, %v2447_v22 }
  0x95   : > { %v452_v24 = vmul.f32 %v2450_v23, %v2450_v23 }
  0x97   : > { %v2454_v25 = vmin.f32 %v452_v24, 16.0 }
  0x98   : > { %v375_v26 = vpop.f32.mrf.mxu0 }
  0x99   : > { %v465_v27 = vmul.f32 3.8918573e-05, %v2454_v25  ;;  %v2458_v28 = vadd.f32 %v2444_v20, %v375_v26  ;;  %v454_v42 = vmul.f32 2.1237322e-06, %v2454_v25 }
  0x9b   : > { %v466_v29 = vadd.f32 0.001143296, %v465_v27  ;;  %v2461_v30 = vmul.f32 0.70710677, %v2458_v28  ;;  %v455_v51 = vadd.f32 0.00028619796, %v454_v42 }
  0x9d   : > { %v467_v31 = vmul.f32 %v466_v29, %v2454_v25  ;;  %v492_v32 = vmul.f32 %v2461_v30, %v2461_v30  ;;  %v456_v60 = vmul.f32 %v455_v51, %v2454_v25 }
  0x9f   : > { %v468_v33 = vadd.f32 0.014752088, %v467_v31  ;;  %v2466_v34 = vmin.f32 %v492_v32, 16.0  ;;  %v457_v5 = vadd.f32 0.0036580483, %v456_v60 }
  0xa0   : > { %v378_v35 = vpop.f32.mrf.mxu0 }
  0xa1   : > { %v469_v37 = vmul.f32 %v468_v33, %v2454_v25  ;;  %v2473_v38 = vadd.f32 %v2444_v20, %v378_v35  ;;  %v505_v39 = vmul.f32 3.8918573e-05, %v2466_v34  ;;  %v494_v1 = vmul.f32 2.1237322e-06, %v2466_v34 }
  0xa2   : > { %v458_v14 = vmul.f32 %v457_v5, %v2454_v25 }
  0xa3   : > { %v470_v41 = vadd.f32 0.112945676, %v469_v37  ;;  %v506_v43 = vadd.f32 0.001143296, %v505_v39  ;;  %v2481_v44 = vmul.f32 0.70710677, %v2473_v38 }
  0xa4   : > { %v495_v11 = vadd.f32 0.00028619796, %v494_v1  ;;  %v459_v24 = vadd.f32 0.05243302, %v458_v14 }
  0xa5   : > { %v471_v45 = vmul.f32 %v470_v41, %v2454_v25  ;;  %v507_v47 = vmul.f32 %v506_v43, %v2466_v34  ;;  %v532_v48 = vmul.f32 %v2481_v44, %v2481_v44 }
  0xa6   : > { %v496_v18 = vmul.f32 %v495_v11, %v2466_v34  ;;  %v460_v35 = vmul.f32 %v459_v24, %v2454_v25 }
  0xa7   : > { %v472_v50 = vadd.f32 0.4994258, %v471_v45  ;;  %v508_v52 = vadd.f32 0.014752088, %v507_v47  ;;  %v2493_v53 = vmin.f32 %v532_v48, 16.0 }
  0xa8   : > { %v381_v54 = vpop.f32.mrf.mxu0  ;;  %v497_v31 = vadd.f32 0.0036580483, %v496_v18  ;;  %v461_v46 = vadd.f32 0.18741608, %v460_v35 }
  0xa9   : > { %v473_v56 = vmul.f32 %v472_v50, %v2454_v25  ;;  %v2500_v57 = vadd.f32 %v2444_v20, %v381_v54  ;;  %v509_v58 = vmul.f32 %v508_v52, %v2466_v34  ;;  %v545_v59 = vmul.f32 3.8918573e-05, %v2493_v53 }
  0xaa   : > { %v498_v42 = vmul.f32 %v497_v31, %v2466_v34  ;;  %v534_v43 = vmul.f32 2.1237322e-06, %v2493_v53 }
  0xab   : > { %v2505_v61 = vadd.f32 1.0, %v473_v56  ;;  %v510_v62 = vadd.f32 0.112945676, %v509_v58  ;;  %v2508_v63 = vmul.f32 0.70710677, %v2500_v57  ;;  %v462_v56 = vmul.f32 %v461_v46, %v2454_v25 }
  0xac   : > { %v546_v3 = vadd.f32 0.001143296, %v545_v59  ;;  %v499_v52 = vadd.f32 0.05243302, %v498_v42  ;;  %v535_v55 = vadd.f32 0.00028619796, %v534_v43 }
  0xad   : > { %v511_v2 = vmul.f32 %v510_v62, %v2466_v34  ;;  %2266 = vrcp.f32 %v2505_v61  ;;  %v572_v9 = vmul.f32 %v2508_v63, %v2508_v63  ;;  %vm480_vm2 = vweird.f32 %v2505_v61 }
  0xae   : > { %v547_v8 = vmul.f32 %v546_v3, %v2493_v53  ;;  %v500_v3 = vmul.f32 %v499_v52, %v2466_v34  ;;  %v484_v4 = vand.u32 2147483647, %v2505_v61  ;;  %v536_v5 = vmul.f32 %v535_v55, %v2493_v53 }
  0xaf   : > { %v512_v6 = vadd.f32 0.4994258, %v511_v2  ;;  %v2528_v16 = vmin.f32 %v572_v9, 16.0  ;;  %v486_v2 = vand.u32 2147483648, %v2505_v61 }
  0xb0   : > { %v384_v7 = vpop.f32.mrf.mxu0  ;;  %v548_v13 = vadd.f32 0.014752088, %v547_v8  ;;  %v501_v14 = vadd.f32 0.18741608, %v500_v3  ;;  %vm485_vm4 = vcmp.eq.f32.partialorder %v484_v4, 8.507059e+37 }
  0xb1   : > { %v513_v12 = vmul.f32 %v512_v6, %v2466_v34  ;;  %v2534_v21 = vadd.f32 %v2444_v20, %v384_v7  ;;  %v585_v29 = vmul.f32 3.8918573e-05, %v2528_v16  ;;  %v463_v6 = vadd.f32 1.1283791, %v462_v56 }
  0xb2   : > { %v549_v15 = vmul.f32 %v548_v13, %v2493_v53  ;;  %v487_v13 = vor.u32 1.1754944e-38, %v486_v2  ;;  %v574_v24 = vmul.f32 2.1237322e-06, %v2528_v16 }
  0xb3   : > { %v2267_v17 = vpop.eup %2266  ;;  %v2531_v19 = vadd.f32 1.0, %v513_v12  ;;  %v2540_v32 = vmul.f32 0.70710677, %v2534_v21  ;;  %v586_v40 = vadd.f32 0.001143296, %v585_v29 }
  0xb4   : > { %v476_v26 = vmul.f32 %v2267_v17, %v2505_v61  ;;  %v550_v27 = vadd.f32 0.112945676, %v549_v15  ;;  %vm481_vm1 = vweird.f32 %v2267_v17  ;;  %v537_v15 = vadd.f32 0.0036580483, %v536_v5 }
  0xb5   : > { %2268 = vrcp.f32 %v2531_v19  ;;  %v612_v36 = vmul.f32 %v2540_v32, %v2540_v32  ;;  %v587_v50 = vmul.f32 %v586_v40, %v2528_v16  ;;  %vm482_vm3 = vmor %vm480_vm2, %vm481_vm1  ;;  %v526_v40 = vand.u32 2147483648, %v2531_v19 }
  0xb6   : > { %v477_v37 = vsub.f32 1.0, %v476_v26  ;;  %v551_v39 = vmul.f32 %v550_v27, %v2493_v53  ;;  %vm520_vm6 = vweird.f32 %v2531_v19 }
  0xb7   : > { %v2553_v47 = vmin.f32 %v612_v36, 16.0  ;;  %v588_v62 = vadd.f32 0.014752088, %v587_v50 }
  0xb8   : > { %v387_v33 = vpop.f32.mrf.mxu0  ;;  %v478_v48 = vmul.f32 %v2267_v17, %v477_v37  ;;  %v552_v49 = vadd.f32 0.4994258, %v551_v39  ;;  %v538_v39 = vmul.f32 %v537_v15, %v2493_v53 }
  0xb9   : > { %v2547_v41 = vadd.f32 %v2444_v20, %v387_v33  ;;  %v625_v58 = vmul.f32 3.8918573e-05, %v2553_v47  ;;  %v589_v11 = vmul.f32 %v588_v62, %v2528_v16  ;;  %v502_v33 = vmul.f32 %v501_v14, %v2466_v34 }
  0xba   : > { %v479_v59 = vadd.f32 %v2267_v17, %v478_v48  ;;  %v553_v60 = vmul.f32 %v552_v49, %v2493_v53  ;;  %v524_v34 = vand.u32 2147483647, %v2531_v19  ;;  %v614_v49 = vmul.f32 2.1237322e-06, %v2553_v47 }
  0xbb   : > { %v2551_v45 = vpop.eup %2268  ;;  %v2557_v51 = vmul.f32 0.70710677, %v2547_v41  ;;  %v626_v7 = vadd.f32 0.001143296, %v625_v58  ;;  %v590_v29 = vadd.f32 0.112945676, %v589_v11 }
  0xbc   : > { %v516_v54 = vmul.f32 %v2551_v45, %v2531_v19  ;;  %v483_v9 = vsel %vm482_vm3, %v2267_v17, %v479_v59  ;;  %v2574_v10 = vadd.f32 1.0, %v553_v60  ;;  %v464_v17 = vmul.f32 %v463_v6, %v2450_v23 }
  0xbd   : > { %v652_v0 = vmul.f32 %v2557_v51, %v2557_v51  ;;  %v488_v18 = vsel %vm485_vm4, %v487_v13, %v483_v9  ;;  %v627_v26 = vmul.f32 %v626_v7, %v2553_v47  ;;  %vm521_vm5 = vweird.f32 %v2551_v45 }
  0xbe   : > { %v517_v25 = vsub.f32 1.0, %v516_v54  ;;  %2270 = vrcp.f32 %v2574_v10  ;;  %v489_v36 = vmul.f32 %v488_v18, %v464_v17  ;;  %v575_v23 = vadd.f32 0.00028619796, %v574_v24  ;;  %vm522_vm7 = vmor %vm520_vm6, %vm521_vm5 }
  0xbf   : > { %v2577_v12 = vmin.f32 %v652_v0, 16.0  ;;  %v628_v42 = vadd.f32 0.014752088, %v627_v26  ;;  %v591_v46 = vmul.f32 %v590_v29, %v2528_v16  ;;  %v503_v52 = vadd.f32 1.1283791, %v502_v33 }
  0xc0   : > { %v390_v1 = vpop.f32.mrf.mxu0  ;;  %v518_v61 = vmul.f32 %v2551_v45, %v517_v25  ;;  %v539_v55 = vadd.f32 0.05243302, %v538_v39  ;;  %v2173_v56 = vclamps-f32 %v489_v36, 1.0  ;;  %v527_v58 = vor.u32 1.1754944e-38, %v526_v40 }
  0xc1   : > { %v2572_v8 = vadd.f32 %v2444_v20, %v390_v1  ;;  %v665_v31 = vmul.f32 3.8918573e-05, %v2577_v12  ;;  %v576_v59 = vmul.f32 %v575_v23, %v2528_v16  ;;  %v629_v60 = vmul.f32 %v628_v42, %v2553_v47 }
  0xc2   : > { %v519_v37 = vadd.f32 %v2551_v45, %v518_v61  ;;  %vm525_vm8 = vcmp.eq.f32.partialorder %v524_v34, 8.507059e+37  ;;  %v592_v62 = vadd.f32 0.4994258, %v591_v46  ;;  %v615_v3 = vadd.f32 0.00028619796, %v614_v49 }
  0xc3   : > { %v2583_v27 = vmul.f32 0.70710677, %v2572_v8  ;;  %v666_v48 = vadd.f32 0.001143296, %v665_v31  ;;  %v540_v4 = vmul.f32 %v539_v55, %v2493_v53  ;;  %v1092_v25 = vadd.f32 1.0, %v2173_v56 }
  0xc4   : > { %v2601_v50 = vpop.eup %2270  ;;  %v523_v54 = vsel %vm522_vm7, %v2551_v45, %v519_v37  ;;  %v504_v45 = vmul.f32 %v503_v52, %v2461_v30  ;;  %v577_v5 = vadd.f32 0.0036580483, %v576_v59  ;;  %v630_v6 = vadd.f32 0.112945676, %v629_v60 }
  0xc5   : > { %v692_v35 = vmul.f32 %v2583_v27, %v2583_v27  ;;  %v667_v0 = vmul.f32 %v666_v48, %v2577_v12  ;;  %v528_v1 = vsel %vm525_vm8, %v527_v58, %v523_v54  ;;  %v556_v2 = vmul.f32 %v2601_v50, %v2574_v10 }
  0xc6   : > { %v420_v11 = vmul.f32 0.5, %v2447_v22  ;;  %v529_v13 = vmul.f32 %v528_v1, %v504_v45  ;;  %v593_v14 = vmul.f32 %v592_v62, %v2528_v16  ;;  %v616_v18 = vmul.f32 %v615_v3, %v2553_v47 }
  0xc7   : > { %v2595_v43 = vmin.f32 %v692_v35, 16.0  ;;  %v668_v61 = vadd.f32 0.014752088, %v667_v0  ;;  %v557_v15 = vsub.f32 1.0, %v556_v2  ;;  %v541_v24 = vadd.f32 0.18741608, %v540_v4 }
  0xc8   : > { %v393_v9 = vpop.f32.mrf.mxu0  ;;  %v1108_v26 = vmul.f32 %v1092_v25, %v420_v11  ;;  %v578_v17 = vmul.f32 %v577_v5, %v2528_v16  ;;  %v631_v29 = vmul.f32 %v630_v6, %v2553_v47  ;;  %v2621_v22 = vadd.f32 1.0, %v593_v14  ;;  %v411_v25 = vpop.f32.mrf.mxu3 }
  0xc9   : > { %v705_v19 = vmul.f32 3.8918573e-05, %v2595_v43  ;;  %v2616_v30 = vadd.f32 %v2444_v20, %v393_v9  ;;  %v669_v33 = vmul.f32 %v668_v61, %v2577_v12  ;;  %v2174_v36 = vclamps-f32 %v529_v13, 1.0 }
  0xca   : > { %2189 = vmatmul.msk.f32.vlgmr.msra.gmra.mxu1 %vm1136_vm9, %v1108_v26  ;;  %v558_v37 = vmul.f32 %v2601_v50, %v557_v15  ;;  %v617_v39 = vadd.f32 0.0036580483, %v616_v18  ;;  %v654_v40 = vmul.f32 2.1237322e-06, %v2577_v12  ;;  %v421_v23 = vmul.f32 0.5, %v2458_v28 }
  0xcb   : > { %v706_v7 = vadd.f32 0.001143296, %v705_v19  ;;  %v2626_v35 = vmul.f32 0.70710677, %v2616_v30  ;;  %v542_v42 = vmul.f32 %v541_v24, %v2493_v53  ;;  %v579_v34 = vadd.f32 0.05243302, %v578_v17 }
  0xcc   : > { %v632_v46 = vadd.f32 0.4994258, %v631_v29  ;;  %vm561_vm10 = vweird.f32 %v2601_v50  ;;  %2272 = vrcp.f32 %v2621_v22  ;;  %v670_v52 = vadd.f32 0.112945676, %v669_v33 }
  0xcd   : > { %v707_v31 = vmul.f32 %v706_v7, %v2595_v43  ;;  %v732_v49 = vmul.f32 %v2626_v35, %v2626_v35  ;;  %v1093_v54 = vadd.f32 1.0, %v2174_v36  ;;  %v559_v55 = vadd.f32 %v2601_v50, %v558_v37 }
  0xce   : > { %v618_v56 = vmul.f32 %v617_v39, %v2553_v47  ;;  %v655_v58 = vadd.f32 0.00028619796, %v654_v40  ;;  %v564_v53 = vand.u32 2147483647, %v2574_v10  ;;  %v566_v59 = vand.u32 2147483648, %v2574_v10 }
  0xcf   : > { %v708_v48 = vadd.f32 0.014752088, %v707_v31  ;;  %v2638_v28 = vmin.f32 %v732_v49, 16.0  ;;  %v694_v60 = vmul.f32 2.1237322e-06, %v2595_v43  ;;  %v1109_v19 = vmul.f32 %v1093_v54, %v421_v23 }
  0xd0   : > { %vm560_vm11 = vweird.f32 %v2574_v10  ;;  %v633_v62 = vmul.f32 %v632_v46, %v2553_v47  ;;  %v543_v2 = vadd.f32 1.1283791, %v542_v42  ;;  %v580_v45 = vmul.f32 %v579_v34, %v2528_v16  ;;  %v396_v9 = vpop.f32.mrf.mxu0 }
  0xd1   : > { %v709_v0 = vmul.f32 %v708_v48, %v2595_v43  ;;  %v745_v1 = vmul.f32 3.8918573e-05, %v2638_v28  ;;  %vm2649_vm12 = vmor %vm560_vm11, %vm561_vm10  ;;  %v671_v4 = vmul.f32 %v670_v52, %v2577_v12  ;;  %v619_v5 = vadd.f32 0.05243302, %v618_v56 }
  0xd2   : > { %2190 = vmatmul.msk.f32.gmra.mxu1 %vm1136_vm9, %v1109_v19  ;;  %v563_v10 = vsel %vm2649_vm12, %v2601_v50, %v559_v55  ;;  %v656_v6 = vmul.f32 %v655_v58, %v2577_v12  ;;  %v2660_v11 = vpop.eup %2272  ;;  %vm565_vm13 = vcmp.eq.f32.partialorder %v564_v53, 8.507059e+37  ;;  %v567_v13 = vor.u32 1.1754944e-38, %v566_v59 }
  0xd3   : > { %v746_v7 = vadd.f32 0.001143296, %v745_v1  ;;  %v695_v14 = vadd.f32 0.00028619796, %v694_v60  ;;  %v2662_v61 = vadd.f32 1.0, %v633_v62  ;;  %v2666_v24 = vadd.f32 %v2444_v20, %v411_v25 }
  0xd4   : > { %v710_v15 = vadd.f32 0.112945676, %v709_v0  ;;  %v568_v26 = vsel %vm565_vm13, %v567_v13, %v563_v10  ;;  %v581_v50 = vadd.f32 0.18741608, %v580_v45  ;;  %v672_v17 = vadd.f32 0.4994258, %v671_v4 }
  0xd5   : > { %v747_v18 = vmul.f32 %v746_v7, %v2638_v28  ;;  %v2669_v29 = vadd.f32 %v2444_v20, %v396_v9  ;;  %v544_v31 = vmul.f32 %v543_v2, %v2481_v44  ;;  %v620_v33 = vmul.f32 %v619_v5, %v2553_v47 }
  0xd6   : > { %v657_v36 = vadd.f32 0.0036580483, %v656_v6  ;;  %v596_v37 = vmul.f32 %v2660_v11, %v2621_v22  ;;  %v696_v39 = vmul.f32 %v695_v14, %v2595_v43  ;;  %2274 = vrcp.f32 %v2662_v61 }
  0xd7   : > { %v748_v40 = vadd.f32 0.014752088, %v747_v18  ;;  %v569_v23 = vmul.f32 %v568_v26, %v544_v31  ;;  %v711_v42 = vmul.f32 %v710_v15, %v2595_v43  ;;  %v2679_v34 = vmul.f32 0.70710677, %v2666_v24 }
  0xd8   : > { %v582_v46 = vmul.f32 %v581_v50, %v2528_v16  ;;  %v673_v44 = vmul.f32 %v672_v17, %v2577_v12  ;;  %v2684_v48 = vmul.f32 0.70710677, %v2669_v29  ;;  %v621_v49 = vadd.f32 0.18741608, %v620_v33 }
  0xd9   : > { %v658_v52 = vmul.f32 %v657_v36, %v2577_v12  ;;  %v749_v54 = vmul.f32 %v748_v40, %v2638_v28  ;;  %v422_v55 = vmul.f32 0.5, %v2473_v38  ;;  %v597_v56 = vsub.f32 1.0, %v596_v37 }
  0xda   : > { %v697_v58 = vadd.f32 0.0036580483, %v696_v39  ;;  %v772_v53 = vmul.f32 %v2684_v48, %v2684_v48  ;;  %v2692_v59 = vmul.f32 0.5, %v2500_v57  ;;  %v712_v16 = vadd.f32 0.4994258, %v711_v42 }
  0xdb   : > { %v972_v60 = vmul.f32 %v2679_v34, %v2679_v34  ;;  %v2175_v19 = vclamps-f32 %v569_v23, 1.0  ;;  %v583_v62 = vadd.f32 1.1283791, %v582_v46  ;;  %v2697_v0 = vmul.f32 0.5, %v2534_v21 }
  0xdc   : > { %v2700_v1 = vmul.f32 0.5, %v2547_v41  ;;  %v2702_v38 = vadd.f32 1.0, %v673_v44  ;;  %v2704_v2 = vpop.eup %2274  ;;  %v622_v3 = vmul.f32 %v621_v49, %v2553_v47  ;;  %v659_v57 = vadd.f32 0.05243302, %v658_v52 }
  0xdd   : > { %v750_v45 = vadd.f32 0.112945676, %v749_v54  ;;  %v2707_v4 = vmin.f32 %v772_v53, 16.0  ;;  %v598_v25 = vmul.f32 %v2660_v11, %v597_v56  ;;  %v604_v10 = vand.u32 2147483647, %v2621_v22  ;;  %v414_v53 = vpop.f32.mrf.mxu3 }
  0xde   : > { %v698_v21 = vmul.f32 %v697_v58, %v2595_v43  ;;  %v1094_v5 = vadd.f32 1.0, %v2175_v19  ;;  %v713_v41 = vmul.f32 %v712_v16, %v2595_v43  ;;  %v734_v6 = vmul.f32 2.1237322e-06, %v2638_v28  ;;  %v399_v16 = vpop.f32.mrf.mxu0 }
  0xdf   : > { %v2714_v7 = vmin.f32 %v972_v60, 16.0  ;;  %v785_v9 = vmul.f32 3.8918573e-05, %v2707_v4  ;;  %vm601_vm14 = vweird.f32 %v2660_v11  ;;  %v606_v47 = vand.u32 2147483648, %v2621_v22 }
  0xe0   : > { %v636_v13 = vmul.f32 %v2704_v2, %v2662_v61  ;;  %2276 = vrcp.f32 %v2702_v38  ;;  %v623_v14 = vadd.f32 1.1283791, %v622_v3  ;;  %v660_v15 = vmul.f32 %v659_v57, %v2577_v12 }
  0xe1   : > { %v751_v18 = vmul.f32 %v750_v45, %v2638_v28  ;;  %v1110_v26 = vmul.f32 %v1094_v5, %v422_v55  ;;  %v599_v50 = vadd.f32 %v2660_v11, %v598_v25  ;;  %v699_v17 = vadd.f32 0.05243302, %v698_v21 }
  0xe2   : > { %v974_v31 = vmul.f32 2.1237322e-06, %v2714_v7  ;;  %v786_v33 = vadd.f32 0.001143296, %v785_v9  ;;  %v2727_v36 = vmul.f32 0.5, %v2572_v8  ;;  %v2729_v37 = vadd.f32 1.0, %v713_v41 }
  0xe3   : > { %v735_v39 = vadd.f32 0.00028619796, %v734_v6  ;;  %v985_v40 = vmul.f32 3.8918573e-05, %v2714_v7  ;;  %2191 = vmatmul.msk.f32.gmra.mxu1 %vm1136_vm9, %v1110_v26  ;;  %v584_v23 = vmul.f32 %v583_v62, %v2508_v63  ;;  %vm600_vm15 = vweird.f32 %v2621_v22 }
  0xe4   : > { %vm2735_vm1 = vcmp.eq.f32.partialorder %v604_v10, 8.507059e+37  ;;  %v637_v46 = vsub.f32 1.0, %v636_v13  ;;  %vm2741_vm2 = vmor %vm600_vm15, %vm601_vm14  ;;  %v607_v44 = vor.u32 1.1754944e-38, %v606_v47  ;;  %v2746_v49 = vmul.f32 %v623_v14, %v2540_v32 }
  0xe5   : > { %v644_v52 = vand.u32 2147483647, %v2662_v61  ;;  %v752_v63 = vadd.f32 0.4994258, %v751_v18  ;;  %v603_v22 = vsel %vm2741_vm2, %v2660_v11, %v599_v50  ;;  %vm640_vm3 = vweird.f32 %v2662_v61 }
  0xe6   : > { %v2749_v54 = vpop.eup %2276  ;;  %v661_v55 = vadd.f32 0.18741608, %v660_v15  ;;  %v700_v56 = vmul.f32 %v699_v17, %v2595_v43  ;;  %v787_v58 = vmul.f32 %v786_v33, %v2707_v4  ;;  %2278 = vrcp.f32 %v2729_v37 }
  0xe7   : > { %v736_v32 = vmul.f32 %v735_v39, %v2638_v28  ;;  %v975_v60 = vadd.f32 0.00028619796, %v974_v31  ;;  %v986_v19 = vadd.f32 0.001143296, %v985_v40  ;;  %v638_v62 = vmul.f32 %v2704_v2, %v637_v46 }
  0xe8   : > { %v646_v3 = vand.u32 2147483648, %v2662_v61  ;;  %v774_v11 = vmul.f32 2.1237322e-06, %v2707_v4  ;;  %v788_v57 = vadd.f32 0.014752088, %v787_v58  ;;  %v676_v45 = vmul.f32 %v2749_v54, %v2702_v38 }
  0xe9   : > { %v753_v25 = vmul.f32 %v752_v63, %v2638_v28  ;;  %v2766_v10 = vadd.f32 %v2444_v20, %v414_v53  ;;  %v2769_v21 = vadd.f32 %v2444_v20, %v399_v16  ;;  %v608_v5 = vsel %vm2735_vm1, %v607_v44, %v603_v22 }
  0xea   : > { %v662_v41 = vmul.f32 %v661_v55, %v2577_v12  ;;  %v701_v6 = vadd.f32 0.18741608, %v700_v56  ;;  %v789_v9 = vmul.f32 %v788_v57, %v2707_v4  ;;  %vm2775_vm4 = vcmp.eq.f32.partialorder %v644_v52, 8.507059e+37 }
  0xeb   : > { %v737_v13 = vadd.f32 0.0036580483, %v736_v32  ;;  %v976_v14 = vmul.f32 %v975_v60, %v2714_v7  ;;  %v987_v15 = vmul.f32 %v986_v19, %v2714_v7  ;;  %v639_v18 = vadd.f32 %v2704_v2, %v638_v62 }
  0xec   : > { %vm641_vm5 = vweird.f32 %v2704_v2  ;;  %v775_v26 = vadd.f32 0.00028619796, %v774_v11  ;;  %v2784_v50 = vmul.f32 0.70710677, %v2769_v21  ;;  %v2786_v12 = vpop.eup %2278  ;;  %v647_v17 = vor.u32 1.1754944e-38, %v646_v3 }
  0xed   : > { %v677_v31 = vsub.f32 1.0, %v676_v45  ;;  %v2788_v33 = vadd.f32 1.0, %v753_v25  ;;  %v2791_v39 = vmul.f32 0.70710677, %v2766_v10  ;;  %v2793_v40 = vmul.f32 %v608_v5, %v584_v23  ;;  %vm2798_vm6 = vmor %vm640_vm3, %vm641_vm5 }
  0xee   : > { %v663_v42 = vadd.f32 1.1283791, %v662_v41  ;;  %v702_v46 = vmul.f32 %v701_v6, %v2595_v43  ;;  %v790_v8 = vadd.f32 0.112945676, %v789_v9  ;;  %v2803_v52 = vmul.f32 0.5, %v2616_v30 }
  0xef   : > { %v738_v63 = vmul.f32 %v737_v13, %v2638_v28  ;;  %v977_v22 = vadd.f32 0.0036580483, %v976_v14  ;;  %v988_v55 = vadd.f32 0.014752088, %v987_v15  ;;  %v643_v23 = vsel %vm2798_vm6, %v2704_v2, %v639_v18 }
  0xf0   : > { %v716_v43 = vmul.f32 %v2786_v12, %v2729_v37  ;;  %v776_v61 = vmul.f32 %v775_v26, %v2707_v4  ;;  %v812_v56 = vmul.f32 %v2784_v50, %v2784_v50  ;;  %v678_v58 = vmul.f32 %v2749_v54, %v677_v31 }
  0xf1   : > { %v684_v30 = vand.u32 2147483647, %v2702_v38  ;;  %2280 = vrcp.f32 %v2788_v33  ;;  %v1012_v53 = vmul.f32 %v2791_v39, %v2791_v39  ;;  %v664_v16 = vmul.f32 %v663_v42, %v2557_v51 }
  0xf2   : > { %v686_v2 = vand.u32 2147483648, %v2702_v38  ;;  %v703_v32 = vadd.f32 1.1283791, %v702_v46  ;;  %v791_v60 = vmul.f32 %v790_v8, %v2707_v4  ;;  %v648_v19 = vsel %vm2775_vm4, %v647_v17, %v643_v23  ;;  %v402_v23 = vpop.f32.mrf.mxu0 }
  0xf3   : > { %v739_v62 = vadd.f32 0.05243302, %v738_v63  ;;  %v978_v3 = vmul.f32 %v977_v22, %v2714_v7  ;;  %v989_v11 = vmul.f32 %v988_v55, %v2714_v7  ;;  %vm680_vm7 = vweird.f32 %v2702_v38 }
  0xf4   : > { %v717_v57 = vsub.f32 1.0, %v716_v43  ;;  %v777_v45 = vadd.f32 0.0036580483, %v776_v61  ;;  %v2827_v25 = vmin.f32 %v812_v56, 16.0  ;;  %v679_v51 = vadd.f32 %v2749_v54, %v678_v58  ;;  %v417_v58 = vpop.f32.mrf.mxu3 }
  0xf5   : > { %vm681_vm8 = vweird.f32 %v2749_v54  ;;  %vm2831_vm10 = vcmp.eq.f32.partialorder %v684_v30, 8.507059e+37  ;;  %v2835_v41 = vmin.f32 %v1012_v53, 16.0  ;;  %v2838_v6 = vmul.f32 %v648_v19, %v2746_v49 }
  0xf6   : > { %v687_v9 = vor.u32 1.1754944e-38, %v686_v2  ;;  %v2841_v47 = vmul.f32 %v703_v32, %v2583_v27  ;;  %v792_v13 = vadd.f32 0.4994258, %v791_v60  ;;  %v724_v15 = vand.u32 2147483647, %v2729_v37  ;;  %vm2849_vm11 = vmor %vm680_vm7, %vm681_vm8 }
  0xf7   : > { %v2843_v14 = vpop.eup %2280  ;;  %v740_v18 = vmul.f32 %v739_v62, %v2638_v28  ;;  %v979_v26 = vadd.f32 0.05243302, %v978_v3  ;;  %v990_v17 = vadd.f32 0.112945676, %v989_v11  ;;  %v718_v49 = vmul.f32 %v2786_v12, %v717_v57 }
  0xf8   : > { %v2855_v27 = vmul.f32 0.5, %v2669_v29  ;;  %v778_v42 = vmul.f32 %v777_v45, %v2707_v4  ;;  %v825_v46 = vmul.f32 3.8918573e-05, %v2827_v25  ;;  %v683_v8 = vsel %vm2849_vm11, %v2749_v54, %v679_v51 }
  0xf9   : > { %vm720_vm12 = vweird.f32 %v2729_v37  ;;  %v726_v38 = vand.u32 2147483648, %v2729_v37  ;;  %v1025_v44 = vmul.f32 3.8918573e-05, %v2835_v41  ;;  %v756_v63 = vmul.f32 %v2843_v14, %v2788_v33 }
  0xfa   : > { %v793_v29 = vmul.f32 %v792_v13, %v2707_v4  ;;  %v826_v22 = vadd.f32 0.001143296, %v825_v46  ;;  %v2176_v55 = vclamps-f32 %v2793_v40, 1.0  ;;  %vm721_vm13 = vweird.f32 %v2786_v12 }
  0xfb   : > { %vm2870_vm14 = vcmp.eq.f32.partialorder %v724_v15, 8.507059e+37  ;;  %v741_v54 = vadd.f32 0.18741608, %v740_v18  ;;  %v980_v61 = vmul.f32 %v979_v26, %v2714_v7  ;;  %v991_v56 = vmul.f32 %v990_v17, %v2714_v7  ;;  %vm2893_vm15 = vmor %vm720_vm12, %vm721_vm13 }
  0xfc   : > { %v719_v30 = vadd.f32 %v2786_v12, %v718_v49  ;;  %v779_v53 = vadd.f32 0.05243302, %v778_v42  ;;  %v827_v2 = vmul.f32 %v826_v22, %v2827_v25  ;;  %v1095_v32 = vadd.f32 1.0, %v2176_v55  ;;  %v405_v22 = vpop.f32.mrf.mxu0 }
  0xfd   : > { %v688_v40 = vsel %vm2831_vm10, %v687_v9, %v683_v8  ;;  %v727_v60 = vor.u32 1.1754944e-38, %v726_v38  ;;  %v814_v19 = vmul.f32 2.1237322e-06, %v2827_v25  ;;  %v2882_v62 = vadd.f32 %v2444_v20, %v402_v23 }
  0xfe   : > { %v757_v3 = vsub.f32 1.0, %v756_v63  ;;  %v2884_v11 = vadd.f32 1.0, %v793_v29  ;;  %v1026_v57 = vadd.f32 0.001143296, %v1025_v44  ;;  %v2887_v45 = vadd.f32 %v2444_v20, %v417_v58 }
  0xff   : > { %v742_v5 = vmul.f32 %v741_v54, %v2638_v28  ;;  %v992_v9 = vadd.f32 0.4994258, %v991_v56  ;;  %v828_v13 = vadd.f32 0.014752088, %v827_v2  ;;  %v1111_v15 = vmul.f32 %v1095_v32, %v2692_v59 }
 0x100   : > { %v2899_v18 = vmul.f32 %v688_v40, %v664_v16  ;;  %v723_v26 = vsel %vm2893_vm15, %v2786_v12, %v719_v30  ;;  %v2904_v17 = vadd.f32 0.18741608, %v980_v61  ;;  %v780_v37 = vmul.f32 %v779_v53, %v2707_v4 }
 0x101   : > { %v815_v31 = vadd.f32 0.00028619796, %v814_v19  ;;  %v829_v49 = vmul.f32 %v828_v13, %v2827_v25  ;;  %2192 = vmatmul.msk.f32.gmra.mxu1 %vm1136_vm9, %v1111_v15  ;;  %v2910_v28 = vmul.f32 0.70710677, %v2882_v62  ;;  %v2177_v59 = vclamps-f32 %v2838_v6, 1.0 }
 0x102   : > { %v758_v16 = vmul.f32 %v2843_v14, %v757_v3  ;;  %2282 = vrcp.f32 %v2884_v11  ;;  %v1027_v12 = vmul.f32 %v1026_v57, %v2835_v41  ;;  %v2917_v42 = vmul.f32 0.70710677, %v2887_v45 }
 0x103   : > { %v743_v46 = vadd.f32 1.1283791, %v742_v5  ;;  %v993_v8 = vmul.f32 %v992_v9, %v2714_v7  ;;  %v830_v38 = vadd.f32 0.112945676, %v829_v49  ;;  %v852_v44 = vmul.f32 %v2910_v28, %v2910_v28 }
 0x104   : > { %v728_v63 = vsel %vm2870_vm14, %v727_v60, %v723_v26  ;;  %vm760_vm1 = vweird.f32 %v2788_v33  ;;  %v781_v6 = vadd.f32 0.18741608, %v780_v37  ;;  %v1014_v29 = vmul.f32 2.1237322e-06, %v2835_v41 }
 0x105   : > { %v816_v55 = vmul.f32 %v815_v31, %v2827_v25  ;;  %v831_v23 = vmul.f32 %v830_v38, %v2827_v25  ;;  %v2928_v54 = vmin.f32 %v852_v44, 16.0  ;;  %v1096_v61 = vadd.f32 1.0, %v2177_v59 }
 0x106   : > { %v759_v56 = vadd.f32 %v2843_v14, %v758_v16  ;;  %vm761_vm2 = vweird.f32 %v2843_v14  ;;  %v1028_v58 = vadd.f32 0.014752088, %v1027_v12  ;;  %v1052_v43 = vmul.f32 %v2917_v42, %v2917_v42 }
 0x107   : > { %v764_v30 = vand.u32 2147483647, %v2788_v33  ;;  %v832_v53 = vadd.f32 0.4994258, %v831_v23  ;;  %v854_v2 = vmul.f32 2.1237322e-06, %v2928_v54  ;;  %v2937_v32 = vadd.f32 %v2444_v20, %v405_v22  ;;  %vm2947_vm3 = vmor %vm760_vm1, %vm761_vm2 }
 0x108   : > { %v2939_v40 = vpop.eup %2282  ;;  %v766_v60 = vand.u32 2147483648, %v2788_v33  ;;  %v2942_v19 = vadd.f32 1.0, %v993_v8  ;;  %v1015_v3 = vadd.f32 0.00028619796, %v1014_v29  ;;  %v865_v57 = vmul.f32 3.8918573e-05, %v2928_v54 }
 0x109   : > { %v782_v5 = vmul.f32 %v781_v6, %v2707_v4  ;;  %v817_v9 = vadd.f32 0.0036580483, %v816_v55  ;;  %v833_v13 = vmul.f32 %v832_v53, %v2827_v25  ;;  %v1112_v15 = vmul.f32 %v1096_v61, %v2697_v0 }
 0x10a   : > { %v763_v26 = vsel %vm2947_vm3, %v2843_v14, %v759_v56  ;;  %v1029_v37 = vmul.f32 %v1028_v58, %v2835_v41  ;;  %v2958_v31 = vmin.f32 %v1052_v43, 16.0  ;;  %v866_v33 = vadd.f32 0.001143296, %v865_v57 }
 0x10b   : > { %v796_v49 = vmul.f32 %v2939_v40, %v2884_v11  ;;  %v2962_v59 = vadd.f32 1.0, %v833_v13  ;;  %v855_v4 = vadd.f32 0.00028619796, %v854_v2  ;;  %2193 = vmatmul.msk.f32.gmra.mxu1 %vm1136_vm9, %v1112_v15  ;;  %v2966_v16 = vmul.f32 0.70710677, %v2937_v32 }
 0x10c   : > { %v767_v0 = vor.u32 1.1754944e-38, %v766_v60  ;;  %v1016_v12 = vmul.f32 %v1015_v3, %v2835_v41  ;;  %v867_v14 = vmul.f32 %v866_v33, %v2928_v54  ;;  %v2178_v8 = vclamps-f32 %v2899_v18, 1.0  ;;  %v408_v18 = vpop.f32.mrf.mxu0 }
 0x10d   : > { %vm765_vm4 = vcmp.eq.f32.partialorder %v764_v30, 8.507059e+37  ;;  %v783_v38 = vadd.f32 1.1283791, %v782_v5  ;;  %v818_v44 = vmul.f32 %v817_v9, %v2827_v25  ;;  %2284 = vrcp.f32 %v2962_v59 }
 0x10e   : > { %v744_v6 = vmul.f32 %v743_v46, %v2626_v35  ;;  %v768_v29 = vsel %vm765_vm4, %v767_v0, %v763_v26  ;;  %v1030_v22 = vadd.f32 0.112945676, %v1029_v37  ;;  %v1065_v55 = vmul.f32 3.8918573e-05, %v2958_v31 }
 0x10f   : > { %v797_v23 = vsub.f32 1.0, %v796_v49  ;;  %v856_v61 = vmul.f32 %v855_v4, %v2928_v54  ;;  %v868_v56 = vadd.f32 0.014752088, %v867_v14  ;;  %v892_v58 = vmul.f32 %v2966_v16, %v2966_v16 }
 0x110   : > { %v729_v43 = vmul.f32 %v728_v63, %v2841_v47  ;;  %2286 = vrcp.f32 %v2942_v19  ;;  %v2980_v30 = vadd.f32 0.0036580483, %v1016_v12  ;;  %v1097_v53 = vadd.f32 1.0, %v2178_v8 }
 0x111   : > { %v2983_v35 = vmul.f32 %v783_v38, %v2684_v48  ;;  %v819_v46 = vadd.f32 0.05243302, %v818_v44  ;;  %v869_v2 = vmul.f32 %v868_v56, %v2928_v54  ;;  %v2986_v60 = vmin.f32 %v892_v58, 16.0 }
 0x112   : > { %v2988_v3 = vmul.f32 %v768_v29, %v744_v6  ;;  %v1031_v57 = vmul.f32 %v1030_v22, %v2835_v41  ;;  %v1066_v51 = vadd.f32 0.001143296, %v1065_v55  ;;  %v2992_v47 = vadd.f32 %v2444_v20, %v408_v18 }
 0x113   : > { %v2994_v63 = vpop.eup %2284  ;;  %v798_v5 = vmul.f32 %v2939_v40, %v797_v23  ;;  %v857_v9 = vadd.f32 0.0036580483, %v856_v61  ;;  %v870_v48 = vadd.f32 0.112945676, %v869_v2  ;;  %v1113_v13 = vmul.f32 %v1097_v53, %v2700_v1 }
 0x114   : > { %v804_v15 = vand.u32 2147483647, %v2884_v11  ;;  %v806_v26 = vand.u32 2147483648, %v2884_v11  ;;  %v836_v37 = vmul.f32 %v2994_v63, %v2962_v59  ;;  %v894_v33 = vmul.f32 2.1237322e-06, %v2986_v60 }
 0x115   : > { %vm801_vm5 = vweird.f32 %v2939_v40  ;;  %v820_v20 = vmul.f32 %v819_v46, %v2827_v25  ;;  %v871_v49 = vmul.f32 %v870_v48, %v2928_v54  ;;  %v905_v4 = vmul.f32 3.8918573e-05, %v2986_v60  ;;  %2194 = vmatmul.msk.f32.gmra.mxu1 %vm1136_vm9, %v1113_v13 }
 0x116   : > { %v3008_v1 = vpop.eup %2286  ;;  %v837_v0 = vsub.f32 1.0, %v836_v37  ;;  %v1067_v12 = vmul.f32 %v1066_v51, %v2958_v31  ;;  %v895_v14 = vadd.f32 0.00028619796, %v894_v33  ;;  %v3012_v8 = vmul.f32 0.70710677, %v2992_v47 }
 0x117   : > { %v799_v38 = vadd.f32 %v2939_v40, %v798_v5  ;;  %v858_v44 = vmul.f32 %v857_v9, %v2928_v54  ;;  %v872_v6 = vadd.f32 0.4994258, %v871_v49  ;;  %v906_v29 = vadd.f32 0.001143296, %v905_v4 }
 0x118   : > { %vm800_vm6 = vweird.f32 %v2884_v11  ;;  %v1032_v22 = vadd.f32 0.4994258, %v1031_v57  ;;  %v932_v55 = vmul.f32 %v3012_v8, %v3012_v8  ;;  %v2179_v23 = vclamps-f32 %v729_v43, 1.0 }
 0x119   : > { %vm3019_vm7 = vcmp.eq.f32.partialorder %v804_v15, 8.507059e+37  ;;  %v821_v56 = vadd.f32 0.18741608, %v820_v20  ;;  %v873_v58 = vmul.f32 %v872_v6, %v2928_v54  ;;  %v896_v18 = vmul.f32 %v895_v14, %v2986_v60  ;;  %vm3027_vm8 = vmor %vm800_vm6, %vm801_vm5 }
 0x11a   : > { %v838_v11 = vmul.f32 %v2994_v63, %v837_v0  ;;  %v1068_v46 = vadd.f32 0.014752088, %v1067_v12  ;;  %v907_v43 = vmul.f32 %v906_v29, %v2986_v60  ;;  %v3033_v2 = vmin.f32 %v932_v55, 16.0 }
 0x11b   : > { %v803_v57 = vsel %vm3027_vm8, %v2939_v40, %v799_v38  ;;  %v807_v51 = vor.u32 1.1754944e-38, %v806_v26  ;;  %v859_v5 = vadd.f32 0.05243302, %v858_v44  ;;  %v3038_v9 = vadd.f32 1.0, %v873_v58 }
 0x11c   : > { %v3041_v48 = vmul.f32 %v1032_v22, %v2835_v41  ;;  %v908_v13 = vadd.f32 0.014752088, %v907_v43  ;;  %v934_v15 = vmul.f32 2.1237322e-06, %v3033_v2  ;;  %v1098_v37 = vadd.f32 1.0, %v2179_v23 }
 0x11d   : > { %v822_v33 = vmul.f32 %v821_v56, %v2827_v25  ;;  %v3046_v20 = vmul.f32 2.1237322e-06, %v2958_v31  ;;  %2288 = vrcp.f32 %v3038_v9  ;;  %v897_v49 = vadd.f32 0.0036580483, %v896_v18 }
 0x11e   : > { %v808_v40 = vsel %vm3019_vm7, %v807_v51, %v803_v57  ;;  %v839_v26 = vadd.f32 %v2994_v63, %v838_v11  ;;  %vm841_vm10 = vweird.f32 %v2994_v63  ;;  %v1069_v4 = vmul.f32 %v1068_v46, %v2958_v31 }
 0x11f   : > { %v846_v0 = vand.u32 2147483648, %v2962_v59  ;;  %v860_v12 = vmul.f32 %v859_v5, %v2928_v54  ;;  %v909_v25 = vmul.f32 %v908_v13, %v2986_v60  ;;  %v935_v14 = vadd.f32 0.00028619796, %v934_v15 }
 0x120   : > { %vm840_vm11 = vweird.f32 %v2962_v59  ;;  %v844_v38 = vand.u32 2147483647, %v2962_v59  ;;  %v945_v44 = vmul.f32 3.8918573e-05, %v3033_v2  ;;  %v1114_v6 = vmul.f32 %v1098_v37, %v2727_v36 }
 0x121   : > { %v809_v29 = vmul.f32 %v808_v40, %v2983_v35  ;;  %v823_v22 = vadd.f32 1.1283791, %v822_v33  ;;  %vm3062_vm12 = vmor %vm840_vm11, %vm841_vm10  ;;  %v898_v23 = vmul.f32 %v897_v49, %v2986_v60  ;;  %v910_v61 = vadd.f32 0.112945676, %v909_v25 }
 0x122   : > { %v843_v56 = vsel %vm3062_vm12, %v2994_v63, %v839_v26  ;;  %v1070_v58 = vadd.f32 0.112945676, %v1069_v4  ;;  %v946_v59 = vadd.f32 0.001143296, %v945_v44  ;;  %2195 = vmatmul.msk.f32.gmra.mxu1 %vm1136_vm9, %v1114_v6  ;;  %v2180_v36 = vclamps-f32 %v2988_v3, 1.0 }
 0x123   : > { %v2289_v18 = vpop.eup %2288  ;;  %v847_v35 = vor.u32 1.1754944e-38, %v846_v0  ;;  %v861_v53 = vadd.f32 0.18741608, %v860_v12  ;;  %v911_v11 = vmul.f32 %v910_v61, %v2986_v60  ;;  %v936_v46 = vmul.f32 %v935_v14, %v3033_v2 }
 0x124   : > { %vm845_vm13 = vcmp.eq.f32.partialorder %v844_v38, 8.507059e+37  ;;  %v876_v43 = vmul.f32 %v2289_v18, %v3038_v9  ;;  %v947_v57 = vmul.f32 %v946_v59, %v3033_v2  ;;  %v1099_v51 = vadd.f32 1.0, %v2180_v36 }
 0x125   : > { %v824_v63 = vmul.f32 %v823_v22, %v2784_v50  ;;  %v848_v5 = vsel %vm845_vm13, %v847_v35, %v843_v56  ;;  %v899_v13 = vadd.f32 0.05243302, %v898_v23  ;;  %v912_v15 = vadd.f32 0.4994258, %v911_v11 }
 0x126   : > { %v877_v37 = vsub.f32 1.0, %v876_v43  ;;  %v948_v3 = vadd.f32 0.014752088, %v947_v57  ;;  %v1115_v33 = vmul.f32 %v1099_v51, %v2803_v52  ;;  %v2181_v49 = vclamps-f32 %v809_v29, 1.0 }
 0x127   : > { %v1071_v40 = vmul.f32 %v1070_v58, %v2958_v31  ;;  %v862_v26 = vmul.f32 %v861_v53, %v2928_v54  ;;  %v913_v4 = vmul.f32 %v912_v15, %v2986_v60  ;;  %v937_v0 = vadd.f32 0.0036580483, %v936_v46 }
 0x128   : > { %v849_v12 = vmul.f32 %v848_v5, %v824_v63  ;;  %v878_v25 = vmul.f32 %v2289_v18, %v877_v37  ;;  %vm881_vm14 = vweird.f32 %v2289_v18  ;;  %v949_v50 = vmul.f32 %v948_v3, %v3033_v2 }
 0x129   : > { %vm880_vm15 = vweird.f32 %v3038_v9  ;;  %v886_v14 = vand.u32 2147483648, %v3038_v9  ;;  %v900_v38 = vmul.f32 %v899_v13, %v2986_v60  ;;  %v3085_v52 = vadd.f32 1.0, %v913_v4 }
 0x12a   : > { %v879_v44 = vadd.f32 %v2289_v18, %v878_v25  ;;  %v884_v6 = vand.u32 2147483647, %v3038_v9  ;;  %v950_v54 = vadd.f32 0.112945676, %v949_v50  ;;  %2196 = vmatmul.msk.f32.gmra.mxu1 %vm1136_vm9, %v1115_v33  ;;  %v1100_v29 = vadd.f32 1.0, %v2181_v49  ;;  %vm3094_vm1 = vmor %vm880_vm15, %vm881_vm14 }
 0x12b   : > { %v996_v22 = vmul.f32 %v3008_v1, %v2942_v19  ;;  %v3092_v55 = vadd.f32 1.0, %v3041_v48  ;;  %2290 = vrcp.f32 %v3085_v52  ;;  %v938_v61 = vmul.f32 %v937_v0, %v3033_v2 }
 0x12c   : > { %v1072_v56 = vadd.f32 0.4994258, %v1071_v40  ;;  %v863_v9 = vadd.f32 1.1283791, %v862_v26  ;;  %v883_v58 = vsel %vm3094_vm1, %v2289_v18, %v879_v44  ;;  %v951_v59 = vmul.f32 %v950_v54, %v3033_v2 }
 0x12d   : > { %v1055_v36 = vadd.f32 0.00028619796, %v3046_v20  ;;  %v887_v35 = vor.u32 1.1754944e-38, %v886_v14  ;;  %v901_v48 = vadd.f32 0.18741608, %v900_v38  ;;  %v2182_v53 = vclamps-f32 %v849_v12, 1.0 }
 0x12e   : > { %v982_v11 = vmul.f32 %v2904_v17, %v2714_v7  ;;  %vm885_vm2 = vcmp.eq.f32.partialorder %v884_v6, 8.507059e+37  ;;  %v952_v46 = vadd.f32 0.4994258, %v951_v59  ;;  %v1116_v43 = vmul.f32 %v1100_v29, %v2855_v27 }
 0x12f   : > { %v1018_v57 = vmul.f32 %v2980_v30, %v2835_v41  ;;  %2292 = vrcp.f32 %v3092_v55  ;;  %v888_v18 = vsel %vm885_vm2, %v887_v35, %v883_v58  ;;  %v939_v51 = vadd.f32 0.05243302, %v938_v61 }
 0x130   : > { %v997_v63 = vsub.f32 1.0, %v996_v22  ;;  %v1073_v20 = vmul.f32 %v1072_v56, %v2958_v31  ;;  %v864_v5 = vmul.f32 %v863_v9, %v2910_v28  ;;  %v953_v13 = vmul.f32 %v952_v46, %v3033_v2 }
 0x131   : > { %v2291_v15 = vpop.eup %2290  ;;  %v1056_v7 = vmul.f32 %v1055_v36, %v2958_v31  ;;  %v902_v17 = vmul.f32 %v901_v48, %v2986_v60  ;;  %v1101_v27 = vadd.f32 1.0, %v2182_v53  ;;  %v983_v37 = vadd.f32 1.1283791, %v982_v11 }
 0x132   : > { %v889_v3 = vmul.f32 %v888_v18, %v864_v5  ;;  %v916_v30 = vmul.f32 %v2291_v15, %v3085_v52  ;;  %v3116_v33 = vadd.f32 1.0, %v953_v13  ;;  %2197 = vmatmul.msk.f32.gmra.mxu1 %vm1136_vm9, %v1116_v43  ;;  %vm1000_vm3 = vweird.f32 %v2942_v19 }
 0x133   : > { %v1019_v49 = vadd.f32 0.05243302, %v1018_v57  ;;  %v429_v28 = vmul.f32 0.5, %v2769_v21  ;;  %v940_v40 = vmul.f32 %v939_v51, %v3033_v2  ;;  %v998_v26 = vmul.f32 %v3008_v1, %v997_v63 }
 0x134   : > { %v3123_v4 = vadd.f32 1.0, %v1073_v20  ;;  %v917_v60 = vsub.f32 1.0, %v916_v30  ;;  %2294 = vrcp.f32 %v3116_v33  ;;  %v1057_v12 = vadd.f32 0.0036580483, %v1056_v7 }
 0x135   : > { %v3126_v0 = vpop.eup %2292  ;;  %v903_v25 = vadd.f32 1.1283791, %v902_v17  ;;  %v926_v50 = vand.u32 2147483648, %v3085_v52  ;;  %v1117_v14 = vmul.f32 %v1101_v27, %v429_v28  ;;  %vm921_vm4 = vweird.f32 %v2291_v15 }
 0x136   : > { %v918_v38 = vmul.f32 %v2291_v15, %v917_v60  ;;  %v924_v21 = vand.u32 2147483647, %v3085_v52  ;;  %v2183_v44 = vclamps-f32 %v889_v3, 1.0  ;;  %vm1001_vm5 = vweird.f32 %v3008_v1 }
 0x137   : > { %v1006_v6 = vand.u32 2147483648, %v2942_v19  ;;  %v1020_v54 = vmul.f32 %v1019_v49, %v2835_v41  ;;  %v941_v29 = vadd.f32 0.18741608, %v940_v40  ;;  %v1036_v22 = vmul.f32 %v3126_v0, %v3092_v55  ;;  %vm3142_vm8 = vmor %vm1000_vm3, %vm1001_vm5 }
 0x138   : > { %2296 = vrcp.f32 %v3123_v4  ;;  %v919_v23 = vadd.f32 %v2291_v15, %v918_v38  ;;  %vm920_vm6 = vweird.f32 %v3085_v52  ;;  %v999_v61 = vadd.f32 %v3008_v1, %v998_v26 }
 0x139   : > { %v1004_v56 = vand.u32 2147483647, %v2942_v19  ;;  %v1058_v9 = vmul.f32 %v1057_v12, %v2958_v31  ;;  %vm922_vm7 = vmor %vm920_vm6, %vm921_vm4  ;;  %v927_v58 = vor.u32 1.1754944e-38, %v926_v50  ;;  %v904_v35 = vmul.f32 %v903_v25, %v2966_v16 }
 0x13a   : > { %v2295_v59 = vpop.eup %2294  ;;  %v923_v48 = vsel %vm922_vm7, %v2291_v15, %v919_v23  ;;  %vm925_vm10 = vcmp.eq.f32.partialorder %v924_v21, 8.507059e+37  ;;  %2198 = vmatmul.msk.f32.gmra.mxu1 %vm1136_vm9, %v1117_v14  ;;  %v1102_v52 = vadd.f32 1.0, %v2183_v44  ;;  %v1007_v53 = vor.u32 1.1754944e-38, %v1006_v6 }
 0x13b   : > { %v928_v11 = vsel %vm925_vm10, %v927_v58, %v923_v48  ;;  %v942_v46 = vmul.f32 %v941_v29, %v3033_v2  ;;  %v956_v43 = vmul.f32 %v2295_v59, %v3116_v33  ;;  %v1021_v57 = vadd.f32 0.18741608, %v1020_v54 }
 0x13c   : > { %v1037_v18 = vsub.f32 1.0, %v1036_v22  ;;  %v430_v19 = vmul.f32 0.5, %v2882_v62  ;;  %v929_v51 = vmul.f32 %v928_v11, %v904_v35  ;;  %v1003_v16 = vsel %vm3142_vm8, %v3008_v1, %v999_v61 }
 0x13d   : > { %vm1005_vm11 = vcmp.eq.f32.partialorder %v1004_v56, 8.507059e+37  ;;  %v957_v63 = vsub.f32 1.0, %v956_v43  ;;  %v1059_v5 = vadd.f32 0.05243302, %v1058_v9  ;;  %v966_v13 = vand.u32 2147483648, %v3116_v33 }
 0x13e   : > { %v3154_v20 = vpop.eup %2296  ;;  %v1118_v15 = vmul.f32 %v1102_v52, %v430_v19  ;;  %v2184_v2 = vclamps-f32 %v929_v51, 1.0  ;;  %v943_v7 = vadd.f32 1.1283791, %v942_v46  ;;  %vm961_vm12 = vweird.f32 %v2295_v59 }
 0x13f   : > { %v958_v17 = vmul.f32 %v2295_v59, %v957_v63  ;;  %v964_v27 = vand.u32 2147483647, %v3116_v33  ;;  %v984_v62 = vmul.f32 %v983_v37, %v2679_v34  ;;  %v1008_v3 = vsel %vm1005_vm11, %v1007_v53, %v1003_v16 }
 0x140   : > { %v1022_v30 = vmul.f32 %v1021_v57, %v2835_v41  ;;  %v1038_v1 = vmul.f32 %v3126_v0, %v1037_v18  ;;  %vm1040_vm13 = vweird.f32 %v3092_v55  ;;  %v1076_v49 = vmul.f32 %v3154_v20, %v3123_v4 }
 0x141   : > { %v959_v28 = vadd.f32 %v2295_v59, %v958_v17  ;;  %vm960_vm14 = vweird.f32 %v3116_v33  ;;  %vm1041_vm15 = vweird.f32 %v3126_v0  ;;  %v1060_v40 = vmul.f32 %v1059_v5, %v2958_v31 }
 0x142   : > { %vm962_vm1 = vmor %vm960_vm14, %vm961_vm12  ;;  %v967_v26 = vor.u32 1.1754944e-38, %v966_v13  ;;  %2199 = vmatmul.msk.f32.gmra.mxu1 %vm1136_vm9, %v1118_v15  ;;  %v1103_v34 = vadd.f32 1.0, %v2184_v2  ;;  %v1044_v41 = vand.u32 2147483647, %v3092_v55  ;;  %v944_v37 = vmul.f32 %v943_v7, %v3012_v8  ;;  %v3182_v8 = vld [vmem:[%s3938_s4] ss:$0 sm:$0xff] }
 0x143   : > { %v963_v60 = vsel %vm962_vm1, %v2295_v59, %v959_v28  ;;  %vm965_vm2 = vcmp.eq.f32.partialorder %v964_v27, 8.507059e+37  ;;  %v1039_v12 = vadd.f32 %v3126_v0, %v1038_v1  ;;  %v1046_v25 = vand.u32 2147483648, %v3092_v55  ;;  %vm3175_vm3 = vmor %vm1040_vm13, %vm1041_vm15 }
 0x144   : > { %v431_v33 = vmul.f32 0.5, %v2937_v32  ;;  %v968_v50 = vsel %vm965_vm2, %v967_v26, %v963_v60  ;;  %v1077_v38 = vsub.f32 1.0, %v1076_v49  ;;  %v1023_v6 = vadd.f32 1.1283791, %v1022_v30 }
 0x145   : > { %v969_v21 = vmul.f32 %v968_v50, %v944_v37  ;;  %v1061_v54 = vadd.f32 0.18741608, %v1060_v40  ;;  %v1009_v22 = vmul.f32 %v1008_v3, %v984_v62  ;;  %v1043_v55 = vsel %vm3175_vm3, %v3126_v0, %v1039_v12 }
 0x146   : > { %v1119_v29 = vmul.f32 %v1103_v34, %v431_v33  ;;  %vm1045_vm4 = vcmp.eq.f32.partialorder %v1044_v41, 8.507059e+37  ;;  %v1047_v61 = vor.u32 1.1754944e-38, %v1046_v25  ;;  %v1078_v56 = vmul.f32 %v3154_v20, %v1077_v38 }
 0x147   : > { %v1202_v44 = vpop.f32.mrf.mxu1  ;;  %v2185_v32 = vclamps-f32 %v969_v21, 1.0  ;;  %v432_v9 = vmul.f32 0.5, %v2992_v47  ;;  %v1024_v36 = vmul.f32 %v1023_v6, %v2791_v39  ;;  %v1062_v35 = vmul.f32 %v1061_v54, %v2958_v31 }
 0x148   : > { %v3185_v23 = vadd.f32 %v3182_v8, %v1202_v44  ;;  %vm1080_vm5 = vweird.f32 %v3123_v4  ;;  %vm1081_vm6 = vweird.f32 %v3154_v20  ;;  %v2186_v48 = vclamps-f32 %v1009_v22, 1.0 }
 0x149   : > { %v1104_v58 = vadd.f32 1.0, %v2185_v32  ;;  %v1048_v47 = vsel %vm1045_vm4, %v1047_v61, %v1043_v55  ;;  %v1086_v53 = vand.u32 2147483648, %v3123_v4  ;;  %v1079_v11 = vadd.f32 %v3154_v20, %v1078_v56  ;;  %vm1082_vm7 = vmor %vm1080_vm5, %vm1081_vm6 }
 0x14a   : > { %v3193_v59 = vmul.f32 0.70710677, %v3185_v23  ;;  %2200 = vmatmul.msk.f32.gmra.mxu1 %vm1136_vm9, %v1119_v29  ;;  %v1084_v39 = vand.u32 2147483647, %v3123_v4  ;;  %v433_v46 = vmul.f32 0.5, %v2666_v24  ;;  %v1049_v43 = vmul.f32 %v1048_v47, %v1024_v36 }
 0x14b   : > { %v1120_v0 = vmul.f32 %v1104_v58, %v432_v9  ;;  %v1063_v57 = vadd.f32 1.1283791, %v1062_v35  ;;  %v1105_v18 = vadd.f32 1.0, %v2186_v48  ;;  %v1087_v51 = vor.u32 1.1754944e-38, %v1086_v53 }
 0x14c   : > { %v1282_v52 = vmul.f32 %v3193_v59, %v3193_v59  ;;  %v1083_v16 = vsel %vm1082_vm7, %v3154_v20, %v1079_v11  ;;  %vm1085_vm8 = vcmp.eq.f32.partialorder %v1084_v39, 8.507059e+37  ;;  %v2187_v13 = vclamps-f32 %v1049_v43, 1.0 }
 0x14d   : > { %2201 = vmatmul.msk.f32.vlgmr.msrb.gmra.mxu3 %vm1136_vm9, %v1120_v0  ;;  %v1064_v5 = vmul.f32 %v1063_v57, %v2917_v42  ;;  %v1121_v4 = vmul.f32 %v1105_v18, %v433_v46  ;;  %v1088_v2 = vsel %vm1085_vm8, %v1087_v51, %v1083_v16  ;;  %v434_v27 = vmul.f32 0.5, %v2766_v10 }
 0x14e   : > { %v3206_v31 = vmin.f32 %v1282_v52, 16.0  ;;  %v1106_v3 = vadd.f32 1.0, %v2187_v13  ;;  %v435_v25 = vmul.f32 0.5, %v2887_v45 }
 0x14f   : > { %v1205_v7 = vpop.f32.mrf.mxu1  ;;  %v1089_v62 = vmul.f32 %v1088_v2, %v1064_v5 }
 0x150   : > { %v1295_v19 = vmul.f32 3.8918573e-05, %v3206_v31  ;;  %v3215_v17 = vadd.f32 %v3182_v8, %v1205_v7  ;;  %v1284_v20 = vmul.f32 2.1237322e-06, %v3206_v31  ;;  %v1122_v40 = vmul.f32 %v1106_v3, %v434_v27 }
 0x151   : > { %v2188_v26 = vclamps-f32 %v1089_v62, 1.0 }
 0x152   : > { %v1296_v63 = vadd.f32 0.001143296, %v1295_v19  ;;  %v3221_v30 = vmul.f32 0.70710677, %v3215_v17  ;;  %v1285_v28 = vadd.f32 0.00028619796, %v1284_v20 }
 0x153   : > { %v1107_v33 = vadd.f32 1.0, %v2188_v26 }
 0x154   : > { %v1297_v15 = vmul.f32 %v1296_v63, %v3206_v31  ;;  %v1322_v49 = vmul.f32 %v3221_v30, %v3221_v30  ;;  %v1286_v37 = vmul.f32 %v1285_v28, %v3206_v31 }
 0x155   : > { %2202 = vmatmul.msk.f32.gmra.mxu3 %vm1136_vm9, %v1121_v4  ;;  %v1123_v29 = vmul.f32 %v1107_v33, %v435_v25 }
 0x156   : > { %v1298_v24 = vadd.f32 0.014752088, %v1297_v15  ;;  %v3226_v41 = vmin.f32 %v1322_v49, 16.0  ;;  %v1287_v21 = vadd.f32 0.0036580483, %v1286_v37 }
 0x158   : > { %v1299_v42 = vmul.f32 %v1298_v24, %v3206_v31  ;;  %v1324_v60 = vmul.f32 2.1237322e-06, %v3226_v41  ;;  %v1335_v12 = vmul.f32 3.8918573e-05, %v3226_v41  ;;  %v1288_v45 = vmul.f32 %v1287_v21, %v3206_v31 }
 0x15a   : > { %v1300_v1 = vadd.f32 0.112945676, %v1299_v42  ;;  %v1336_v14 = vadd.f32 0.001143296, %v1335_v12  ;;  %v1325_v44 = vadd.f32 0.00028619796, %v1324_v60 }
 0x15b   : > { %v1289_v35 = vadd.f32 0.05243302, %v1288_v45 }
 0x15c   : > { %v1301_v34 = vmul.f32 %v1300_v1, %v3206_v31  ;;  %v1337_v6 = vmul.f32 %v1336_v14, %v3226_v41  ;;  %v1326_v55 = vmul.f32 %v1325_v44, %v3226_v41 }
 0x15d   : > { %2203 = vmatmul.msk.f32.gmra.mxu3 %vm1136_vm9, %v1122_v40  ;;  %v1290_v46 = vmul.f32 %v1289_v35, %v3206_v31 }
 0x15e   : > { %v1302_v10 = vadd.f32 0.4994258, %v1301_v34  ;;  %v1338_v22 = vadd.f32 0.014752088, %v1337_v6  ;;  %v1327_v0 = vadd.f32 0.0036580483, %v1326_v55 }
 0x15f   : > { %v1291_v4 = vadd.f32 0.18741608, %v1290_v46 }
 0x160   : > { %v1303_v50 = vmul.f32 %v1302_v10, %v3206_v31  ;;  %v1208_v54 = vpop.f32.mrf.mxu1  ;;  %v1339_v61 = vmul.f32 %v1338_v22, %v3226_v41  ;;  %v1328_v43 = vmul.f32 %v1327_v0, %v3226_v41 }
 0x161   : > { %v3236_v32 = vadd.f32 %v3182_v8, %v1208_v54  ;;  %v1292_v24 = vmul.f32 %v1291_v4, %v3206_v31 }
 0x162   : > { %v1304_v38 = vadd.f32 1.0, %v1303_v50  ;;  %v1340_v9 = vadd.f32 0.112945676, %v1339_v61  ;;  %v1329_v13 = vadd.f32 0.05243302, %v1328_v43 }
 0x163   : > { %v3243_v56 = vmul.f32 0.70710677, %v3236_v32  ;;  %v1293_v26 = vadd.f32 1.1283791, %v1292_v24 }
 0x164   : > { %2298 = vrcp.f32 %v1304_v38  ;;  %v1341_v48 = vmul.f32 %v1340_v9, %v3226_v41  ;;  %v1330_v27 = vmul.f32 %v1329_v13, %v3226_v41  ;;  %v1316_v1 = vand.u32 2147483648, %v1304_v38  ;;  %v1954_v13 = vld [vmem:[%s3939_s5] sm:$0xff] }
 0x165   : > { %2204 = vmatmul.msk.f32.gmra.mxu3 %vm1136_vm9, %v1123_v29  ;;  %v1362_v36 = vmul.f32 %v3243_v56, %v3243_v56  ;;  %vm1310_vm10 = vweird.f32 %v1304_v38  ;;  %v1314_v28 = vand.u32 2147483647, %v1304_v38  ;;  %v1294_v50 = vmul.f32 %v1293_v26, %v3193_v59  ;;  %v1957_v59 = vld [vmem:[%s3939_s5 + $0x18] sm:$0xff] }
 0x166   : > { %v1342_v53 = vadd.f32 0.4994258, %v1341_v48  ;;  %v1331_v34 = vadd.f32 0.18741608, %v1330_v27  ;;  %v1317_v12 = vor.u32 1.1754944e-38, %v1316_v1  ;;  %2022 = vmatpush.msra.mxu2 %v1957_v59  ;;  %2251 = vmatpush.msra.mxu3 %v1957_v59 }
 0x167   : > { %v3248_v47 = vmin.f32 %v1362_v36, 16.0  ;;  %vm1315_vm12 = vcmp.eq.f32.partialorder %v1314_v28, 8.507059e+37  ;;  %v1251_v28 = vmul.f32 0.5, %v3215_v17 }
 0x168   : > { %v1343_v57 = vmul.f32 %v1342_v53, %v3226_v41  ;;  %v1332_v21 = vmul.f32 %v1331_v34, %v3226_v41 }
 0x169   : > { %v1364_v11 = vmul.f32 2.1237322e-06, %v3248_v47  ;;  %v1375_v39 = vmul.f32 3.8918573e-05, %v3248_v47 }
 0x16a   : > { %v2299_v58 = vpop.eup %2298  ;;  %v1344_v16 = vadd.f32 1.0, %v1343_v57  ;;  %v1333_v9 = vadd.f32 1.1283791, %v1332_v21 }
 0x16b   : > { %v1306_v52 = vmul.f32 %v2299_v58, %v1304_v38  ;;  %v1365_v19 = vadd.f32 0.00028619796, %v1364_v11  ;;  %v1376_v51 = vadd.f32 0.001143296, %v1375_v39  ;;  %vm1311_vm9 = vweird.f32 %v2299_v58 }
 0x16c   : > { %2300 = vrcp.f32 %v1344_v16  ;;  %vm1312_vm11 = vmor %vm1310_vm10, %vm1311_vm9  ;;  %v1356_v22 = vand.u32 2147483648, %v1344_v16  ;;  %vm1350_vm14 = vweird.f32 %v1344_v16  ;;  %v1354_v41 = vand.u32 2147483647, %v1344_v16 }
 0x16d   : > { %v1307_v18 = vsub.f32 1.0, %v1306_v52  ;;  %v1366_v63 = vmul.f32 %v1365_v19, %v3248_v47  ;;  %v1377_v5 = vmul.f32 %v1376_v51, %v3248_v47  ;;  %v1956_v52 = vld [vmem:[%s3939_s5 + $0x10] sm:$0xff]  ;;  %v1334_v11 = vmul.f32 %v1333_v9, %v3221_v30 }
 0x16e   : > { %v1357_v0 = vor.u32 1.1754944e-38, %v1356_v22  ;;  %vm1355_vm1 = vcmp.eq.f32.partialorder %v1354_v41, 8.507059e+37  ;;  %2023 = vmatpush.msra.mxu2 %v1956_v52  ;;  %2252 = vmatpush.msra.mxu3 %v1956_v52 }
 0x16f   : > { %v1308_v15 = vmul.f32 %v2299_v58, %v1307_v18  ;;  %v1367_v2 = vadd.f32 0.0036580483, %v1366_v63  ;;  %v1378_v7 = vadd.f32 0.014752088, %v1377_v5  ;;  %v1955_v18 = vld [vmem:[%s3939_s5 + $0x8] sm:$0xff] }
 0x170   : > { %2024 = vmatpush.msra.mxu2 %v1955_v18  ;;  %2253 = vmatpush.msra.mxu3 %v1955_v18 }
 0x171   : > { %v1379_v20 = vmul.f32 %v1378_v7, %v3248_v47  ;;  %v1309_v62 = vadd.f32 %v2299_v58, %v1308_v15  ;;  %v1368_v3 = vmul.f32 %v1367_v2, %v3248_v47 }
 0x172   : > { %v2301_v42 = vpop.eup %2300  ;;  %2025 = vmatpush.msra.mxu2 %v1954_v13  ;;  %2254 = vmatpush.msra.mxu3 %v1954_v13 }
 0x173   : > { %v1380_v49 = vadd.f32 0.112945676, %v1379_v20  ;;  %v1346_v40 = vmul.f32 %v2301_v42, %v1344_v16  ;;  %v1313_v31 = vsel %vm1312_vm11, %v2299_v58, %v1309_v62  ;;  %v1369_v60 = vadd.f32 0.05243302, %v1368_v3 }
 0x174   : > { %v1318_v14 = vsel %vm1315_vm12, %v1317_v12, %v1313_v31  ;;  %vm1351_vm13 = vweird.f32 %v2301_v42  ;;  %v1250_v16 = vmul.f32 0.5, %v3185_v23 }
 0x175   : > { %v1381_v10 = vmul.f32 %v1380_v49, %v3248_v47  ;;  %v1347_v37 = vsub.f32 1.0, %v1346_v40  ;;  %v1370_v54 = vmul.f32 %v1369_v60, %v3248_v47  ;;  %v1319_v55 = vmul.f32 %v1318_v14, %v1294_v50  ;;  %vm1352_vm15 = vmor %vm1350_vm14, %vm1351_vm13 }
 0x177   : > { %v1382_v25 = vadd.f32 0.4994258, %v1381_v10  ;;  %v1348_v33 = vmul.f32 %v2301_v42, %v1347_v37  ;;  %v1371_v36 = vadd.f32 0.18741608, %v1370_v54  ;;  %v2205_v53 = vclamps-f32 %v1319_v55, 1.0 }
 0x179   : > { %v1383_v38 = vmul.f32 %v1382_v25, %v3248_v47  ;;  %v1349_v6 = vadd.f32 %v2301_v42, %v1348_v33  ;;  %v1372_v46 = vmul.f32 %v1371_v36, %v3248_v47  ;;  %v1922_v19 = vadd.f32 1.0, %v2205_v53 }
 0x17b   : > { %v3269_v45 = vadd.f32 1.0, %v1383_v38  ;;  %v1353_v58 = vsel %vm1352_vm15, %v2301_v42, %v1349_v6  ;;  %v1938_v2 = vmul.f32 %v1922_v19, %v1250_v16  ;;  %v1373_v7 = vadd.f32 1.1283791, %v1372_v46 }
 0x17c   : > { %v1358_v39 = vsel %vm1355_vm1, %v1357_v0, %v1353_v58 }
 0x17d   : > { %2302 = vrcp.f32 %v3269_v45  ;;  %v1359_v30 = vmul.f32 %v1358_v39, %v1334_v11  ;;  %v1394_v20 = vand.u32 2147483647, %v3269_v45  ;;  %v1396_v62 = vand.u32 2147483648, %v3269_v45  ;;  %2221 = vmatmul.msk.f32.vlgmr.msra.gmra.mxu2 %vm306_vm0, %v1938_v2 }
 0x17e   : > { %v1211_v44 = vpop.f32.mrf.mxu1  ;;  %vm1390_vm3 = vweird.f32 %v3269_v45  ;;  %v1374_v37 = vmul.f32 %v1373_v7, %v3243_v56  ;;  %v1252_v39 = vmul.f32 0.5, %v3236_v32 }
 0x17f   : > { %v3267_v29 = vadd.f32 %v3182_v8, %v1211_v44  ;;  %v2206_v49 = vclamps-f32 %v1359_v30, 1.0  ;;  %v1397_v60 = vor.u32 1.1754944e-38, %v1396_v62  ;;  %vm1395_vm5 = vcmp.eq.f32.partialorder %v1394_v20, 8.507059e+37 }
 0x181   : > { %v3275_v61 = vmul.f32 0.70710677, %v3267_v29  ;;  %v1923_v31 = vadd.f32 1.0, %v2206_v49 }
 0x183   : > { %v1402_v35 = vmul.f32 %v3275_v61, %v3275_v61  ;;  %v2303_v51 = vpop.eup %2302  ;;  %v1939_v17 = vmul.f32 %v1923_v31, %v1251_v28 }
 0x184   : > { %v1386_v5 = vmul.f32 %v2303_v51, %v3269_v45  ;;  %vm1391_vm2 = vweird.f32 %v2303_v51 }
 0x185   : > { %v3280_v48 = vmin.f32 %v1402_v35, 16.0  ;;  %vm1392_vm4 = vmor %vm1390_vm3, %vm1391_vm2  ;;  %2222 = vmatmul.msk.f32.gmra.mxu2 %vm306_vm0, %v1939_v17 }
 0x186   : > { %v1387_v23 = vsub.f32 1.0, %v1386_v5 }
 0x187   : > { %v1404_v43 = vmul.f32 2.1237322e-06, %v3280_v48  ;;  %v1415_v57 = vmul.f32 3.8918573e-05, %v3280_v48 }
 0x188   : > { %v1214_v63 = vpop.f32.mrf.mxu1  ;;  %v1388_v42 = vmul.f32 %v2303_v51, %v1387_v23 }
 0x189   : > { %v1405_v4 = vadd.f32 0.00028619796, %v1404_v43  ;;  %v1416_v47 = vadd.f32 0.001143296, %v1415_v57  ;;  %v3298_v15 = vadd.f32 %v3182_v8, %v1214_v63 }
 0x18a   : > { %v1389_v26 = vadd.f32 %v2303_v51, %v1388_v42 }
 0x18b   : > { %v1406_v24 = vmul.f32 %v1405_v4, %v3280_v48  ;;  %v1417_v27 = vmul.f32 %v1416_v47, %v3280_v48  ;;  %v3305_v3 = vmul.f32 0.70710677, %v3298_v15 }
 0x18c   : > { %v1393_v25 = vsel %vm1392_vm4, %v2303_v51, %v1389_v26 }
 0x18d   : > { %v1418_v1 = vadd.f32 0.014752088, %v1417_v27  ;;  %v1442_v40 = vmul.f32 %v3305_v3, %v3305_v3  ;;  %v1407_v34 = vadd.f32 0.0036580483, %v1406_v24  ;;  %v1398_v50 = vsel %vm1395_vm5, %v1397_v60, %v1393_v25 }
 0x18e   : > { %v1399_v44 = vmul.f32 %v1398_v50, %v1374_v37 }
 0x18f   : > { %v1419_v10 = vmul.f32 %v1418_v1, %v3280_v48  ;;  %v3314_v12 = vmin.f32 %v1442_v40, 16.0  ;;  %v1408_v6 = vmul.f32 %v1407_v34, %v3280_v48 }
 0x190   : > { %v2207_v36 = vclamps-f32 %v1399_v44, 1.0 }
 0x191   : > { %v1420_v33 = vadd.f32 0.112945676, %v1419_v10  ;;  %v1444_v14 = vmul.f32 2.1237322e-06, %v3314_v12  ;;  %v1455_v21 = vmul.f32 3.8918573e-05, %v3314_v12 }
 0x192   : > { %v1217_v38 = vpop.f32.mrf.mxu1  ;;  %v1409_v9 = vadd.f32 0.05243302, %v1408_v6  ;;  %v1924_v11 = vadd.f32 1.0, %v2207_v36 }
 0x193   : > { %v1421_v54 = vmul.f32 %v1420_v33, %v3280_v48  ;;  %v3321_v56 = vadd.f32 %v3182_v8, %v1217_v38  ;;  %v1456_v22 = vadd.f32 0.001143296, %v1455_v21  ;;  %v1445_v59 = vadd.f32 0.00028619796, %v1444_v14 }
 0x194   : > { %v1410_v57 = vmul.f32 %v1409_v9, %v3280_v48  ;;  %v1940_v19 = vmul.f32 %v1924_v11, %v1252_v39 }
 0x195   : > { %v1422_v45 = vadd.f32 0.4994258, %v1421_v54  ;;  %v1457_v55 = vmul.f32 %v1456_v22, %v3314_v12  ;;  %v3326_v41 = vmul.f32 0.70710677, %v3321_v56  ;;  %v1446_v53 = vmul.f32 %v1445_v59, %v3314_v12 }
 0x196   : > { %2223 = vmatmul.msk.f32.gmra.mxu2 %vm306_vm0, %v1940_v19  ;;  %v1411_v5 = vadd.f32 0.18741608, %v1410_v57 }
 0x197   : > { %v1423_v58 = vmul.f32 %v1422_v45, %v3280_v48  ;;  %v1458_v35 = vadd.f32 0.014752088, %v1457_v55  ;;  %v1482_v0 = vmul.f32 %v3326_v41, %v3326_v41  ;;  %v1447_v51 = vadd.f32 0.0036580483, %v1446_v53 }
 0x198   : > { %v1412_v42 = vmul.f32 %v1411_v5, %v3280_v48 }
 0x199   : > { %v1424_v52 = vadd.f32 1.0, %v1423_v58  ;;  %v1459_v46 = vmul.f32 %v1458_v35, %v3314_v12  ;;  %v3334_v43 = vmin.f32 %v1482_v0, 16.0  ;;  %v1448_v23 = vmul.f32 %v1447_v51, %v3314_v12 }
 0x19a   : > { %v1413_v25 = vadd.f32 1.1283791, %v1412_v42  ;;  %v3399_v42 = vmul.f32 0.5, %v3321_v56 }
 0x19b   : > { %2304 = vrcp.f32 %v1424_v52  ;;  %v1460_v18 = vadd.f32 0.112945676, %v1459_v46  ;;  %v1484_v16 = vmul.f32 2.1237322e-06, %v3334_v43  ;;  %v1495_v63 = vmul.f32 3.8918573e-05, %v3334_v43 }
 0x19c   : > { %v1434_v28 = vand.u32 2147483647, %v1424_v52  ;;  %v1436_v26 = vand.u32 2147483648, %v1424_v52  ;;  %v1449_v34 = vadd.f32 0.05243302, %v1448_v23  ;;  %vm1430_vm7 = vweird.f32 %v1424_v52 }
 0x19d   : > { %v1461_v30 = vmul.f32 %v1460_v18, %v3314_v12  ;;  %v1485_v32 = vadd.f32 0.00028619796, %v1484_v16  ;;  %v1496_v4 = vadd.f32 0.001143296, %v1495_v63  ;;  %v1414_v58 = vmul.f32 %v1413_v25, %v3275_v61 }
 0x19e   : > { %vm1435_vm8 = vcmp.eq.f32.partialorder %v1434_v28, 8.507059e+37  ;;  %v1437_v21 = vor.u32 1.1754944e-38, %v1436_v26  ;;  %v1450_v38 = vmul.f32 %v1449_v34, %v3314_v12 }
 0x19f   : > { %v1220_v47 = vpop.f32.mrf.mxu1  ;;  %v1462_v13 = vadd.f32 0.4994258, %v1461_v30  ;;  %v1486_v24 = vmul.f32 %v1485_v32, %v3334_v43  ;;  %v1497_v27 = vmul.f32 %v1496_v4, %v3334_v43 }
 0x1a0   : > { %v3342_v2 = vadd.f32 %v3182_v8, %v1220_v47  ;;  %v1451_v0 = vadd.f32 0.18741608, %v1450_v38 }
 0x1a1   : > { %v2305_v7 = vpop.eup %2304  ;;  %v1463_v62 = vmul.f32 %v1462_v13, %v3314_v12  ;;  %v1498_v1 = vadd.f32 0.014752088, %v1497_v27  ;;  %v1487_v10 = vadd.f32 0.0036580483, %v1486_v24  ;;  %v1253_v27 = vmul.f32 0.5, %v3267_v29 }
 0x1a2   : > { %v1426_v20 = vmul.f32 %v2305_v7, %v1424_v52  ;;  %v3350_v40 = vmul.f32 0.70710677, %v3342_v2  ;;  %vm1431_vm6 = vweird.f32 %v2305_v7  ;;  %v1452_v30 = vmul.f32 %v1451_v0, %v3314_v12 }
 0x1a3   : > { %v1499_v31 = vmul.f32 %v1498_v1, %v3334_v43  ;;  %v3353_v60 = vadd.f32 1.0, %v1463_v62  ;;  %vm1432_vm9 = vmor %vm1430_vm7, %vm1431_vm6  ;;  %v1488_v44 = vmul.f32 %v1487_v10, %v3334_v43  ;;  %v3396_v12 = vmul.f32 0.5, %v3298_v15 }
 0x1a4   : > { %v1427_v49 = vsub.f32 1.0, %v1426_v20  ;;  %v1522_v48 = vmul.f32 %v3350_v40, %v3350_v40  ;;  %v1453_v62 = vadd.f32 1.1283791, %v1452_v30  ;;  %v3407_v29 = vmul.f32 0.5, %v3342_v2 }
 0x1a5   : > { %v1500_v50 = vadd.f32 0.112945676, %v1499_v31  ;;  %2306 = vrcp.f32 %v3353_v60  ;;  %v1489_v52 = vadd.f32 0.05243302, %v1488_v44  ;;  %vm1470_vm10 = vweird.f32 %v3353_v60 }
 0x1a6   : > { %v1428_v37 = vmul.f32 %v2305_v7, %v1427_v49  ;;  %v3362_v6 = vmin.f32 %v1522_v48, 16.0  ;;  %v1474_v44 = vand.u32 2147483647, %v3353_v60 }
 0x1a7   : > { %v1223_v33 = vpop.f32.mrf.mxu1  ;;  %v1501_v22 = vmul.f32 %v1500_v50, %v3334_v43  ;;  %v1490_v5 = vmul.f32 %v1489_v52, %v3334_v43 }
 0x1a8   : > { %v1429_v17 = vadd.f32 %v2305_v7, %v1428_v37  ;;  %v3358_v14 = vadd.f32 %v3182_v8, %v1223_v33  ;;  %v1524_v55 = vmul.f32 2.1237322e-06, %v3362_v6  ;;  %v1535_v9 = vmul.f32 3.8918573e-05, %v3362_v6 }
 0x1a9   : > { %v1502_v36 = vadd.f32 0.4994258, %v1501_v22  ;;  %v1491_v1 = vadd.f32 0.18741608, %v1490_v5  ;;  %vm3449_vm12 = vcmp.eq.f32.partialorder %v1474_v44, 8.507059e+37 }
 0x1aa   : > { %v1433_v54 = vsel %vm1432_vm9, %v2305_v7, %v1429_v17  ;;  %v3367_v45 = vmul.f32 0.70710677, %v3358_v14  ;;  %v1525_v53 = vadd.f32 0.00028619796, %v1524_v55  ;;  %v1536_v46 = vadd.f32 0.001143296, %v1535_v9 }
 0x1ab   : > { %v1438_v59 = vsel %vm1435_vm8, %v1437_v21, %v1433_v54  ;;  %v1503_v39 = vmul.f32 %v1502_v36, %v3334_v43  ;;  %v3378_v51 = vpop.eup %2306  ;;  %v3417_v21 = vmul.f32 %v1453_v62, %v3305_v3  ;;  %v1492_v2 = vmul.f32 %v1491_v1, %v3334_v43 }
 0x1ac   : > { %v1562_v35 = vmul.f32 %v3367_v45, %v3367_v45  ;;  %v1439_v11 = vmul.f32 %v1438_v59, %v1414_v58  ;;  %v1526_v18 = vmul.f32 %v1525_v53, %v3362_v6  ;;  %v1537_v61 = vmul.f32 %v1536_v46, %v3362_v6 }
 0x1ad   : > { %v3380_v16 = vadd.f32 1.0, %v1503_v39  ;;  %v1466_v7 = vmul.f32 %v3378_v51, %v3353_v60  ;;  %v1476_v43 = vand.u32 2147483648, %v3353_v60  ;;  %vm1471_vm11 = vweird.f32 %v3378_v51 }
 0x1ae   : > { %v3375_v57 = vmin.f32 %v1562_v35, 16.0  ;;  %v1527_v32 = vadd.f32 0.0036580483, %v1526_v18  ;;  %v2208_v13 = vclamps-f32 %v1439_v11, 1.0  ;;  %v1538_v24 = vadd.f32 0.014752088, %v1537_v61  ;;  %vm3461_vm13 = vmor %vm1470_vm10, %vm1471_vm11 }
 0x1af   : > { %v1226_v19 = vpop.f32.mrf.mxu1  ;;  %2308 = vrcp.f32 %v3380_v16  ;;  %v1467_v31 = vsub.f32 1.0, %v1466_v7  ;;  %v1493_v52 = vadd.f32 1.1283791, %v1492_v2  ;;  %v1514_v62 = vand.u32 2147483647, %v3380_v16 }
 0x1b0   : > { %v1575_v63 = vmul.f32 3.8918573e-05, %v3375_v57  ;;  %v1564_v4 = vmul.f32 2.1237322e-06, %v3375_v57  ;;  %v3388_v47 = vadd.f32 %v3182_v8, %v1226_v19  ;;  %v1528_v23 = vmul.f32 %v1527_v32, %v3362_v6 }
 0x1b1   : > { %v1539_v49 = vmul.f32 %v1538_v24, %v3362_v6  ;;  %v1925_v10 = vadd.f32 1.0, %v2208_v13  ;;  %v1468_v55 = vmul.f32 %v3378_v51, %v1467_v31  ;;  %v1477_v24 = vor.u32 1.1754944e-38, %v1476_v43 }
 0x1b2   : > { %v1576_v20 = vadd.f32 0.001143296, %v1575_v63  ;;  %v1565_v28 = vadd.f32 0.00028619796, %v1564_v4  ;;  %v3404_v34 = vmul.f32 0.70710677, %v3388_v47  ;;  %vm1510_vm14 = vweird.f32 %v3380_v16 }
 0x1b3   : > { %v1529_v15 = vadd.f32 0.05243302, %v1528_v23  ;;  %v1540_v37 = vadd.f32 0.112945676, %v1539_v49  ;;  %v1941_v17 = vmul.f32 %v1925_v10, %v1253_v27  ;;  %v1469_v61 = vadd.f32 %v3378_v51, %v1468_v55 }
 0x1b4   : > { %v1577_v26 = vmul.f32 %v1576_v20, %v3375_v57  ;;  %v1602_v56 = vmul.f32 %v3404_v34, %v3404_v34  ;;  %v1566_v54 = vmul.f32 %v1565_v28, %v3375_v57  ;;  %v3455_v27 = vmul.f32 0.5, %v3358_v14 }
 0x1b5   : > { %v3414_v50 = vpop.eup %2308  ;;  %v1541_v38 = vmul.f32 %v1540_v37, %v3362_v6  ;;  %2224 = vmatmul.msk.f32.gmra.mxu2 %vm306_vm0, %v1941_v17  ;;  %v1530_v3 = vmul.f32 %v1529_v15, %v3362_v6  ;;  %v1516_v1 = vand.u32 2147483648, %v3380_v16  ;;  %v1473_v14 = vsel %vm3461_vm13, %v3378_v51, %v1469_v61 }
 0x1b6   : > { %v1578_v48 = vadd.f32 0.014752088, %v1577_v26  ;;  %v3425_v59 = vmin.f32 %v1602_v56, 16.0  ;;  %v1506_v36 = vmul.f32 %v3414_v50, %v3380_v16  ;;  %v1567_v39 = vadd.f32 0.0036580483, %v1566_v54 }
 0x1b7   : > { %v1229_v25 = vpop.f32.mrf.mxu1  ;;  %v1542_v9 = vadd.f32 0.4994258, %v1541_v38  ;;  %v1531_v63 = vadd.f32 0.18741608, %v1530_v3  ;;  %v3475_v15 = vmul.f32 %v1493_v52, %v3326_v41  ;;  %v1478_v17 = vsel %vm3449_vm12, %v1477_v24, %v1473_v14 }
 0x1b8   : > { %v3412_v33 = vadd.f32 %v3182_v8, %v1229_v25  ;;  %v1579_v22 = vmul.f32 %v1578_v48, %v3375_v57  ;;  %v1604_v0 = vmul.f32 2.1237322e-06, %v3425_v59  ;;  %v1615_v11 = vmul.f32 3.8918573e-05, %v3425_v59 }
 0x1b9   : > { %v1543_v53 = vmul.f32 %v1542_v9, %v3362_v6  ;;  %v1507_v32 = vsub.f32 1.0, %v1506_v36  ;;  %v1568_v49 = vmul.f32 %v1567_v39, %v3375_v57  ;;  %v1532_v26 = vmul.f32 %v1531_v63, %v3362_v6 }
 0x1ba   : > { %v3431_v58 = vmul.f32 0.70710677, %v3412_v33  ;;  %v1580_v35 = vadd.f32 0.112945676, %v1579_v22  ;;  %v1605_v18 = vadd.f32 0.00028619796, %v1604_v0  ;;  %vm1511_vm1 = vweird.f32 %v3414_v50 }
 0x1bb   : > { %v3444_v30 = vadd.f32 1.0, %v1543_v53  ;;  %v1616_v5 = vadd.f32 0.001143296, %v1615_v11  ;;  %v1508_v37 = vmul.f32 %v3414_v50, %v1507_v32  ;;  %vm3486_vm15 = vcmp.eq.f32.partialorder %v1514_v62, 8.507059e+37  ;;  %vm3510_vm2 = vmor %vm1510_vm14, %vm1511_vm1 }
 0x1bc   : > { %v1581_v46 = vmul.f32 %v1580_v35, %v3375_v57  ;;  %v1642_v19 = vmul.f32 %v3431_v58, %v3431_v58  ;;  %v1606_v13 = vmul.f32 %v1605_v18, %v3425_v59  ;;  %v1569_v41 = vadd.f32 0.05243302, %v1568_v49 }
 0x1bd   : > { %2310 = vrcp.f32 %v3444_v30  ;;  %v1617_v60 = vmul.f32 %v1616_v5, %v3425_v59  ;;  %v1517_v54 = vor.u32 1.1754944e-38, %v1516_v1  ;;  %v1533_v22 = vadd.f32 1.1283791, %v1532_v26 }
 0x1be   : > { %v1582_v4 = vadd.f32 0.4994258, %v1581_v46  ;;  %v3447_v7 = vmin.f32 %v1642_v19, 16.0  ;;  %v1607_v10 = vadd.f32 0.0036580483, %v1606_v13  ;;  %v1509_v9 = vadd.f32 %v3414_v50, %v1508_v37 }
 0x1bf   : > { %v1232_v31 = vpop.f32.mrf.mxu1  ;;  %v1618_v51 = vadd.f32 0.014752088, %v1617_v60  ;;  %v1479_v35 = vmul.f32 %v1478_v17, %v3417_v21  ;;  %v1570_v39 = vmul.f32 %v1569_v41, %v3375_v57  ;;  %v3515_v21 = vmul.f32 %v1533_v22, %v3350_v40 }
 0x1c0   : > { %v1583_v28 = vmul.f32 %v1582_v4, %v3375_v57  ;;  %v1644_v48 = vmul.f32 2.1237322e-06, %v3447_v7  ;;  %v1608_v56 = vmul.f32 %v1607_v10, %v3425_v59  ;;  %v1655_v6 = vmul.f32 3.8918573e-05, %v3447_v7 }
 0x1c1   : > { %v3492_v38 = vadd.f32 %v3182_v8, %v1232_v31  ;;  %v1619_v55 = vmul.f32 %v1618_v51, %v3425_v59  ;;  %v3518_v61 = vmul.f32 0.5, %v3388_v47  ;;  %v1513_v4 = vsel %vm3510_vm2, %v3414_v50, %v1509_v9 }
 0x1c2   : > { %v3478_v25 = vadd.f32 1.0, %v1583_v28  ;;  %v1645_v3 = vadd.f32 0.00028619796, %v1644_v48  ;;  %v1656_v36 = vadd.f32 0.001143296, %v1655_v6  ;;  %v2209_v20 = vclamps-f32 %v1479_v35, 1.0 }
 0x1c3   : > { %v3494_v44 = vpop.eup %2310  ;;  %v1609_v0 = vadd.f32 0.05243302, %v1608_v56  ;;  %v1620_v52 = vadd.f32 0.112945676, %v1619_v55  ;;  %v3506_v18 = vmul.f32 0.70710677, %v3492_v38  ;;  %vm1550_vm3 = vweird.f32 %v3444_v30 }
 0x1c4   : > { %2312 = vrcp.f32 %v3478_v25  ;;  %v1546_v43 = vmul.f32 %v3494_v44, %v3444_v30  ;;  %v1646_v53 = vmul.f32 %v1645_v3, %v3447_v7  ;;  %v1657_v46 = vmul.f32 %v1656_v36, %v3447_v7 }
 0x1c5   : > { %v1621_v63 = vmul.f32 %v1620_v52, %v3425_v59  ;;  %v1682_v23 = vmul.f32 %v3506_v18, %v3506_v18  ;;  %v1610_v47 = vmul.f32 %v1609_v0, %v3425_v59  ;;  %v1571_v62 = vadd.f32 0.18741608, %v1570_v39 }
 0x1c6   : > { %v1547_v11 = vsub.f32 1.0, %v1546_v43  ;;  %v1647_v5 = vadd.f32 0.0036580483, %v1646_v53  ;;  %v1658_v13 = vadd.f32 0.014752088, %v1657_v46  ;;  %v1518_v50 = vsel %vm3486_vm15, %v1517_v54, %v1513_v4 }
 0x1c7   : > { %v1622_v24 = vadd.f32 0.4994258, %v1621_v63  ;;  %v3534_v49 = vmin.f32 %v1682_v23, 16.0  ;;  %v1556_v28 = vand.u32 2147483648, %v3444_v30  ;;  %vm1551_vm4 = vweird.f32 %v3494_v44  ;;  %v1235_v37 = vpop.f32.mrf.mxu1 }
 0x1c8   : > { %v1548_v16 = vmul.f32 %v3494_v44, %v1547_v11  ;;  %v1659_v1 = vmul.f32 %v1658_v13, %v3447_v7  ;;  %v1648_v26 = vmul.f32 %v1647_v5, %v3447_v7  ;;  %v1611_v56 = vadd.f32 0.18741608, %v1610_v47  ;;  %vm3552_vm5 = vmor %vm1550_vm3, %vm1551_vm4 }
 0x1c9   : > { %v1623_v14 = vmul.f32 %v1622_v24, %v3425_v59  ;;  %v1684_v31 = vmul.f32 2.1237322e-06, %v3534_v49  ;;  %v1926_v6 = vadd.f32 1.0, %v2209_v20  ;;  %v1554_v17 = vand.u32 2147483647, %v3444_v30 }
 0x1ca   : > { %v3521_v32 = vpop.eup %2312  ;;  %v1549_v10 = vadd.f32 %v3494_v44, %v1548_v16  ;;  %v1660_v60 = vadd.f32 0.112945676, %v1659_v1  ;;  %v1572_v2 = vmul.f32 %v1571_v62, %v3375_v57  ;;  %v1519_v22 = vmul.f32 %v1518_v50, %v3475_v15 }
 0x1cb   : > { %v1586_v40 = vmul.f32 %v3521_v32, %v3478_v25  ;;  %v3544_v51 = vadd.f32 1.0, %v1623_v14  ;;  %v1685_v54 = vadd.f32 0.00028619796, %v1684_v31  ;;  %v1557_v3 = vor.u32 1.1754944e-38, %v1556_v28 }
 0x1cc   : > { %v1661_v41 = vmul.f32 %v1660_v60, %v3447_v7  ;;  %v1649_v9 = vadd.f32 0.05243302, %v1648_v26  ;;  %v3557_v43 = vadd.f32 %v3182_v8, %v1235_v37  ;;  %v1553_v57 = vsel %vm3552_vm5, %v3494_v44, %v1549_v10 }
 0x1cd   : > { %v1587_v48 = vsub.f32 1.0, %v1586_v40  ;;  %2314 = vrcp.f32 %v3544_v51  ;;  %v1686_v15 = vmul.f32 %v1685_v54, %v3534_v49  ;;  %v1612_v35 = vmul.f32 %v1611_v56, %v3425_v59 }
 0x1ce   : > { %v1662_v36 = vadd.f32 0.4994258, %v1661_v41  ;;  %v1695_v0 = vmul.f32 3.8918573e-05, %v3534_v49  ;;  %v1942_v52 = vmul.f32 %v1926_v6, %v3396_v12  ;;  %vm1555_vm6 = vcmp.eq.f32.partialorder %v1554_v17, 8.507059e+37 }
 0x1cf   : > { %v1588_v30 = vmul.f32 %v3521_v32, %v1587_v48  ;;  %v1573_v53 = vadd.f32 1.1283791, %v1572_v2  ;;  %v1594_v11 = vand.u32 2147483647, %v3478_v25  ;;  %v1558_v44 = vsel %vm1555_vm6, %v1557_v3, %v1553_v57 }
 0x1d0   : > { %v1663_v39 = vmul.f32 %v1662_v36, %v3447_v7  ;;  %v1650_v46 = vmul.f32 %v1649_v9, %v3447_v7  ;;  %v1687_v19 = vadd.f32 0.0036580483, %v1686_v15  ;;  %v1696_v63 = vadd.f32 0.001143296, %v1695_v0  ;;  %2225 = vmatmul.msk.f32.gmra.mxu2 %vm306_vm0, %v1942_v52  ;;  %v1238_v5 = vpop.f32.mrf.mxu3 }
 0x1d1   : > { %v1596_v59 = vand.u32 2147483648, %v3478_v25  ;;  %v3576_v12 = vmul.f32 0.70710677, %v3557_v43  ;;  %v2210_v16 = vclamps-f32 %v1519_v22, 1.0  ;;  %v1589_v13 = vadd.f32 %v3521_v32, %v1588_v30 }
 0x1d2   : > { %v3573_v4 = vadd.f32 1.0, %v1663_v39  ;;  %vm1591_vm7 = vweird.f32 %v3521_v32  ;;  %v1613_v23 = vadd.f32 1.1283791, %v1612_v35  ;;  %v1697_v40 = vmul.f32 %v1696_v63, %v3534_v49 }
 0x1d3   : > { %v3581_v47 = vpop.eup %2314  ;;  %v1559_v24 = vmul.f32 %v1558_v44, %v3515_v21  ;;  %v1574_v20 = vmul.f32 %v1573_v53, %v3367_v45  ;;  %v3586_v62 = vmul.f32 0.5, %v3412_v33  ;;  %vm1590_vm8 = vweird.f32 %v3478_v25 }
 0x1d4   : > { %2316 = vrcp.f32 %v3573_v4  ;;  %v1651_v1 = vadd.f32 0.18741608, %v1650_v46  ;;  %v1688_v50 = vmul.f32 %v1687_v19, %v3534_v49  ;;  %v3592_v28 = vadd.f32 %v3182_v8, %v1238_v5  ;;  %vm3594_vm9 = vmor %vm1590_vm8, %vm1591_vm7  ;;  %v3644_v19 = vld [vmem:[%s3938_s4] ss:$0 sm:$0xff] }
 0x1d5   : > { %vm3598_vm10 = vcmp.eq.f32.partialorder %v1594_v11, 8.507059e+37  ;;  %v1698_v45 = vadd.f32 0.014752088, %v1697_v40  ;;  %v1722_v33 = vmul.f32 %v3576_v12, %v3576_v12  ;;  %v1927_v26 = vadd.f32 1.0, %v2210_v16 }
 0x1d6   : > { %v1593_v25 = vsel %vm3594_vm9, %v3521_v32, %v1589_v13  ;;  %v1597_v10 = vor.u32 1.1754944e-38, %v1596_v59  ;;  %v3608_v8 = vmul.f32 %v1613_v23, %v3404_v34  ;;  %v1626_v60 = vmul.f32 %v3581_v47, %v3544_v51 }
 0x1d7   : > { %v1699_v31 = vmul.f32 %v1698_v45, %v3534_v49  ;;  %v3613_v37 = vmin.f32 %v1722_v33, 16.0  ;;  %v1943_v48 = vmul.f32 %v1927_v26, %v3399_v42  ;;  %v2211_v56 = vclamps-f32 %v1559_v24, 1.0 }
 0x1d8   : > { %v1634_v6 = vand.u32 2147483647, %v3544_v51  ;;  %v1652_v17 = vmul.f32 %v1651_v1, %v3447_v7  ;;  %v1689_v2 = vadd.f32 0.05243302, %v1688_v50  ;;  %v3619_v32 = vmul.f32 0.70710677, %v3592_v28  ;;  %v1241_v57 = vpop.f32.mrf.mxu3 }
 0x1d9   : > { %v1598_v41 = vsel %vm3598_vm10, %v1597_v10, %v1593_v25  ;;  %v1700_v54 = vadd.f32 0.112945676, %v1699_v31  ;;  %v1724_v22 = vmul.f32 2.1237322e-06, %v3613_v37  ;;  %v1735_v55 = vmul.f32 3.8918573e-05, %v3613_v37  ;;  %2226 = vmatmul.msk.f32.gmra.mxu2 %vm306_vm0, %v1943_v48 }
 0x1da   : > { %v3621_v34 = vpop.eup %2316  ;;  %v1627_v42 = vsub.f32 1.0, %v1626_v60  ;;  %v1636_v3 = vand.u32 2147483648, %v3544_v51  ;;  %v1762_v9 = vmul.f32 %v3619_v32, %v3619_v32  ;;  %v1928_v35 = vadd.f32 1.0, %v2211_v56 }
 0x1db   : > { %v1666_v7 = vmul.f32 %v3621_v34, %v3573_v4  ;;  %v1701_v36 = vmul.f32 %v1700_v54, %v3534_v49  ;;  %v1725_v15 = vadd.f32 0.00028619796, %v1724_v22  ;;  %v1736_v30 = vadd.f32 0.001143296, %v1735_v55 }
 0x1dc   : > { %v1599_v0 = vmul.f32 %v1598_v41, %v1574_v20  ;;  %v3634_v52 = vadd.f32 1.1283791, %v1652_v17  ;;  %v1690_v53 = vmul.f32 %v1689_v2, %v3534_v49  ;;  %v3637_v11 = vmin.f32 %v1762_v9, 16.0 }
 0x1dd   : > { %v1702_v39 = vadd.f32 0.4994258, %v1701_v36  ;;  %v1726_v44 = vmul.f32 %v1725_v15, %v3613_v37  ;;  %v1737_v46 = vmul.f32 %v1736_v30, %v3613_v37  ;;  %v3647_v63 = vadd.f32 %v3644_v19, %v1241_v57 }
 0x1de   : > { %v1628_v5 = vmul.f32 %v3581_v47, %v1627_v42  ;;  %v1667_v59 = vsub.f32 1.0, %v1666_v7  ;;  %v1764_v16 = vmul.f32 2.1237322e-06, %v3637_v11  ;;  %v1775_v13 = vmul.f32 3.8918573e-05, %v3637_v11 }
 0x1df   : > { %v1703_v23 = vmul.f32 %v1702_v39, %v3534_v49  ;;  %v1727_v40 = vadd.f32 0.0036580483, %v1726_v44  ;;  %v1738_v24 = vadd.f32 0.014752088, %v1737_v46  ;;  %v1944_v20 = vmul.f32 %v1928_v35, %v3407_v29 }
 0x1e0   : > { %vm1630_vm11 = vweird.f32 %v3544_v51  ;;  %v1674_v1 = vand.u32 2147483647, %v3573_v4  ;;  %v1765_v50 = vadd.f32 0.00028619796, %v1764_v16  ;;  %v1776_v14 = vadd.f32 0.001143296, %v1775_v13 }
 0x1e1   : > { %vm3656_vm12 = vcmp.eq.f32.partialorder %v1634_v6, 8.507059e+37  ;;  %v3660_v45 = vadd.f32 1.0, %v1703_v23  ;;  %v1728_v33 = vmul.f32 %v1727_v40, %v3613_v37  ;;  %v1739_v26 = vmul.f32 %v1738_v24, %v3613_v37  ;;  %2227 = vmatmul.msk.f32.gmra.mxu2 %vm306_vm0, %v1944_v20 }
 0x1e2   : > { %v3666_v29 = vmul.f32 0.70710677, %v3647_v63  ;;  %v1691_v25 = vadd.f32 0.18741608, %v1690_v53  ;;  %v1766_v10 = vmul.f32 %v1765_v50, %v3637_v11  ;;  %v1777_v60 = vmul.f32 %v1776_v14, %v3637_v11 }
 0x1e3   : > { %v2212_v31 = vclamps-f32 %v1599_v0, 1.0  ;;  %v1629_v48 = vadd.f32 %v3581_v47, %v1628_v5  ;;  %vm1631_vm13 = vweird.f32 %v3581_v47  ;;  %v1668_v56 = vmul.f32 %v3621_v34, %v1667_v59  ;;  %v1244_v0 = vpop.f32.mrf.mxu3 }
 0x1e4   : > { %2318 = vrcp.f32 %v3660_v45  ;;  %v1637_v6 = vor.u32 1.1754944e-38, %v1636_v3  ;;  %v1676_v17 = vand.u32 2147483648, %v3573_v4  ;;  %v1729_v2 = vadd.f32 0.05243302, %v1728_v33  ;;  %vm3684_vm1 = vmor %vm1630_vm11, %vm1631_vm13 }
 0x1e5   : > { %v1740_v41 = vadd.f32 0.112945676, %v1739_v26  ;;  %vm1671_vm14 = vweird.f32 %v3621_v34  ;;  %vm3676_vm15 = vcmp.eq.f32.partialorder %v1674_v1, 8.507059e+37  ;;  %v1767_v22 = vadd.f32 0.0036580483, %v1766_v10 }
 0x1e6   : > { %v1778_v55 = vadd.f32 0.014752088, %v1777_v60  ;;  %v1802_v42 = vmul.f32 %v3666_v29, %v3666_v29  ;;  %v1692_v3 = vmul.f32 %v1691_v25, %v3534_v49  ;;  %v1730_v9 = vmul.f32 %v1729_v2, %v3613_v37 }
 0x1e7   : > { %v1741_v57 = vmul.f32 %v1740_v41, %v3613_v37  ;;  %v1929_v36 = vadd.f32 1.0, %v2212_v31  ;;  %v1633_v15 = vsel %vm3684_vm1, %v3581_v47, %v1629_v48  ;;  %v1669_v30 = vadd.f32 %v3621_v34, %v1668_v56 }
 0x1e8   : > { %v1779_v35 = vmul.f32 %v1778_v55, %v3637_v11  ;;  %v3696_v51 = vmin.f32 %v1802_v42, 16.0  ;;  %v1677_v53 = vor.u32 1.1754944e-38, %v1676_v17  ;;  %v1768_v49 = vmul.f32 %v1767_v22, %v3637_v11 }
 0x1e9   : > { %v1742_v39 = vadd.f32 0.4994258, %v1741_v57  ;;  %v1945_v44 = vmul.f32 %v1929_v36, %v3455_v27  ;;  %vm1670_vm2 = vweird.f32 %v3573_v4  ;;  %v1731_v5 = vadd.f32 0.18741608, %v1730_v9 }
 0x1ea   : > { %v3700_v46 = vpop.eup %2318  ;;  %v1780_v59 = vadd.f32 0.112945676, %v1779_v35  ;;  %v1804_v47 = vmul.f32 2.1237322e-06, %v3696_v51  ;;  %v1638_v16 = vsel %vm3656_vm12, %v1637_v6, %v1633_v15  ;;  %vm3708_vm3 = vmor %vm1670_vm2, %vm1671_vm14  ;;  %v1693_v23 = vadd.f32 1.1283791, %v1692_v3 }
 0x1eb   : > { %v1706_v27 = vmul.f32 %v3700_v46, %v3660_v45  ;;  %v1743_v40 = vmul.f32 %v1742_v39, %v3613_v37  ;;  %2228 = vmatmul.msk.f32.gmra.mxu2 %vm306_vm0, %v1945_v44  ;;  %v1673_v4 = vsel %vm3708_vm3, %v3621_v34, %v1669_v30  ;;  %v1815_v1 = vmul.f32 3.8918573e-05, %v3696_v51  ;;  %v1247_v55 = vpop.f32.mrf.mxu3 }
 0x1ec   : > { %v1781_v24 = vmul.f32 %v1780_v59, %v3637_v11  ;;  %v1805_v20 = vadd.f32 0.00028619796, %v1804_v47  ;;  %v1769_v21 = vadd.f32 0.05243302, %v1768_v49  ;;  %v3724_v33 = vadd.f32 %v3644_v19, %v1244_v0 }
 0x1ed   : > { %v1707_v50 = vsub.f32 1.0, %v1706_v27  ;;  %v3721_v14 = vadd.f32 1.0, %v1743_v40  ;;  %v1732_v26 = vmul.f32 %v1731_v5, %v3613_v37  ;;  %v1816_v60 = vadd.f32 0.001143296, %v1815_v1 }
 0x1ee   : > { %v1782_v25 = vadd.f32 0.4994258, %v1781_v24  ;;  %v1806_v10 = vmul.f32 %v1805_v20, %v3696_v51  ;;  %v1639_v34 = vmul.f32 %v1638_v16, %v3608_v8  ;;  %v1654_v31 = vmul.f32 %v3634_v52, %v3431_v58 }
 0x1ef   : > { %v1678_v48 = vsel %vm3676_vm15, %v1677_v53, %v1673_v4  ;;  %2320 = vrcp.f32 %v3721_v14  ;;  %v1708_v56 = vmul.f32 %v3700_v46, %v1707_v50  ;;  %v1714_v6 = vand.u32 2147483647, %v3660_v45 }
 0x1f0   : > { %v1716_v37 = vand.u32 2147483648, %v3660_v45  ;;  %v1783_v17 = vmul.f32 %v1782_v25, %v3637_v11  ;;  %v1770_v2 = vmul.f32 %v1769_v21, %v3637_v11  ;;  %v1807_v41 = vadd.f32 0.0036580483, %v1806_v10 }
 0x1f1   : > { %v1817_v8 = vmul.f32 %v1816_v60, %v3696_v51  ;;  %v3741_v58 = vmul.f32 0.70710677, %v3724_v33  ;;  %v1694_v52 = vmul.f32 %v1693_v23, %v3506_v18  ;;  %vm1710_vm4 = vweird.f32 %v3660_v45 }
 0x1f2   : > { %v1733_v54 = vadd.f32 1.1283791, %v1732_v26  ;;  %v3745_v22 = vadd.f32 1.0, %v1783_v17  ;;  %v1808_v42 = vmul.f32 %v1807_v41, %v3696_v51  ;;  %v2213_v9 = vclamps-f32 %v1639_v34, 1.0 }
 0x1f3   : > { %v1818_v7 = vadd.f32 0.014752088, %v1817_v8  ;;  %v1842_v3 = vmul.f32 %v3741_v58, %v3741_v58  ;;  %v1679_v57 = vmul.f32 %v1678_v48, %v1654_v31  ;;  %v1709_v36 = vadd.f32 %v3700_v46, %v1708_v56 }
 0x1f4   : > { %vm1711_vm5 = vweird.f32 %v3700_v46  ;;  %2322 = vrcp.f32 %v3745_v22  ;;  %vm3753_vm6 = vcmp.eq.f32.partialorder %v1714_v6, 8.507059e+37  ;;  %v1717_v30 = vor.u32 1.1754944e-38, %v1716_v37 }
 0x1f5   : > { %v2321_v18 = vpop.eup %2320  ;;  %v1771_v35 = vadd.f32 0.18741608, %v1770_v2  ;;  %v3758_v0 = vadd.f32 %v3644_v19, %v1247_v55  ;;  %v1734_v53 = vmul.f32 %v1733_v54, %v3576_v12  ;;  %v1819_v49 = vmul.f32 %v1818_v7, %v3696_v51  ;;  %vm3767_vm7 = vmor %vm1710_vm4, %vm1711_vm5 }
 0x1f6   : > { %v1746_v39 = vmul.f32 %v2321_v18, %v3721_v14  ;;  %v3763_v44 = vmin.f32 %v1842_v3, 16.0  ;;  %vm1750_vm8 = vweird.f32 %v3721_v14  ;;  %v1754_v59 = vand.u32 2147483647, %v3721_v14 }
 0x1f7   : > { %v1809_v19 = vadd.f32 0.05243302, %v1808_v42  ;;  %v1930_v47 = vadd.f32 1.0, %v2213_v9  ;;  %v1713_v12 = vsel %vm3767_vm7, %v3700_v46, %v1709_v36  ;;  %v1820_v13 = vadd.f32 0.112945676, %v1819_v49 }
 0x1f8   : > { %v1747_v16 = vsub.f32 1.0, %v1746_v39  ;;  %v1844_v23 = vmul.f32 2.1237322e-06, %v3763_v44  ;;  %vm1751_vm9 = vweird.f32 %v2321_v18  ;;  %v1855_v45 = vmul.f32 3.8918573e-05, %v3763_v44 }
 0x1f9   : > { %v1946_v27 = vmul.f32 %v1930_v47, %v3518_v61  ;;  %v3780_v40 = vmul.f32 0.70710677, %v3758_v0  ;;  %v1821_v20 = vmul.f32 %v1820_v13, %v3696_v51  ;;  %v2214_v50 = vclamps-f32 %v1679_v57, 1.0  ;;  %vm3798_vm10 = vmor %vm1750_vm8, %vm1751_vm9 }
 0x1fa   : > { %v3782_v4 = vpop.eup %2322  ;;  %v1748_v24 = vmul.f32 %v2321_v18, %v1747_v16  ;;  %v1845_v1 = vadd.f32 0.00028619796, %v1844_v23  ;;  %v1756_v46 = vand.u32 2147483648, %v3721_v14  ;;  %v1772_v21 = vmul.f32 %v1771_v35, %v3637_v11 }
 0x1fb   : > { %v1786_v26 = vmul.f32 %v3782_v4, %v3745_v22  ;;  %v1856_v25 = vadd.f32 0.001143296, %v1855_v45  ;;  %2229 = vmatmul.msk.f32.gmra.mxu2 %vm306_vm0, %v1946_v27  ;;  %v1822_v10 = vadd.f32 0.4994258, %v1821_v20  ;;  %v1882_v34 = vmul.f32 %v3780_v40, %v3780_v40 }
 0x1fc   : > { %v1749_v61 = vadd.f32 %v2321_v18, %v1748_v24  ;;  %v1846_v60 = vmul.f32 %v1845_v1, %v3763_v44  ;;  %v1718_v31 = vsel %vm3753_vm6, %v1717_v30, %v1713_v12  ;;  %v1931_v6 = vadd.f32 1.0, %v2214_v50 }
 0x1fd   : > { %v1787_v48 = vsub.f32 1.0, %v1786_v26  ;;  %v1857_v56 = vmul.f32 %v1856_v25, %v3763_v44  ;;  %v1810_v17 = vmul.f32 %v1809_v19, %v3696_v51  ;;  %v1823_v2 = vmul.f32 %v1822_v10, %v3696_v51 }
 0x1fe   : > { %v1753_v37 = vsel %vm3798_vm10, %v2321_v18, %v1749_v61  ;;  %v3807_v41 = vmin.f32 %v1882_v34, 16.0  ;;  %v1757_v8 = vor.u32 1.1754944e-38, %v1756_v46  ;;  %v1847_v54 = vadd.f32 0.0036580483, %v1846_v60 }
 0x1ff   : > { %v1788_v14 = vmul.f32 %v3782_v4, %v1787_v48  ;;  %v1858_v55 = vadd.f32 0.014752088, %v1857_v56  ;;  %v1719_v42 = vmul.f32 %v1718_v31, %v1694_v52  ;;  %vm1755_vm11 = vcmp.eq.f32.partialorder %v1754_v59, 8.507059e+37 }
 0x200   : > { %v3810_v7 = vadd.f32 1.0, %v1823_v2  ;;  %v1884_v3 = vmul.f32 2.1237322e-06, %v3807_v41  ;;  %v1758_v9 = vsel %vm1755_vm11, %v1757_v8, %v1753_v37  ;;  %v1895_v36 = vmul.f32 3.8918573e-05, %v3807_v41 }
 0x201   : > { %v1859_v57 = vmul.f32 %v1858_v55, %v3763_v44  ;;  %v1947_v18 = vmul.f32 %v1931_v6, %v3586_v62  ;;  %v1789_v15 = vadd.f32 %v3782_v4, %v1788_v14  ;;  %vm1791_vm12 = vweird.f32 %v3782_v4 }
 0x202   : > { %v1811_v30 = vadd.f32 0.18741608, %v1810_v17  ;;  %2324 = vrcp.f32 %v3810_v7  ;;  %v1796_v52 = vand.u32 2147483648, %v3745_v22  ;;  %v1848_v35 = vmul.f32 %v1847_v54, %v3763_v44 }
 0x203   : > { %v1860_v39 = vadd.f32 0.112945676, %v1859_v57  ;;  %v1885_v49 = vadd.f32 0.00028619796, %v1884_v3  ;;  %2230 = vmatmul.msk.f32.gmra.mxu2 %vm306_vm0, %v1947_v18  ;;  %v1759_v5 = vmul.f32 %v1758_v9, %v1734_v53  ;;  %vm1790_vm13 = vweird.f32 %v3745_v22  ;;  %v3855_v9 = vld [vmem:[%s3940_s6] ss:$0 sm:$0xff]  ;;  %v2027_v57 = vpop.f32.mrf.mxu2 }
 0x204   : > { %v1794_v62 = vand.u32 2147483647, %v3745_v22  ;;  %v1896_v59 = vadd.f32 0.001143296, %v1895_v36  ;;  %v1773_v19 = vadd.f32 1.1283791, %v1772_v21  ;;  %vm3824_vm14 = vmor %vm1790_vm13, %vm1791_vm12  ;;  %v1812_v53 = vmul.f32 %v1811_v30, %v3696_v51 }
 0x205   : > { %v1861_v12 = vmul.f32 %v1860_v39, %v3763_v44  ;;  %v1886_v16 = vmul.f32 %v1885_v49, %v3807_v41  ;;  %v1793_v13 = vsel %vm3824_vm14, %v3782_v4, %v1789_v15  ;;  %v2215_v45 = vclamps-f32 %v1719_v42, 1.0 }
 0x206   : > { %v1897_v23 = vmul.f32 %v1896_v59, %v3807_v41  ;;  %v1260_v22 = vmul.f32 0.5, %v3492_v38  ;;  %v1797_v27 = vor.u32 1.1754944e-38, %v1796_v52  ;;  %v1849_v24 = vadd.f32 0.05243302, %v1848_v35 }
 0x207   : > { %v1862_v20 = vadd.f32 0.4994258, %v1861_v12  ;;  %vm1795_vm15 = vcmp.eq.f32.partialorder %v1794_v62, 8.507059e+37  ;;  %v1932_v46 = vadd.f32 1.0, %v2215_v45  ;;  %v2216_v21 = vclamps-f32 %v1759_v5, 1.0 }
 0x208   : > { %v2325_v1 = vpop.eup %2324  ;;  %v1898_v50 = vadd.f32 0.014752088, %v1897_v23  ;;  %v1798_v26 = vsel %vm1795_vm15, %v1797_v27, %v1793_v13  ;;  %v1887_v61 = vadd.f32 0.0036580483, %v1886_v16  ;;  %v1774_v51 = vmul.f32 %v1773_v19, %v3619_v32 }
 0x209   : > { %v1826_v25 = vmul.f32 %v2325_v1, %v3810_v7  ;;  %v1863_v4 = vmul.f32 %v1862_v20, %v3763_v44  ;;  %v1813_v10 = vadd.f32 1.1283791, %v1812_v53  ;;  %v1948_v38 = vmul.f32 %v1932_v46, %v1260_v22 }
 0x20a   : > { %v1899_v60 = vmul.f32 %v1898_v50, %v3807_v41  ;;  %v1836_v31 = vand.u32 2147483648, %v3810_v7  ;;  %v1850_v11 = vmul.f32 %v1849_v24, %v3763_v44  ;;  %v1799_v56 = vmul.f32 %v1798_v26, %v1774_v51 }
 0x20b   : > { %v1827_v34 = vsub.f32 1.0, %v1826_v25  ;;  %v3842_v48 = vadd.f32 1.0, %v1863_v4  ;;  %v1834_v6 = vand.u32 2147483647, %v3810_v7  ;;  %2231 = vmatmul.msk.f32.gmra.mxu2 %vm306_vm0, %v1948_v38  ;;  %v1933_v17 = vadd.f32 1.0, %v2216_v21  ;;  %v2030_v22 = vpop.f32.mrf.mxu2 }
 0x20c   : > { %v1900_v37 = vadd.f32 0.112945676, %v1899_v60  ;;  %vm1831_vm1 = vweird.f32 %v2325_v1  ;;  %v1888_v2 = vmul.f32 %v1887_v61, %v3807_v41  ;;  %v1261_v8 = vmul.f32 0.5, %v3557_v43 }
 0x20d   : > { %v1828_v32 = vmul.f32 %v2325_v1, %v1827_v34  ;;  %2326 = vrcp.f32 %v3842_v48  ;;  %v1814_v14 = vmul.f32 %v1813_v10, %v3666_v29  ;;  %vm1830_vm2 = vweird.f32 %v3810_v7 }
 0x20e   : > { %v1901_v54 = vmul.f32 %v1900_v37, %v3807_v41  ;;  %v1837_v42 = vor.u32 1.1754944e-38, %v1836_v31  ;;  %v1851_v3 = vadd.f32 0.18741608, %v1850_v11  ;;  %vm1832_vm3 = vmor %vm1830_vm2, %vm1831_vm1  ;;  %v1949_v29 = vmul.f32 %v1933_v17, %v1261_v8 }
 0x20f   : > { %v1829_v55 = vadd.f32 %v2325_v1, %v1828_v32  ;;  %v2217_v36 = vclamps-f32 %v1799_v56, 1.0  ;;  %vm2075_vm4 = vcmask 130048   ;;  %vm1835_vm5 = vcmp.eq.f32.partialorder %v1834_v6, 8.507059e+37 }
 0x210   : > { %v1902_v43 = vadd.f32 0.4994258, %v1901_v54  ;;  %v1889_v18 = vadd.f32 0.05243302, %v1888_v2  ;;  %v2028_v15 = vadd.f32 %v3855_v9, %v2027_v57  ;;  %v1852_v49 = vmul.f32 %v1851_v3, %v3763_v44 }
 0x211   : > { %v1833_v7 = vsel %vm1832_vm3, %v2325_v1, %v1829_v55  ;;  %v1934_v59 = vadd.f32 1.0, %v2217_v36  ;;  %v1262_v12 = vmul.f32 0.5, %v3592_v28  ;;  %v1263_v16 = vmul.f32 0.5, %v3647_v63 }
 0x212   : > { %v1838_v30 = vsel %vm1835_vm5, %v1837_v42, %v1833_v7  ;;  %v1903_v52 = vmul.f32 %v1902_v43, %v3807_v41  ;;  %2076 = vst.msk [vmem:[%s3862_s9] sm:$0xff] %vm2075_vm4, %v2028_v15  ;;  %v1890_v47 = vmul.f32 %v1889_v18, %v3807_v41  ;;  %v1853_v44 = vadd.f32 1.1283791, %v1852_v49 }
 0x213   : > { %v2327_v35 = vpop.eup %2326  ;;  %v1839_v39 = vmul.f32 %v1838_v30, %v1814_v14  ;;  %2232 = vmatmul.msk.f32.gmra.mxu2 %vm306_vm0, %v1949_v29  ;;  %v1874_v23 = vand.u32 2147483647, %v3842_v48  ;;  %v1876_v45 = vand.u32 2147483648, %v3842_v48  ;;  %v1950_v24 = vmul.f32 %v1934_v59, %v1262_v12 }
 0x214   : > { %v1866_v5 = vmul.f32 %v2327_v35, %v3842_v48  ;;  %v1904_v62 = vadd.f32 1.0, %v1903_v52  ;;  %vm1871_vm6 = vweird.f32 %v2327_v35  ;;  %v2031_v20 = vadd.f32 %v3855_v9, %v2030_v22 }
 0x215   : > { %v2218_v19 = vclamps-f32 %v1839_v39, 1.0  ;;  %v1891_v50 = vadd.f32 0.18741608, %v1890_v47  ;;  %vm1870_vm7 = vweird.f32 %v3842_v48  ;;  %v1877_v63 = vor.u32 1.1754944e-38, %v1876_v45 }
 0x216   : > { %v1867_v13 = vsub.f32 1.0, %v1866_v5  ;;  %2328 = vrcp.f32 %v1904_v62  ;;  %2077 = vst.msk [vmem:[%s3862_s9 + $0x8] sm:$0xff] %vm2075_vm4, %v2031_v20  ;;  %vm1872_vm8 = vmor %vm1870_vm7, %vm1871_vm6  ;;  %v1854_v21 = vmul.f32 %v1853_v44, %v3741_v58  ;;  %vm1875_vm9 = vcmp.eq.f32.partialorder %v1874_v23, 8.507059e+37 }
 0x217   : > { %v1935_v53 = vadd.f32 1.0, %v2218_v19  ;;  %v1892_v4 = vmul.f32 %v1891_v50, %v3807_v41  ;;  %v1916_v38 = vand.u32 2147483648, %v1904_v62  ;;  %v1914_v58 = vand.u32 2147483647, %v1904_v62 }
 0x218   : > { %v1868_v27 = vmul.f32 %v2327_v35, %v1867_v13  ;;  %v1264_v56 = vmul.f32 0.5, %v3724_v33  ;;  %vm1910_vm11 = vweird.f32 %v1904_v62  ;;  %v1265_v54 = vmul.f32 0.5, %v3758_v0 }
 0x219   : > { %v1951_v1 = vmul.f32 %v1935_v53, %v1263_v16  ;;  %v2033_v60 = vpop.f32.mrf.mxu2  ;;  %v1893_v11 = vadd.f32 1.1283791, %v1892_v4  ;;  %v1917_v41 = vor.u32 1.1754944e-38, %v1916_v38  ;;  %vm1915_vm13 = vcmp.eq.f32.partialorder %v1914_v58, 8.507059e+37 }
 0x21a   : > { %v1869_v28 = vadd.f32 %v2327_v35, %v1868_v27  ;;  %v2034_v31 = vadd.f32 %v3855_v9, %v2033_v60 }
 0x21b   : > { %2234 = vmatmul.msk.f32.vlgmr.msra.gmra.mxu3 %vm306_vm0, %v1951_v1  ;;  %2233 = vmatmul.msk.f32.gmra.mxu2 %vm306_vm0, %v1950_v24  ;;  %v1894_v32 = vmul.f32 %v1893_v11, %v3780_v40 }
 0x21c   : > { %v2329_v46 = vpop.eup %2328  ;;  %v1873_v26 = vsel %vm1872_vm8, %v2327_v35, %v1869_v28  ;;  %2078 = vst.msk [vmem:[%s3862_s9 + $0x10] sm:$0xff] %vm2075_vm4, %v2034_v31 }
 0x21d   : > { %v1878_v25 = vsel %vm1875_vm9, %v1877_v63, %v1873_v26  ;;  %v1906_v61 = vmul.f32 %v2329_v46, %v1904_v62  ;;  %vm1911_vm10 = vweird.f32 %v2329_v46 }
 0x21e   : > { %v1879_v51 = vmul.f32 %v1878_v25, %v1854_v21  ;;  %vm1912_vm12 = vmor %vm1910_vm11, %vm1911_vm10 }
 0x21f   : > { %v1907_v10 = vsub.f32 1.0, %v1906_v61 }
 0x220   : > { %v2219_v34 = vclamps-f32 %v1879_v51, 1.0 }
 0x221   : > { %v1908_v48 = vmul.f32 %v2329_v46, %v1907_v10 }
 0x222   : > { %v1936_v6 = vadd.f32 1.0, %v2219_v34 }
 0x223   : > { %v1909_v37 = vadd.f32 %v2329_v46, %v1908_v48 }
 0x224   : > { %v1952_v17 = vmul.f32 %v1936_v6, %v1264_v56 }
 0x225   : > { %v1913_v2 = vsel %vm1912_vm12, %v2329_v46, %v1909_v37 }
 0x226   : > { %v1918_v8 = vsel %vm1915_vm13, %v1917_v41, %v1913_v2  ;;  %2235 = vmatmul.msk.f32.gmra.mxu3 %vm306_vm0, %v1952_v17 }
 0x227   : > { %v1919_v14 = vmul.f32 %v1918_v8, %v1894_v32 }
 0x229   : > { %v2220_v33 = vclamps-f32 %v1919_v14, 1.0 }
 0x22b   : > { %v1937_v55 = vadd.f32 1.0, %v2220_v33 }
 0x22d   : > { %v1953_v42 = vmul.f32 %v1937_v55, %v1265_v54 }
 0x22f   : > { %2236 = vmatmul.msk.f32.gmra.mxu3 %vm306_vm0, %v1953_v42 }
 0x238   : > { %v2036_v3 = vpop.f32.mrf.mxu2 }
 0x239   : > { %v2037_v40 = vadd.f32 %v3855_v9, %v2036_v3 }
 0x23b   : > { %2079 = vst.msk [vmem:[%s3862_s9 + $0x18] sm:$0xff] %vm2075_vm4, %v2037_v40 }
 0x253   : > { %v2039_v57 = vpop.f32.mrf.mxu2 }
 0x254   : > { %v2040_v43 = vadd.f32 %v3855_v9, %v2039_v57 }
 0x256   : > { %2080 = vst.msk [vmem:[%s3862_s9 + $0x20] sm:$0xff] %vm2075_vm4, %v2040_v43 }
 0x25c   : > { %v2042_v29 = vpop.f32.mrf.mxu2 }
 0x25d   : > { %v2043_v0 = vadd.f32 %v3855_v9, %v2042_v29 }
 0x25f   : > { %2081 = vst.msk [vmem:[%s3862_s9 + $0x28] sm:$0xff] %vm2075_vm4, %v2043_v0 }
 0x264   : > { %v2045_v36 = vpop.f32.mrf.mxu2 }
 0x265   : > { %v2046_v7 = vadd.f32 %v3855_v9, %v2045_v36 }
 0x267   : > { %2082 = vst.msk [vmem:[%s3862_s9 + $0x30] sm:$0xff] %vm2075_vm4, %v2046_v7 }
 0x26e   : > { %v2048_v18 = vpop.f32.mrf.mxu2 }
 0x26f   : > { %v2049_v15 = vadd.f32 %v3855_v9, %v2048_v18 }
 0x271   : > { %2083 = vst.msk [vmem:[%s3862_s9 + $0x38] sm:$0xff] %vm2075_vm4, %v2049_v15 }
 0x27e   : > { %v2051_v30 = vpop.f32.mrf.mxu2 }
 0x27f   : > { %v2052_v52 = vadd.f32 %v3855_v9, %v2051_v30 }
 0x281   : > { %2084 = vst.msk [vmem:[%s3862_s9 + $0x40] sm:$0xff] %vm2075_vm4, %v2052_v52 }
 0x286   : > { %v2054_v35 = vpop.f32.mrf.mxu2 }
 0x287   : > { %v2055_v39 = vadd.f32 %v3855_v9, %v2054_v35 }
 0x289   : > { %2085 = vst.msk [vmem:[%s3862_s9 + $0x48] sm:$0xff] %vm2075_vm4, %v2055_v39 }
 0x28e   : > { %v2057_v49 = vpop.f32.mrf.mxu2 }
 0x28f   : > { %v2058_v5 = vadd.f32 %v3855_v9, %v2057_v49 }
 0x291   : > { %2086 = vst.msk [vmem:[%s3862_s9 + $0x50] sm:$0xff] %vm2075_vm4, %v2058_v5 }
 0x296   : > { %v2060_v62 = vpop.f32.mrf.mxu2 }
 0x297   : > { %v2061_v59 = vadd.f32 %v3855_v9, %v2060_v62 }
 0x299   : > { %2087 = vst.msk [vmem:[%s3862_s9 + $0x58] sm:$0xff] %vm2075_vm4, %v2061_v59 }
 0x29e   : > { %v2066_v19 = vpop.f32.mrf.mxu3  ;;  %v2063_v47 = vpop.f32.mrf.mxu2 }
 0x29f   : > { %v2067_v12 = vadd.f32 %v3855_v9, %v2066_v19  ;;  %v2064_v16 = vadd.f32 %v3855_v9, %v2063_v47 }
 0x2a1   : > { %2089 = vst.msk [vmem:[%s3862_s9 + $0x68] sm:$0xff] %vm2075_vm4, %v2067_v12 }
 0x2a2   : > { %2088 = vst.msk [vmem:[%s3862_s9 + $0x60] sm:$0xff] %vm2075_vm4, %v2064_v16 }
 0x2a9   : > { %v2069_v13 = vpop.f32.mrf.mxu3 }
 0x2aa   : > { %v2070_v53 = vadd.f32 %v3855_v9, %v2069_v13 }
 0x2ac   : > { %2090 = vst.msk [vmem:[%s3862_s9 + $0x70] sm:$0xff] %vm2075_vm4, %v2070_v53 }
 0x2b2   : > { %v2072_v44 = vpop.f32.mrf.mxu3 }
 0x2b3   : > { %v2073_v23 = vadd.f32 %v3855_v9, %v2072_v44 }
 0x2b5   : > { %2091 = vst.msk [vmem:[%s3862_s9 + $0x78] sm:$0xff] %vm2075_vm4, %v2073_v23 }
 0x2b6 PF: > { %s17_s24 = sadd.s32 1, %s2337_s24  }
 0x2b7   : > { %p14_p4 = scmp.ge.s32.totalorder %s17_s24, 4  }
 0x2b9   :  { %16 = sbr.rel (!%p14_p4) target bundleno = 1 (0x1), region = 78 }

</bundles_post_ra>
